<compile_context>
chip_gen: v5e
topology: v5e:2x2
jax: 0.10.0
libtpu: 0.0.40
codegen_flags: <defaults>
</compile_context>

<pallas_src>
from functools import partial

import jax
import jax.numpy as jnp
from jax.experimental import pallas as pl
from jax.experimental.pallas import tpu as pltpu


# DEFAULT lets the MXU run native bf16 passes with f32 accumulation (fastest on
# v5e/v6e/v7x).  Weights are stored bf16 in HBM, so expect ~1e-3 absolute deviation
# from an f32 PyTorch reference (use Precision.HIGHEST + f32 weights for bit parity).
_MM_PRECISION = jax.lax.Precision.DEFAULT


# ----------------------------- fused Pallas kernel -----------------------------

def _toynet_kernel(dims,
                   x_ref, x1_ref,
                   w1_ref, b1_ref, a1_ref,
                   w2_ref, b2_ref, a2_ref,
                   w3_ref, b3_ref, a3_ref,
                   wc_ref, bc_ref, ac_ref,
                   wm_ref, bm_ref, am_ref,
                   wf1a_ref, wf1b_ref, bf1_ref, af1_ref,
                   wf2_ref, bf2_ref,
                   o_ref):
    B, OH1, OW1 = dims
    R = B * OH1 * OW1                      # conv1 output rows (= 128 for 36x36 charts)
    f32 = jnp.float32

    def swish(y, beta):
        return y * jax.nn.sigmoid(beta * y)

    def dot(a, w):
        # Weights live in VMEM as bf16; cast the f32 activations at the MXU input and
        # accumulate in f32.
        return jnp.dot(a.astype(w.dtype), w, precision=_MM_PRECISION,
                       preferred_element_type=f32)

    def shift_rows(v, s):
        # result[r] = v[(r + s) % R]; consumed rows never wrap (valid-conv indices).
        return jnp.roll(v, -s, axis=0) if s else v

    # --- conv1: 8x8 / stride 4 as ONE dense matmul on the wrapper-built im2col LHS ----
    # x1 rows are (b, oh1, ow1); columns are the 4*16*C window features.
    h1 = swish(dot(x1_ref[...], w1_ref[...]) + b1_ref[...], a1_ref[...])      # [R, 32]

    # --- conv2: 4x4 / stride 2, batched over all (b, oh2, ow2) at once ----------------
    # Accumulator row r0 = b*OH1*OW1 + 2*(oh2*OW1 + ow2) holds output (b, oh2, ow2);
    # the conv input pixel (kh, kw) lives at h1 row r0 + kh*OW1 + kw.  The 4 kernel
    # columns are lane-concatenated (sublane shifts by kw), so each kernel row kh is
    # ONE [R,128] x [128,64] matmul against a dense bf16 weight.
    g2 = jnp.concatenate([shift_rows(h1, kw) for kw in range(4)], axis=-1)    # [R, 128]
    acc2 = dot(g2, w2_ref[0])
    for kh in range(1, 4):
        acc2 = acc2 + dot(shift_rows(g2, kh * OW1), w2_ref[kh])               # [R, 64]
    h2 = swish(acc2 + b2_ref[...], a2_ref[...])   # valid at rows b*OH1*OW1 + 2*(oh2*OW1+ow2)

    # --- conv3: 3x3 / stride 1 -> 1x1 spatial, same shift/concat trick ----------------
    g3 = jnp.concatenate([shift_rows(h2, 2 * kw) for kw in range(3)], axis=-1)  # [R, 192]
    acc3 = dot(g3, w3_ref[0])
    for kh in range(1, 3):
        acc3 = acc3 + dot(shift_rows(g3, 2 * kh * OW1), w3_ref[kh])           # [R, 64]
    # TODO(synk): generalize conv3 + flatten to >1x1 final spatial maps (needs a
    # channel-order permutation of cnn_mlp_w rows to keep PyTorch's C,H,W flatten order).
    h3 = jnp.concatenate([acc3[b * OH1 * OW1:b * OH1 * OW1 + 1] for b in range(B)],
                         axis=0)
    h3 = swish(h3 + b3_ref[...], a3_ref[...])                                 # [B, 64]

    # --- NatureCnn MLP: flatten (64 x 1 x 1) -> 512, Swish ----------------------------
    x_chart = swish(dot(h3, wc_ref[...]) + bc_ref[...], ac_ref[...])          # [B, 512]

    # --- plain MLP branch: input_dim -> 300, Swish ------------------------------------
    x_inp = swish(dot(x_ref[...], wm_ref[...]) + bm_ref[...], am_ref[...])    # [B, 300]

    # --- fuse head: concat -> Linear -> Swish -> Linear(->1) --------------------------
    # concat expressed as a split matmul (mlp-branch rows / cnn-branch rows of W1;
    # PyTorch cat order is (x_inp, x_chart)).
    y = dot(x_inp, wf1a_ref[...]) + dot(x_chart, wf1b_ref[...]) + bf1_ref[...]
    y = swish(y, af1_ref[...])                                                # [B, 300]
    # final 300 -> 1 projection: VPU multiply + lane reduction (no 1-wide MXU tile).
    o_ref[...] = jnp.sum(y * wf2_ref[...], axis=-1, keepdims=True) + bf2_ref[...]


# ----------------------------- forward wrapper -----------------------------

def toynet_forward(kp, x, chart):
    """x: [B, input_dim] f32;  chart: [B, C, H, W] f32 (NCHW, as in PyTorch)."""
    B, C, H, W = chart.shape
    assert H % 4 == 0 and W % 4 == 0, "conv1 space-to-depth prep needs H, W divisible by 4"
    HB, WB = H // 4, W // 4
    OH1, OW1 = HB - 1, WB - 1
    OH2, OW2 = (OH1 - 4) // 2 + 1, (OW1 - 4) // 2 + 1
    assert OH2 == 3 and OW2 == 3, (
        "fused kernel assumes the NatureCnn stack ends at 1x1 spatial (36x36-class input)")
    PB = 16 * C

    # One-time layout plumbing on the 31 KiB raw chart: NCHW -> 4x4 space-to-depth cells
    # -> conv1 im2col rows, so the kernel's conv1 is a single dense, lane-aligned matmul
    # and no lane-axis slicing at non-128 offsets happens inside the kernel.
    cs = jnp.transpose(chart, (0, 2, 3, 1))                            # [B, H, W, C]
    cs = cs.reshape(B, HB, 4, WB, 4, C).transpose(0, 1, 3, 2, 4, 5)    # [B,HB,WB,4,4,C]
    cs = cs.reshape(B, HB, WB, PB)
    x1 = jnp.concatenate([cs[:, :OH1, :OW1],       cs[:, :OH1, 1:OW1 + 1],
                          cs[:, 1:OH1 + 1, :OW1],  cs[:, 1:OH1 + 1, 1:OW1 + 1]],
                         axis=-1)                                      # [B,OH1,OW1,4*PB]
    x1 = x1.reshape(B * OH1 * OW1, 4 * PB)

    vmem = pl.BlockSpec(memory_space=pltpu.MemorySpace.VMEM)
    dims = (B, OH1, OW1)
    # NOTE: at toy batch sizes a single un-gridded, fully VMEM-resident call is optimal
    # (the problem is launch/DMA bound; resident footprint is now < 1 MiB).  For large
    # batches, add a grid over batch chunks with constant-index weight BlockSpecs
    # (weights stay VMEM-resident across steps) and blocked x/x1 specs so their DMA
    # double-buffers with compute; mark the batch axis "parallel" so v7x's two
    # TensorCores split it, and re-budget tiles against v7x's 64 MiB VMEM.
    return pl.pallas_call(
        partial(_toynet_kernel, dims),
        out_shape=jax.ShapeDtypeStruct((B, 1), jnp.float32),
        in_specs=[vmem] * 23,
        out_specs=vmem,
        compiler_params=pltpu.CompilerParams(vmem_limit_bytes=32 * 1024 * 1024),
    )(x, x1,
      kp["w1"], kp["b1"], kp["a1"],
      kp["w2"], kp["b2"], kp["a2"],
      kp["w3"], kp["b3"], kp["a3"],
      kp["wc"], kp["bc"], kp["ac"],
      kp["wm"], kp["bm"], kp["am"],
      kp["wf1a"], kp["wf1b"], kp["bf1"], kp["af1"],
      kp["wf2"], kp["bf2"])


# ----------------------------- parameter init (PyTorch semantics) -----------------------------

def _init_linear(key, in_dim, out_dim):
    kw, kb = jax.random.split(key)
    bound = 1.0 / jnp.sqrt(jnp.float32(in_dim))
    w = jax.random.uniform(kw, (in_dim, out_dim), jnp.float32, -bound, bound)
    b = jax.random.uniform(kb, (out_dim,), jnp.float32, -bound, bound)
    return w, b


def _init_conv(key, out_c, in_c, k):
    kw, kb = jax.random.split(key)
    bound = 1.0 / jnp.sqrt(jnp.float32(in_c * k * k))
    w = jax.random.uniform(kw, (out_c, in_c, k, k), jnp.float32, -bound, bound)  # torch layout
    b = jax.random.uniform(kb, (out_c,), jnp.float32, -bound, bound)
    return w, b


def init_toynet(key, chart_shape, input_dim=3, output_dim=1,
                mlp_units=(300,), fuse_units=(300,), cnn_mlp_units=(512,)):
    """Logical (PyTorch-layout) ToyNet parameters."""
    c, h, w = chart_shape
    keys = jax.random.split(key, 7)
    p = {}
    p["c1_w"], p["c1_b"] = _init_conv(keys[0], 32, c, 8)      # stride 4
    p["c1_beta"] = jnp.ones((32,), jnp.float32)
    p["c2_w"], p["c2_b"] = _init_conv(keys[1], 64, 32, 4)     # stride 2
    p["c2_beta"] = jnp.ones((64,), jnp.float32)
    p["c3_w"], p["c3_b"] = _init_conv(keys[2], 64, 64, 3)     # stride 1
    p["c3_beta"] = jnp.ones((64,), jnp.float32)

    h1, w1 = (h - 8) // 4 + 1, (w - 8) // 4 + 1
    h2, w2 = (h1 - 4) // 2 + 1, (w1 - 4) // 2 + 1
    h3, w3 = h2 - 2, w2 - 2
    flat_dim = 64 * h3 * w3

    p["cnn_mlp_w"], p["cnn_mlp_b"] = _init_linear(keys[3], flat_dim, cnn_mlp_units[0])
    p["cnn_mlp_beta"] = jnp.ones((cnn_mlp_units[0],), jnp.float32)

    p["mlp_w"], p["mlp_b"] = _init_linear(keys[4], input_dim, mlp_units[0])
    p["mlp_beta"] = jnp.ones((mlp_units[0],), jnp.float32)

    fuse_in = mlp_units[0] + cnn_mlp_units[0]
    w1f, p["fuse1_b"] = _init_linear(keys[5], fuse_in, fuse_units[0])
    p["fuse1_wa"] = w1f[:mlp_units[0]]     # rows matching mlp-branch features (cat order)
    p["fuse1_wb"] = w1f[mlp_units[0]:]     # rows matching cnn-branch features
    p["fuse1_beta"] = jnp.ones((fuse_units[0],), jnp.float32)
    p["fuse2_w"], p["fuse2_b"] = _init_linear(keys[6], fuse_units[0], output_dim)
    return p


def prepare_params(p, chart_shape, weight_dtype=jnp.bfloat16):
    """Repack logical parameters into the dense, bf16 matmul layouts the fused kernel uses."""
    C, H, W = chart_shape
    assert H % 4 == 0 and W % 4 == 0, "space-to-depth conv1 prep needs H, W divisible by 4"
    HB, WB = H // 4, W // 4
    OH1, OW1 = HB - 1, WB - 1
    OH2, OW2 = (OH1 - 4) // 2 + 1, (OW1 - 4) // 2 + 1
    assert OH2 == 3 and OW2 == 3, (
        "fused kernel assumes the NatureCnn stack ends at 1x1 spatial (36x36-class input)")
    assert p["fuse2_w"].shape[1] == 1, "VPU-reduction head assumes output_dim == 1"
    PB = 16 * C
    wd = weight_dtype

    kp = {}
    # conv1 -> dense im2col weight [4*PB, 32]; rows ordered (dh, dw, hi, wi, c) to match
    # the wrapper-built im2col columns.  No block-diagonal zero padding.
    w1t = jnp.transpose(p["c1_w"], (2, 3, 1, 0))                     # [kh, kw, c, oc]
    w1s = w1t.reshape(2, 4, 2, 4, C, 32).transpose(0, 2, 1, 3, 4, 5)  # [dh,dw,hi,wi,c,oc]
    kp["w1"] = w1s.reshape(4 * PB, 32).astype(wd)
    kp["b1"] = p["c1_b"].reshape(1, -1)
    kp["a1"] = p["c1_beta"].reshape(1, -1)

    # conv2 -> dense per-kernel-row weights [kh][kw*32 + c, oc].  No banded zero padding.
    w2t = jnp.transpose(p["c2_w"], (2, 3, 1, 0))                     # [kh, kw, c, oc]
    kp["w2"] = w2t.reshape(4, 4 * 32, 64).astype(wd)
    kp["b2"] = p["c2_b"].reshape(1, -1)
    kp["a2"] = p["c2_beta"].reshape(1, -1)

    # conv3 -> dense per-kernel-row weights [kh][kw*64 + c, oc].
    w3t = jnp.transpose(p["c3_w"], (2, 3, 1, 0))                     # [kh, kw, c, oc]
    kp["w3"] = w3t.reshape(3, 3 * 64, 64).astype(wd)
    kp["b3"] = p["c3_b"].reshape(1, -1)
    kp["a3"] = p["c3_beta"].reshape(1, -1)

    kp["wc"] = p["cnn_mlp_w"].astype(wd)
    kp["bc"] = p["cnn_mlp_b"].reshape(1, -1)
    kp["ac"] = p["cnn_mlp_beta"].reshape(1, -1)
    kp["wm"] = p["mlp_w"].astype(wd)
    kp["bm"] = p["mlp_b"].reshape(1, -1)
    kp["am"] = p["mlp_beta"].reshape(1, -1)
    kp["wf1a"] = p["fuse1_wa"].astype(wd)
    kp["wf1b"] = p["fuse1_wb"].astype(wd)
    kp["bf1"] = p["fuse1_b"].reshape(1, -1)
    kp["af1"] = p["fuse1_beta"].reshape(1, -1)
    kp["wf2"] = p["fuse2_w"].T                                       # [1, 300], f32 (VPU path)
    kp["bf2"] = p["fuse2_b"].reshape(1, 1)
    return kp


# ----------------------------- main -----------------------------

if __name__ == "__main__":
    B = 2
    input_dim = 3
    output_dim = 1
    chart_shape = (3, 36, 36)   # smallest spatial size for which the 8/4, 4/2, 3/1 stack ends at 1x1

    key = jax.random.PRNGKey(0)
    k_params, k_x, k_chart = jax.random.split(key, 3)

    params = init_toynet(k_params, chart_shape, input_dim=input_dim, output_dim=output_dim)
    kparams = prepare_params(params, chart_shape)

    x = jax.random.normal(k_x, (B, input_dim), jnp.float32)
    chart = jax.random.normal(k_chart, (B,) + chart_shape, jnp.float32)

    out = jax.jit(toynet_forward)(kparams, x, chart)
    out = jax.block_until_ready(out)
    assert out.shape == (B, output_dim) and out.dtype == jnp.float32
    assert bool(jnp.all(jnp.isfinite(out)))
    print("KERNEL_OK")
</pallas_src>

<mosaic_0001>
module attributes {stable_mosaic.version = 11 : i64} {
  func.func @_toynet_kernel(%arg0: memref<2x3xf32, #tpu.memory_space<vmem>>, %arg1: memref<128x192xf32, #tpu.memory_space<vmem>>, %arg2: memref<192x32xbf16, #tpu.memory_space<vmem>>, %arg3: memref<1x32xf32, #tpu.memory_space<vmem>>, %arg4: memref<1x32xf32, #tpu.memory_space<vmem>>, %arg5: memref<4x128x64xbf16, #tpu.memory_space<vmem>>, %arg6: memref<1x64xf32, #tpu.memory_space<vmem>>, %arg7: memref<1x64xf32, #tpu.memory_space<vmem>>, %arg8: memref<3x192x64xbf16, #tpu.memory_space<vmem>>, %arg9: memref<1x64xf32, #tpu.memory_space<vmem>>, %arg10: memref<1x64xf32, #tpu.memory_space<vmem>>, %arg11: memref<64x512xbf16, #tpu.memory_space<vmem>>, %arg12: memref<1x512xf32, #tpu.memory_space<vmem>>, %arg13: memref<1x512xf32, #tpu.memory_space<vmem>>, %arg14: memref<3x300xbf16, #tpu.memory_space<vmem>>, %arg15: memref<1x300xf32, #tpu.memory_space<vmem>>, %arg16: memref<1x300xf32, #tpu.memory_space<vmem>>, %arg17: memref<300x300xbf16, #tpu.memory_space<vmem>>, %arg18: memref<512x300xbf16, #tpu.memory_space<vmem>>, %arg19: memref<1x300xf32, #tpu.memory_space<vmem>>, %arg20: memref<1x300xf32, #tpu.memory_space<vmem>>, %arg21: memref<1x300xf32, #tpu.memory_space<vmem>>, %arg22: memref<1x1xf32, #tpu.memory_space<vmem>>, %arg23: memref<2x1xf32, #tpu.memory_space<vmem>>) attributes {dimension_semantics = [], scalar_prefetch = 0 : i64, scratch_operands = 0 : i64, tpu.core_type = #tpu.core_type<tc>} {
    %c0 = arith.constant 0 : index
    %c0_0 = arith.constant 0 : index
    %0 = vector.load %arg1[%c0, %c0_0] : memref<128x192xf32, #tpu.memory_space<vmem>>, vector<128x192xf32>
    %c0_1 = arith.constant 0 : index
    %c0_2 = arith.constant 0 : index
    %1 = vector.load %arg2[%c0_1, %c0_2] : memref<192x32xbf16, #tpu.memory_space<vmem>>, vector<192x32xbf16>
    %2 = arith.truncf %0 : vector<128x192xf32> to vector<128x192xbf16>
    %cst = arith.constant dense<0.000000e+00> : vector<128x32xf32>
    %3 = tpu.matmul %2, %1, %cst {dimension_numbers = #tpu.dot_dimension_numbers<[1], [0], [0], [1], [0, 0, 1, 1], [], []>} : vector<128x192xbf16>, vector<192x32xbf16>, vector<128x32xf32> -> vector<128x32xf32>
    %c0_3 = arith.constant 0 : index
    %c0_4 = arith.constant 0 : index
    %4 = vector.load %arg3[%c0_3, %c0_4] : memref<1x32xf32, #tpu.memory_space<vmem>>, vector<1x32xf32>
    %5 = vector.broadcast %4 : vector<1x32xf32> to vector<128x32xf32>
    %6 = arith.addf %3, %5 : vector<128x32xf32>
    %c0_5 = arith.constant 0 : index
    %c0_6 = arith.constant 0 : index
    %7 = vector.load %arg4[%c0_5, %c0_6] : memref<1x32xf32, #tpu.memory_space<vmem>>, vector<1x32xf32>
    %8 = vector.broadcast %7 : vector<1x32xf32> to vector<128x32xf32>
    %9 = arith.mulf %8, %6 : vector<128x32xf32>
    %10 = arith.negf %9 : vector<128x32xf32>
    %11 = math.exp %10 : vector<128x32xf32>
    %cst_7 = arith.constant 1.000000e+00 : f32
    %12 = vector.broadcast %cst_7 : f32 to vector<128x32xf32>
    %13 = arith.addf %12, %11 : vector<128x32xf32>
    %14 = arith.divf %12, %13 : vector<128x32xf32>
    %15 = arith.mulf %6, %14 : vector<128x32xf32>
    %16 = vector.extract_strided_slice %15 {offsets = [1, 0], sizes = [127, 32], strides = [1, 1]} : vector<128x32xf32> to vector<127x32xf32>
    %17 = vector.extract_strided_slice %15 {offsets = [0, 0], sizes = [1, 32], strides = [1, 1]} : vector<128x32xf32> to vector<1x32xf32>
    %18 = tpu.concatenate %16, %17 in 0 : vector<127x32xf32>, vector<1x32xf32> -> vector<128x32xf32>
    %19 = vector.extract_strided_slice %15 {offsets = [2, 0], sizes = [126, 32], strides = [1, 1]} : vector<128x32xf32> to vector<126x32xf32>
    %20 = vector.extract_strided_slice %15 {offsets = [0, 0], sizes = [2, 32], strides = [1, 1]} : vector<128x32xf32> to vector<2x32xf32>
    %21 = tpu.concatenate %19, %20 in 0 : vector<126x32xf32>, vector<2x32xf32> -> vector<128x32xf32>
    %22 = vector.extract_strided_slice %15 {offsets = [3, 0], sizes = [125, 32], strides = [1, 1]} : vector<128x32xf32> to vector<125x32xf32>
    %23 = vector.extract_strided_slice %15 {offsets = [0, 0], sizes = [3, 32], strides = [1, 1]} : vector<128x32xf32> to vector<3x32xf32>
    %24 = tpu.concatenate %22, %23 in 0 : vector<125x32xf32>, vector<3x32xf32> -> vector<128x32xf32>
    %25 = tpu.concatenate %15, %18, %21, %24 in 1 : vector<128x32xf32>, vector<128x32xf32>, vector<128x32xf32>, vector<128x32xf32> -> vector<128x128xf32>
    %c0_8 = arith.constant 0 : index
    %c0_9 = arith.constant 0 : index
    %c0_10 = arith.constant 0 : index
    %26 = vector.load %arg5[%c0_8, %c0_9, %c0_10] : memref<4x128x64xbf16, #tpu.memory_space<vmem>>, vector<1x128x64xbf16>
    %27 = vector.shape_cast %26 : vector<1x128x64xbf16> to vector<128x64xbf16>
    %28 = arith.truncf %25 : vector<128x128xf32> to vector<128x128xbf16>
    %cst_11 = arith.constant dense<0.000000e+00> : vector<128x64xf32>
    %29 = tpu.matmul %28, %27, %cst_11 {dimension_numbers = #tpu.dot_dimension_numbers<[1], [0], [0], [1], [0, 0, 1, 1], [], []>} : vector<128x128xbf16>, vector<128x64xbf16>, vector<128x64xf32> -> vector<128x64xf32>
    %30 = vector.extract_strided_slice %25 {offsets = [8, 0], sizes = [120, 128], strides = [1, 1]} : vector<128x128xf32> to vector<120x128xf32>
    %31 = vector.extract_strided_slice %25 {offsets = [0, 0], sizes = [8, 128], strides = [1, 1]} : vector<128x128xf32> to vector<8x128xf32>
    %32 = tpu.concatenate %30, %31 in 0 : vector<120x128xf32>, vector<8x128xf32> -> vector<128x128xf32>
    %c1 = arith.constant 1 : index
    %c0_12 = arith.constant 0 : index
    %c0_13 = arith.constant 0 : index
    %33 = vector.load %arg5[%c1, %c0_12, %c0_13] : memref<4x128x64xbf16, #tpu.memory_space<vmem>>, vector<1x128x64xbf16>
    %34 = vector.shape_cast %33 : vector<1x128x64xbf16> to vector<128x64xbf16>
    %35 = arith.truncf %32 : vector<128x128xf32> to vector<128x128xbf16>
    %cst_14 = arith.constant dense<0.000000e+00> : vector<128x64xf32>
    %36 = tpu.matmul %35, %34, %cst_14 {dimension_numbers = #tpu.dot_dimension_numbers<[1], [0], [0], [1], [0, 0, 1, 1], [], []>} : vector<128x128xbf16>, vector<128x64xbf16>, vector<128x64xf32> -> vector<128x64xf32>
    %37 = arith.addf %29, %36 : vector<128x64xf32>
    %38 = vector.extract_strided_slice %25 {offsets = [16, 0], sizes = [112, 128], strides = [1, 1]} : vector<128x128xf32> to vector<112x128xf32>
    %39 = vector.extract_strided_slice %25 {offsets = [0, 0], sizes = [16, 128], strides = [1, 1]} : vector<128x128xf32> to vector<16x128xf32>
    %40 = tpu.concatenate %38, %39 in 0 : vector<112x128xf32>, vector<16x128xf32> -> vector<128x128xf32>
    %c2 = arith.constant 2 : index
    %c0_15 = arith.constant 0 : index
    %c0_16 = arith.constant 0 : index
    %41 = vector.load %arg5[%c2, %c0_15, %c0_16] : memref<4x128x64xbf16, #tpu.memory_space<vmem>>, vector<1x128x64xbf16>
    %42 = vector.shape_cast %41 : vector<1x128x64xbf16> to vector<128x64xbf16>
    %43 = arith.truncf %40 : vector<128x128xf32> to vector<128x128xbf16>
    %cst_17 = arith.constant dense<0.000000e+00> : vector<128x64xf32>
    %44 = tpu.matmul %43, %42, %cst_17 {dimension_numbers = #tpu.dot_dimension_numbers<[1], [0], [0], [1], [0, 0, 1, 1], [], []>} : vector<128x128xbf16>, vector<128x64xbf16>, vector<128x64xf32> -> vector<128x64xf32>
    %45 = arith.addf %37, %44 : vector<128x64xf32>
    %46 = vector.extract_strided_slice %25 {offsets = [24, 0], sizes = [104, 128], strides = [1, 1]} : vector<128x128xf32> to vector<104x128xf32>
    %47 = vector.extract_strided_slice %25 {offsets = [0, 0], sizes = [24, 128], strides = [1, 1]} : vector<128x128xf32> to vector<24x128xf32>
    %48 = tpu.concatenate %46, %47 in 0 : vector<104x128xf32>, vector<24x128xf32> -> vector<128x128xf32>
    %c3 = arith.constant 3 : index
    %c0_18 = arith.constant 0 : index
    %c0_19 = arith.constant 0 : index
    %49 = vector.load %arg5[%c3, %c0_18, %c0_19] : memref<4x128x64xbf16, #tpu.memory_space<vmem>>, vector<1x128x64xbf16>
    %50 = vector.shape_cast %49 : vector<1x128x64xbf16> to vector<128x64xbf16>
    %51 = arith.truncf %48 : vector<128x128xf32> to vector<128x128xbf16>
    %cst_20 = arith.constant dense<0.000000e+00> : vector<128x64xf32>
    %52 = tpu.matmul %51, %50, %cst_20 {dimension_numbers = #tpu.dot_dimension_numbers<[1], [0], [0], [1], [0, 0, 1, 1], [], []>} : vector<128x128xbf16>, vector<128x64xbf16>, vector<128x64xf32> -> vector<128x64xf32>
    %53 = arith.addf %45, %52 : vector<128x64xf32>
    %c0_21 = arith.constant 0 : index
    %c0_22 = arith.constant 0 : index
    %54 = vector.load %arg6[%c0_21, %c0_22] : memref<1x64xf32, #tpu.memory_space<vmem>>, vector<1x64xf32>
    %55 = vector.broadcast %54 : vector<1x64xf32> to vector<128x64xf32>
    %56 = arith.addf %53, %55 : vector<128x64xf32>
    %c0_23 = arith.constant 0 : index
    %c0_24 = arith.constant 0 : index
    %57 = vector.load %arg7[%c0_23, %c0_24] : memref<1x64xf32, #tpu.memory_space<vmem>>, vector<1x64xf32>
    %58 = vector.broadcast %57 : vector<1x64xf32> to vector<128x64xf32>
    %59 = arith.mulf %58, %56 : vector<128x64xf32>
    %60 = arith.negf %59 : vector<128x64xf32>
    %61 = math.exp %60 : vector<128x64xf32>
    %cst_25 = arith.constant 1.000000e+00 : f32
    %62 = vector.broadcast %cst_25 : f32 to vector<128x64xf32>
    %63 = arith.addf %62, %61 : vector<128x64xf32>
    %64 = arith.divf %62, %63 : vector<128x64xf32>
    %65 = arith.mulf %56, %64 : vector<128x64xf32>
    %66 = vector.extract_strided_slice %65 {offsets = [2, 0], sizes = [126, 64], strides = [1, 1]} : vector<128x64xf32> to vector<126x64xf32>
    %67 = vector.extract_strided_slice %65 {offsets = [0, 0], sizes = [2, 64], strides = [1, 1]} : vector<128x64xf32> to vector<2x64xf32>
    %68 = tpu.concatenate %66, %67 in 0 : vector<126x64xf32>, vector<2x64xf32> -> vector<128x64xf32>
    %69 = vector.extract_strided_slice %65 {offsets = [4, 0], sizes = [124, 64], strides = [1, 1]} : vector<128x64xf32> to vector<124x64xf32>
    %70 = vector.extract_strided_slice %65 {offsets = [0, 0], sizes = [4, 64], strides = [1, 1]} : vector<128x64xf32> to vector<4x64xf32>
    %71 = tpu.concatenate %69, %70 in 0 : vector<124x64xf32>, vector<4x64xf32> -> vector<128x64xf32>
    %72 = tpu.concatenate %65, %68, %71 in 1 : vector<128x64xf32>, vector<128x64xf32>, vector<128x64xf32> -> vector<128x192xf32>
    %c0_26 = arith.constant 0 : index
    %c0_27 = arith.constant 0 : index
    %c0_28 = arith.constant 0 : index
    %73 = vector.load %arg8[%c0_26, %c0_27, %c0_28] : memref<3x192x64xbf16, #tpu.memory_space<vmem>>, vector<1x192x64xbf16>
    %74 = vector.shape_cast %73 : vector<1x192x64xbf16> to vector<192x64xbf16>
    %75 = arith.truncf %72 : vector<128x192xf32> to vector<128x192xbf16>
    %cst_29 = arith.constant dense<0.000000e+00> : vector<128x64xf32>
    %76 = tpu.matmul %75, %74, %cst_29 {dimension_numbers = #tpu.dot_dimension_numbers<[1], [0], [0], [1], [0, 0, 1, 1], [], []>} : vector<128x192xbf16>, vector<192x64xbf16>, vector<128x64xf32> -> vector<128x64xf32>
    %77 = vector.extract_strided_slice %72 {offsets = [16, 0], sizes = [112, 192], strides = [1, 1]} : vector<128x192xf32> to vector<112x192xf32>
    %78 = vector.extract_strided_slice %72 {offsets = [0, 0], sizes = [16, 192], strides = [1, 1]} : vector<128x192xf32> to vector<16x192xf32>
    %79 = tpu.concatenate %77, %78 in 0 : vector<112x192xf32>, vector<16x192xf32> -> vector<128x192xf32>
    %c1_30 = arith.constant 1 : index
    %c0_31 = arith.constant 0 : index
    %c0_32 = arith.constant 0 : index
    %80 = vector.load %arg8[%c1_30, %c0_31, %c0_32] : memref<3x192x64xbf16, #tpu.memory_space<vmem>>, vector<1x192x64xbf16>
    %81 = vector.shape_cast %80 : vector<1x192x64xbf16> to vector<192x64xbf16>
    %82 = arith.truncf %79 : vector<128x192xf32> to vector<128x192xbf16>
    %cst_33 = arith.constant dense<0.000000e+00> : vector<128x64xf32>
    %83 = tpu.matmul %82, %81, %cst_33 {dimension_numbers = #tpu.dot_dimension_numbers<[1], [0], [0], [1], [0, 0, 1, 1], [], []>} : vector<128x192xbf16>, vector<192x64xbf16>, vector<128x64xf32> -> vector<128x64xf32>
    %84 = arith.addf %76, %83 : vector<128x64xf32>
    %85 = vector.extract_strided_slice %72 {offsets = [32, 0], sizes = [96, 192], strides = [1, 1]} : vector<128x192xf32> to vector<96x192xf32>
    %86 = vector.extract_strided_slice %72 {offsets = [0, 0], sizes = [32, 192], strides = [1, 1]} : vector<128x192xf32> to vector<32x192xf32>
    %87 = tpu.concatenate %85, %86 in 0 : vector<96x192xf32>, vector<32x192xf32> -> vector<128x192xf32>
    %c2_34 = arith.constant 2 : index
    %c0_35 = arith.constant 0 : index
    %c0_36 = arith.constant 0 : index
    %88 = vector.load %arg8[%c2_34, %c0_35, %c0_36] : memref<3x192x64xbf16, #tpu.memory_space<vmem>>, vector<1x192x64xbf16>
    %89 = vector.shape_cast %88 : vector<1x192x64xbf16> to vector<192x64xbf16>
    %90 = arith.truncf %87 : vector<128x192xf32> to vector<128x192xbf16>
    %cst_37 = arith.constant dense<0.000000e+00> : vector<128x64xf32>
    %91 = tpu.matmul %90, %89, %cst_37 {dimension_numbers = #tpu.dot_dimension_numbers<[1], [0], [0], [1], [0, 0, 1, 1], [], []>} : vector<128x192xbf16>, vector<192x64xbf16>, vector<128x64xf32> -> vector<128x64xf32>
    %92 = arith.addf %84, %91 : vector<128x64xf32>
    %93 = vector.extract_strided_slice %92 {offsets = [0, 0], sizes = [1, 64], strides = [1, 1]} : vector<128x64xf32> to vector<1x64xf32>
    %94 = vector.extract_strided_slice %92 {offsets = [64, 0], sizes = [1, 64], strides = [1, 1]} : vector<128x64xf32> to vector<1x64xf32>
    %95 = tpu.concatenate %93, %94 in 0 : vector<1x64xf32>, vector<1x64xf32> -> vector<2x64xf32>
    %c0_38 = arith.constant 0 : index
    %c0_39 = arith.constant 0 : index
    %96 = vector.load %arg9[%c0_38, %c0_39] : memref<1x64xf32, #tpu.memory_space<vmem>>, vector<1x64xf32>
    %97 = vector.broadcast %96 : vector<1x64xf32> to vector<2x64xf32>
    %98 = arith.addf %95, %97 : vector<2x64xf32>
    %c0_40 = arith.constant 0 : index
    %c0_41 = arith.constant 0 : index
    %99 = vector.load %arg10[%c0_40, %c0_41] : memref<1x64xf32, #tpu.memory_space<vmem>>, vector<1x64xf32>
    %100 = vector.broadcast %99 : vector<1x64xf32> to vector<2x64xf32>
    %101 = arith.mulf %100, %98 : vector<2x64xf32>
    %102 = arith.negf %101 : vector<2x64xf32>
    %103 = math.exp %102 : vector<2x64xf32>
    %cst_42 = arith.constant 1.000000e+00 : f32
    %104 = vector.broadcast %cst_42 : f32 to vector<2x64xf32>
    %105 = arith.addf %104, %103 : vector<2x64xf32>
    %106 = arith.divf %104, %105 : vector<2x64xf32>
    %107 = arith.mulf %98, %106 : vector<2x64xf32>
    %c0_43 = arith.constant 0 : index
    %c0_44 = arith.constant 0 : index
    %108 = vector.load %arg11[%c0_43, %c0_44] : memref<64x512xbf16, #tpu.memory_space<vmem>>, vector<64x512xbf16>
    %109 = arith.truncf %107 : vector<2x64xf32> to vector<2x64xbf16>
    %cst_45 = arith.constant dense<0.000000e+00> : vector<2x512xf32>
    %110 = tpu.matmul %109, %108, %cst_45 {dimension_numbers = #tpu.dot_dimension_numbers<[1], [0], [0], [1], [0, 0, 1, 1], [], []>} : vector<2x64xbf16>, vector<64x512xbf16>, vector<2x512xf32> -> vector<2x512xf32>
    %c0_46 = arith.constant 0 : index
    %c0_47 = arith.constant 0 : index
    %111 = vector.load %arg12[%c0_46, %c0_47] : memref<1x512xf32, #tpu.memory_space<vmem>>, vector<1x512xf32>
    %112 = vector.broadcast %111 : vector<1x512xf32> to vector<2x512xf32>
    %113 = arith.addf %110, %112 : vector<2x512xf32>
    %c0_48 = arith.constant 0 : index
    %c0_49 = arith.constant 0 : index
    %114 = vector.load %arg13[%c0_48, %c0_49] : memref<1x512xf32, #tpu.memory_space<vmem>>, vector<1x512xf32>
    %115 = vector.broadcast %114 : vector<1x512xf32> to vector<2x512xf32>
    %116 = arith.mulf %115, %113 : vector<2x512xf32>
    %117 = arith.negf %116 : vector<2x512xf32>
    %118 = math.exp %117 : vector<2x512xf32>
    %cst_50 = arith.constant 1.000000e+00 : f32
    %119 = vector.broadcast %cst_50 : f32 to vector<2x512xf32>
    %120 = arith.addf %119, %118 : vector<2x512xf32>
    %121 = arith.divf %119, %120 : vector<2x512xf32>
    %122 = arith.mulf %113, %121 : vector<2x512xf32>
    %c0_51 = arith.constant 0 : index
    %c0_52 = arith.constant 0 : index
    %123 = vector.load %arg0[%c0_51, %c0_52] : memref<2x3xf32, #tpu.memory_space<vmem>>, vector<2x3xf32>
    %c0_53 = arith.constant 0 : index
    %c0_54 = arith.constant 0 : index
    %124 = vector.load %arg14[%c0_53, %c0_54] : memref<3x300xbf16, #tpu.memory_space<vmem>>, vector<3x300xbf16>
    %125 = arith.truncf %123 : vector<2x3xf32> to vector<2x3xbf16>
    %cst_55 = arith.constant dense<0.000000e+00> : vector<2x300xf32>
    %126 = tpu.matmul %125, %124, %cst_55 {dimension_numbers = #tpu.dot_dimension_numbers<[1], [0], [0], [1], [0, 0, 1, 1], [], []>} : vector<2x3xbf16>, vector<3x300xbf16>, vector<2x300xf32> -> vector<2x300xf32>
    %c0_56 = arith.constant 0 : index
    %c0_57 = arith.constant 0 : index
    %127 = vector.load %arg15[%c0_56, %c0_57] : memref<1x300xf32, #tpu.memory_space<vmem>>, vector<1x300xf32>
    %128 = vector.broadcast %127 : vector<1x300xf32> to vector<2x300xf32>
    %129 = arith.addf %126, %128 : vector<2x300xf32>
    %c0_58 = arith.constant 0 : index
    %c0_59 = arith.constant 0 : index
    %130 = vector.load %arg16[%c0_58, %c0_59] : memref<1x300xf32, #tpu.memory_space<vmem>>, vector<1x300xf32>
    %131 = vector.broadcast %130 : vector<1x300xf32> to vector<2x300xf32>
    %132 = arith.mulf %131, %129 : vector<2x300xf32>
    %133 = arith.negf %132 : vector<2x300xf32>
    %134 = math.exp %133 : vector<2x300xf32>
    %cst_60 = arith.constant 1.000000e+00 : f32
    %135 = vector.broadcast %cst_60 : f32 to vector<2x300xf32>
    %136 = arith.addf %135, %134 : vector<2x300xf32>
    %137 = arith.divf %135, %136 : vector<2x300xf32>
    %138 = arith.mulf %129, %137 : vector<2x300xf32>
    %c0_61 = arith.constant 0 : index
    %c0_62 = arith.constant 0 : index
    %139 = vector.load %arg17[%c0_61, %c0_62] : memref<300x300xbf16, #tpu.memory_space<vmem>>, vector<300x300xbf16>
    %140 = arith.truncf %138 : vector<2x300xf32> to vector<2x300xbf16>
    %cst_63 = arith.constant dense<0.000000e+00> : vector<2x300xf32>
    %141 = tpu.matmul %140, %139, %cst_63 {dimension_numbers = #tpu.dot_dimension_numbers<[1], [0], [0], [1], [0, 0, 1, 1], [], []>} : vector<2x300xbf16>, vector<300x300xbf16>, vector<2x300xf32> -> vector<2x300xf32>
    %c0_64 = arith.constant 0 : index
    %c0_65 = arith.constant 0 : index
    %142 = vector.load %arg18[%c0_64, %c0_65] : memref<512x300xbf16, #tpu.memory_space<vmem>>, vector<512x300xbf16>
    %143 = arith.truncf %122 : vector<2x512xf32> to vector<2x512xbf16>
    %cst_66 = arith.constant dense<0.000000e+00> : vector<2x300xf32>
    %144 = tpu.matmul %143, %142, %cst_66 {dimension_numbers = #tpu.dot_dimension_numbers<[1], [0], [0], [1], [0, 0, 1, 1], [], []>} : vector<2x512xbf16>, vector<512x300xbf16>, vector<2x300xf32> -> vector<2x300xf32>
    %145 = arith.addf %141, %144 : vector<2x300xf32>
    %c0_67 = arith.constant 0 : index
    %c0_68 = arith.constant 0 : index
    %146 = vector.load %arg19[%c0_67, %c0_68] : memref<1x300xf32, #tpu.memory_space<vmem>>, vector<1x300xf32>
    %147 = vector.broadcast %146 : vector<1x300xf32> to vector<2x300xf32>
    %148 = arith.addf %145, %147 : vector<2x300xf32>
    %c0_69 = arith.constant 0 : index
    %c0_70 = arith.constant 0 : index
    %149 = vector.load %arg20[%c0_69, %c0_70] : memref<1x300xf32, #tpu.memory_space<vmem>>, vector<1x300xf32>
    %150 = vector.broadcast %149 : vector<1x300xf32> to vector<2x300xf32>
    %151 = arith.mulf %150, %148 : vector<2x300xf32>
    %152 = arith.negf %151 : vector<2x300xf32>
    %153 = math.exp %152 : vector<2x300xf32>
    %cst_71 = arith.constant 1.000000e+00 : f32
    %154 = vector.broadcast %cst_71 : f32 to vector<2x300xf32>
    %155 = arith.addf %154, %153 : vector<2x300xf32>
    %156 = arith.divf %154, %155 : vector<2x300xf32>
    %157 = arith.mulf %148, %156 : vector<2x300xf32>
    %c0_72 = arith.constant 0 : index
    %c0_73 = arith.constant 0 : index
    %158 = vector.load %arg21[%c0_72, %c0_73] : memref<1x300xf32, #tpu.memory_space<vmem>>, vector<1x300xf32>
    %159 = vector.broadcast %158 : vector<1x300xf32> to vector<2x300xf32>
    %160 = arith.mulf %157, %159 : vector<2x300xf32>
    %cst_74 = arith.constant dense<0.000000e+00> : vector<2xf32>
    %161 = vector.multi_reduction <add>, %160, %cst_74 [1] : vector<2x300xf32> to vector<2xf32>
    %162 = vector.shape_cast %161 : vector<2xf32> to vector<2x1xf32>
    %c0_75 = arith.constant 0 : index
    %c0_76 = arith.constant 0 : index
    %163 = vector.load %arg22[%c0_75, %c0_76] : memref<1x1xf32, #tpu.memory_space<vmem>>, vector<1x1xf32>
    %164 = vector.broadcast %163 : vector<1x1xf32> to vector<2x1xf32>
    %165 = arith.addf %162, %164 : vector<2x1xf32>
    %c0_77 = arith.constant 0 : index
    %c0_78 = arith.constant 0 : index
    %166 = vector.load %arg23[%c0_77, %c0_78] : memref<2x1xf32, #tpu.memory_space<vmem>>, vector<2x1xf32>
    tpu.vector_store %arg23[%c0_77, %c0_78], %165 {strides = array<i32>} : memref<2x1xf32, #tpu.memory_space<vmem>>, vector<2x1xf32>,
    return
  }
}

</mosaic_0001>

<bundles_post_ra>
// kernel: toynet_forward.1
= control target key start
LH: loop header
LB: loop body
LE: loop exit
PB: predicated region body
PF: predicated region fallthrough
CT: control target
= control target key end

     0   :  { %vm225_vm0 = vcmask 523264   ;;  %vm774_vm10 = vcmask 1044480   ;;  %vm739_vm11 = vcmask 1045504   ;;  %vm704_vm13 = vcmask 1046528   ;;  %s6183_s29 = smov 64   ;;  %s9072_s2 = inlined_call_operand.vmem [shape: bf16[192,32], index: 2, kind: input, shape index: {}]   ;;  %s9073_s1 = inlined_call_operand.vmem [shape: f32[128,192], index: 1, kind: input, shape index: {}]   ;;  %s9074_s3 = inlined_call_operand.vmem [shape: f32[1,32], index: 3, kind: input, shape index: {}]   ;;  %s9075_s4 = inlined_call_operand.vmem [shape: f32[1,32], index: 4, kind: input, shape index: {}]   ;;  %s9076_s5 = inlined_call_operand.vmem [shape: bf16[4,128,64], index: 5, kind: input, shape index: {}]   ;;  %s9077_s6 = inlined_call_operand.vmem [shape: f32[1,64], index: 6, kind: input, shape index: {}]   ;;  %s9078_s7 = inlined_call_operand.vmem [shape: f32[1,64], index: 7, kind: input, shape index: {}]   ;;  %s9079_s8 = inlined_call_operand.vmem [shape: bf16[3,192,64], index: 8, kind: input, shape index: {}]   ;;  %s9080_s9 = inlined_call_operand.vmem [shape: f32[1,64], index: 9, kind: input, shape index: {}]   ;;  %s9081_s10 = inlined_call_operand.vmem [shape: f32[1,64], index: 10, kind: input, shape index: {}]   ;;  %s9082_s11 = inlined_call_operand.vmem [shape: bf16[64,512], index: 11, kind: input, shape index: {}]   ;;  %s9083_s14 = inlined_call_operand.vmem [shape: bf16[3,300], index: 14, kind: input, shape index: {}]   ;;  %s9084_s0 = inlined_call_operand.vmem [shape: f32[2,3], index: 0, kind: input, shape index: {}]   ;;  %s9085_s18 = inlined_call_operand.vmem [shape: bf16[512,300], index: 18, kind: input, shape index: {}]   ;;  %s9086_s12 = inlined_call_operand.vmem [shape: f32[1,512], index: 12, kind: input, shape index: {}]   ;;  %s9087_s13 = inlined_call_operand.vmem [shape: f32[1,512], index: 13, kind: input, shape index: {}]   ;;  %s9088_s15 = inlined_call_operand.vmem [shape: f32[1,300], index: 15, kind: input, shape index: {}]   ;;  %s9089_s16 = inlined_call_operand.vmem [shape: f32[1,300], index: 16, kind: input, shape index: {}]   ;;  %s9090_s17 = inlined_call_operand.vmem [shape: bf16[300,300], index: 17, kind: input, shape index: {}]   ;;  %s9091_s19 = inlined_call_operand.vmem [shape: f32[1,300], index: 19, kind: input, shape index: {}]   ;;  %s9092_s20 = inlined_call_operand.vmem [shape: f32[1,300], index: 20, kind: input, shape index: {}]   ;;  %s9093_s22 = inlined_call_operand.<no memory space> [shape: f32[1,1], index: 22, kind: input, shape index: {}]   ;;  %s9094_s21 = inlined_call_operand.vmem [shape: f32[1,300], index: 21, kind: input, shape index: {}]   ;;  %s9095_s23 = inlined_call_operand.vmem [shape: f32[2,1], index: 23, kind: output, shape index: {}]  }
   0x1   :  { %9100 = sst [smem:[#allocation3_spill]] %s9072_s2 }
   0x2   :  { %9101 = sst [smem:[#allocation4_spill]] %s9073_s1 }
   0x3   :  { %9102 = sst [smem:[#allocation5_spill]] %s9074_s3 }
   0x4   :  { %9103 = sst [smem:[#allocation6_spill]] %s9075_s4  ;;  %s6184_s4 = smov 32  }
   0x5   :  { %9104 = sst [smem:[#allocation7_spill]] %s9076_s5 }
   0x6   :  { %9105 = sst [smem:[#allocation8_spill]] %s9077_s6 }
   0x7   :  { %9106 = sst [smem:[#allocation9_spill]] %s9078_s7 }
   0x8   :  { %9107 = sst [smem:[#allocation10_spill]] %s9079_s8 }
   0x9   :  { %s9108_s24 = sld [smem:[#allocation3_spill]] }
   0xa   :  { %s9109_s1 = sld [smem:[#allocation4_spill]] }
   0xb   :  { %s9110_s27 = sld [smem:[#allocation5_spill]] }
   0xc   :  { %s9111_s28 = sld [smem:[#allocation6_spill]] }
   0xd   :  { %s9118_s30 = sld [smem:[#allocation7_spill]] }
   0xe   :  { %s9119_s8 = sld [smem:[#allocation8_spill]] }
   0xf   :  { %v5612_v0 = vld [vmem:[%s9108_s24 + $0x38] sm:$0xff]  ;;  %v5611_v2 = vld [vmem:[%s9108_s24 + $0x30] sm:$0xff]  ;;  %v5610_v4 = vld [vmem:[%s9108_s24 + $0x28] sm:$0xff]  ;;  %s9120_s2 = sld [smem:[#allocation9_spill]] }
  0x10   :  { %v5616_v1 = vld [vmem:[%s9108_s24 + $0x58] sm:$0xff]  ;;  %250 = vmatpush.bf16.msra.mxu0 %v5612_v0  ;;  %v5615_v3 = vld [vmem:[%s9108_s24 + $0x50] sm:$0xff]  ;;  %v5614_v5 = vld [vmem:[%s9108_s24 + $0x48] sm:$0xff]  ;;  %s9121_s6 = sld [smem:[#allocation10_spill]] }
  0x11   :  { %303 = vmatpush.bf16.msra.mxu1 %v5616_v1  ;;  %v5609_v6 = vld [vmem:[%s9108_s24 + $0x20] sm:$0xff]  ;;  %v78_v8 = vld [vmem:[%s9109_s1 + $0x8] sm:$0xff]  ;;  %v80_v9 = vld [vmem:[%s9109_s1 + $0x18] sm:$0xff] }
  0x12   :  { %v5613_v7 = vld [vmem:[%s9108_s24 + $0x40] sm:$0xff]  ;;  %v5608_v10 = vld [vmem:[%s9108_s24 + $0x18] sm:$0xff]  ;;  %v134_v11 = vpack.c.bf16 %v80_v9, %v78_v8  ;;  %v5607_v12 = vld [vmem:[%s9108_s24 + $0x10] sm:$0xff] }
  0x13   :  { %v5606_v13 = vld [vmem:[%s9108_s24 + $0x8] sm:$0xff]  ;;  %v5605_v14 = vld [vmem:[%s9108_s24] sm:$0xff]  ;;  %v79_v16 = vld [vmem:[%s9109_s1 + $0x10] sm:$0xff] }
  0x14   :  { %251 = vmatpush.bf16.msra.mxu0 %v5611_v2  ;;  %v77_v15 = vld [vmem:[%s9109_s1] sm:$0xff]  ;;  %v82_v17 = vld [vmem:[%s9109_s1 + $0x28] sm:$0xff]  ;;  %v84_v18 = vld [vmem:[%s9109_s1 + $0x38] sm:$0xff] }
  0x15   :  { %304 = vmatpush.bf16.msra.mxu1 %v5615_v3  ;;  %v133_v19 = vpack.c.bf16 %v79_v16, %v77_v15  ;;  %v136_v20 = vpack.c.bf16 %v84_v18, %v82_v17  ;;  %v81_v21 = vld [vmem:[%s9109_s1 + $0x20] sm:$0xff]  ;;  %v83_v22 = vld [vmem:[%s9109_s1 + $0x30] sm:$0xff]  ;;  %v86_v23 = vld [vmem:[%s9109_s1 + $0x48] sm:$0xff] }
  0x16   :  { %v88_v24 = vld [vmem:[%s9109_s1 + $0x58] sm:$0xff]  ;;  %v135_v25 = vpack.c.bf16 %v83_v22, %v81_v21  ;;  %v85_v27 = vld [vmem:[%s9109_s1 + $0x40] sm:$0xff]  ;;  %v87_v28 = vld [vmem:[%s9109_s1 + $0x50] sm:$0xff] }
  0x17   :  { %v138_v26 = vpack.c.bf16 %v88_v24, %v86_v23  ;;  %v90_v29 = vld [vmem:[%s9109_s1 + $0x68] sm:$0xff]  ;;  %v92_v30 = vld [vmem:[%s9109_s1 + $0x78] sm:$0xff]  ;;  %v137_v31 = vpack.c.bf16 %v87_v28, %v85_v27  ;;  %v89_v33 = vld [vmem:[%s9109_s1 + $0x60] sm:$0xff] }
  0x18   :  { %252 = vmatpush.bf16.msra.mxu0 %v5610_v4  ;;  %v140_v32 = vpack.c.bf16 %v92_v30, %v90_v29  ;;  %v91_v34 = vld [vmem:[%s9109_s1 + $0x70] sm:$0xff]  ;;  %v94_v35 = vld [vmem:[%s9109_s1 + $0x88] sm:$0xff]  ;;  %v96_v36 = vld [vmem:[%s9109_s1 + $0x98] sm:$0xff] }
  0x19   :  { %305 = vmatpush.bf16.msra.mxu1 %v5614_v5  ;;  %v139_v37 = vpack.c.bf16 %v91_v34, %v89_v33  ;;  %v142_v38 = vpack.c.bf16 %v96_v36, %v94_v35  ;;  %v93_v39 = vld [vmem:[%s9109_s1 + $0x80] sm:$0xff]  ;;  %v95_v40 = vld [vmem:[%s9109_s1 + $0x90] sm:$0xff]  ;;  %v98_v41 = vld [vmem:[%s9109_s1 + $0xa8] sm:$0xff] }
  0x1a   :  { %v100_v42 = vld [vmem:[%s9109_s1 + $0xb8] sm:$0xff]  ;;  %v141_v43 = vpack.c.bf16 %v95_v40, %v93_v39  ;;  %v97_v45 = vld [vmem:[%s9109_s1 + $0xa0] sm:$0xff]  ;;  %v99_v46 = vld [vmem:[%s9109_s1 + $0xb0] sm:$0xff] }
  0x1b   :  { %v144_v44 = vpack.c.bf16 %v100_v42, %v98_v41  ;;  %v102_v47 = vld [vmem:[%s9109_s1 + $0xc8] sm:$0xff]  ;;  %v104_v48 = vld [vmem:[%s9109_s1 + $0xd8] sm:$0xff]  ;;  %v143_v49 = vpack.c.bf16 %v99_v46, %v97_v45  ;;  %v101_v51 = vld [vmem:[%s9109_s1 + $0xc0] sm:$0xff] }
  0x1c   :  { %253 = vmatpush.bf16.msra.mxu0 %v5609_v6  ;;  %v146_v50 = vpack.c.bf16 %v104_v48, %v102_v47  ;;  %v103_v52 = vld [vmem:[%s9109_s1 + $0xd0] sm:$0xff]  ;;  %v106_v53 = vld [vmem:[%s9109_s1 + $0xe8] sm:$0xff]  ;;  %v108_v54 = vld [vmem:[%s9109_s1 + $0xf8] sm:$0xff] }
  0x1d   :  { %306 = vmatpush.bf16.msra.mxu1 %v5613_v7  ;;  %v145_v55 = vpack.c.bf16 %v103_v52, %v101_v51  ;;  %v148_v56 = vpack.c.bf16 %v108_v54, %v106_v53  ;;  %v105_v57 = vld [vmem:[%s9109_s1 + $0xe0] sm:$0xff]  ;;  %v107_v58 = vld [vmem:[%s9109_s1 + $0xf0] sm:$0xff]  ;;  %s6182_s1 = smov 96  }
  0x1e   :  { %v147_v59 = vpack.c.bf16 %v107_v58, %v105_v57  ;;  %v6449_v62 = vld [vmem:[%s9110_s27] ss:$0 sm:$0xff] }
  0x1f   :  { %v6455_v1 = vld [vmem:[%s9111_s28] ss:$0 sm:$0xff] }
  0x20   :  { %254 = vmatpush.bf16.msra.mxu0 %v5608_v10  ;;  %4476 = vmatmul.msk.bf16.vlgmr.msra.gmra.mxu1 %vm225_vm0, %v134_v11 }
  0x24   :  { %255 = vmatpush.bf16.msra.mxu0 %v5607_v12 }
  0x28   :  { %256 = vmatpush.bf16.msra.mxu0 %v5606_v13 }
  0x2c   :  { %257 = vmatpush.bf16.msra.mxu0 %v5605_v14 }
  0x2f   :  { %258 = vmatmul.bf16.vlgmr.msra.gmra.mxu0 %v133_v19 }
  0x30   :  { %4477 = vmatmul.msk.bf16.gmra.mxu1 %vm225_vm0, %v136_v20 }
  0x3f   :  { %263 = vmatmul.bf16.gmra.mxu0 %v135_v25 }
  0x40   :  { %4478 = vmatmul.msk.bf16.gmra.mxu1 %vm225_vm0, %v138_v26 }
  0x4f   :  { %268 = vmatmul.bf16.gmra.mxu0 %v137_v31 }
  0x50   :  { %4479 = vmatmul.msk.bf16.gmra.mxu1 %vm225_vm0, %v140_v32 }
  0x5f   :  { %273 = vmatmul.bf16.gmra.mxu0 %v139_v37 }
  0x60   :  { %4480 = vmatmul.msk.bf16.gmra.mxu1 %vm225_vm0, %v142_v38 }
  0x6f   :  { %278 = vmatmul.bf16.gmra.mxu0 %v141_v43 }
  0x70   :  { %4481 = vmatmul.msk.bf16.gmra.mxu1 %vm225_vm0, %v144_v44 }
  0x7f   :  { %283 = vmatmul.bf16.gmra.mxu0 %v143_v49 }
  0x80   :  { %4482 = vmatmul.msk.bf16.gmra.mxu1 %vm225_vm0, %v146_v50 }
  0x8f   :  { %288 = vmatmul.bf16.gmra.mxu0 %v145_v55 }
  0x90   :  { %4483 = vmatmul.msk.bf16.gmra.mxu1 %vm225_vm0, %v148_v56 }
  0x9d   :  { %v308_v60 = vpop.f32.mrf.mxu1 }
  0x9f   :  { %293 = vmatmul.bf16.gmra.mxu0 %v147_v59 }
  0xa5   :  { %v310_v61 = vpop.f32.mrf.mxu1 }
  0xac   :  { %v259_v63 = vpop.f32.mrf.mxu0 }
  0xad   :  { %v260_v0 = vadd.f32 %v6449_v62, %v259_v63  ;;  %v313_v2 = vpop.f32.mrf.mxu1 }
  0xaf   :  { %v6457_v3 = vadd.f32 %v308_v60, %v260_v0 }
  0xb1   :  { %v352_v4 = vmul.f32 %v6455_v1, %v6457_v3 }
  0xb3   :  { %v4484_v5 = vmul.f32 -1.442695, %v352_v4 }
  0xb4   :  { %v261_v6 = vpop.f32.mrf.mxu0 }
  0xb5   :  { %6010 = vpow2.f32 %v4484_v5  ;;  %v262_v7 = vadd.f32 %v6449_v62, %v261_v6  ;;  %v315_v8 = vpop.f32.mrf.mxu1 }
  0xb7   :  { %v6462_v9 = vadd.f32 %v310_v61, %v262_v7 }
  0xb9   :  { %v353_v10 = vmul.f32 %v6455_v1, %v6462_v9 }
  0xbb   :  { %v6011_v11 = vpop.eup %6010  ;;  %v4485_v12 = vmul.f32 -1.442695, %v353_v10 }
  0xbc   :  { %v416_v13 = vadd.f32 1.0, %v6011_v11  ;;  %v264_v14 = vpop.f32.mrf.mxu0 }
  0xbd   :  { %6012 = vpow2.f32 %v4485_v12  ;;  %v265_v15 = vadd.f32 %v6449_v62, %v264_v14  ;;  %v318_v16 = vpop.f32.mrf.mxu1 }
  0xbe   :  { %6014 = vrcp.f32 %v416_v13  ;;  %v443_v35 = vand.u32 2147483648, %v416_v13  ;;  %vm437_vm2 = vweird.f32 %v416_v13  ;;  %v441_v39 = vand.u32 2147483647, %v416_v13 }
  0xbf   :  { %v6467_v17 = vadd.f32 %v313_v2, %v265_v15 }
  0xc0   :  { %v444_v43 = vor.u32 1.1754944e-38, %v443_v35  ;;  %vm442_vm5 = vcmp.eq.f32.partialorder %v441_v39, 8.507059e+37 }
  0xc1   :  { %v354_v18 = vmul.f32 %v6455_v1, %v6467_v17 }
  0xc3   :  { %v6013_v19 = vpop.eup %6012  ;;  %v4486_v20 = vmul.f32 -1.442695, %v354_v18 }
  0xc4   :  { %v6015_v21 = vpop.eup %6014  ;;  %v417_v22 = vadd.f32 1.0, %v6013_v19  ;;  %v266_v23 = vpop.f32.mrf.mxu0 }
  0xc5   :  { %v433_v24 = vmul.f32 %v6015_v21, %v416_v13  ;;  %6016 = vpow2.f32 %v4486_v20  ;;  %v267_v25 = vadd.f32 %v6449_v62, %v266_v23  ;;  %v320_v26 = vpop.f32.mrf.mxu1  ;;  %vm438_vm1 = vweird.f32 %v6015_v21 }
  0xc6   :  { %6018 = vrcp.f32 %v417_v22  ;;  %vm439_vm3 = vmor %vm437_vm2, %vm438_vm1  ;;  %v458_v46 = vand.u32 2147483648, %v417_v22  ;;  %v456_v48 = vand.u32 2147483647, %v417_v22  ;;  %vm452_vm6 = vweird.f32 %v417_v22 }
  0xc7   :  { %v434_v27 = vsub.f32 1.0, %v433_v24  ;;  %v6472_v28 = vadd.f32 %v315_v8, %v267_v25 }
  0xc8   :  { %v459_v57 = vor.u32 1.1754944e-38, %v458_v46  ;;  %vm457_vm8 = vcmp.eq.f32.partialorder %v456_v48, 8.507059e+37 }
  0xc9   :  { %v435_v29 = vmul.f32 %v6015_v21, %v434_v27  ;;  %v355_v30 = vmul.f32 %v6455_v1, %v6472_v28 }
  0xcb   :  { %v6017_v31 = vpop.eup %6016  ;;  %v4487_v32 = vmul.f32 -1.442695, %v355_v30  ;;  %v436_v34 = vadd.f32 %v6015_v21, %v435_v29 }
  0xcc   :  { %v6019_v33 = vpop.eup %6018  ;;  %v418_v36 = vadd.f32 1.0, %v6017_v31  ;;  %v269_v37 = vpop.f32.mrf.mxu0 }
  0xcd   :  { %v448_v38 = vmul.f32 %v6019_v33, %v417_v22  ;;  %6020 = vpow2.f32 %v4487_v32  ;;  %v270_v41 = vadd.f32 %v6449_v62, %v269_v37  ;;  %v440_v42 = vsel %vm439_vm3, %v6015_v21, %v436_v34  ;;  %v323_v44 = vpop.f32.mrf.mxu1 }
  0xce   :  { %6022 = vrcp.f32 %v418_v36  ;;  %vm453_vm4 = vweird.f32 %v6019_v33  ;;  %v445_v50 = vsel %vm442_vm5, %v444_v43, %v440_v42  ;;  %v471_v61 = vand.u32 2147483647, %v418_v36 }
  0xcf   :  { %v449_v40 = vsub.f32 1.0, %v448_v38  ;;  %v6477_v47 = vadd.f32 %v318_v16, %v270_v41  ;;  %vm454_vm7 = vmor %vm452_vm6, %vm453_vm4  ;;  %v6484_v60 = vmul.f32 %v445_v50, %v6457_v3  ;;  %v473_v2 = vand.u32 2147483648, %v418_v36 }
  0xd0   :  { %vm467_vm12 = vweird.f32 %v418_v36  ;;  %vm472_vm14 = vcmp.eq.f32.partialorder %v471_v61, 8.507059e+37 }
  0xd1   :  { %v450_v45 = vmul.f32 %v6019_v33, %v449_v40  ;;  %v356_v52 = vmul.f32 %v6455_v1, %v6477_v47  ;;  %v474_v10 = vor.u32 1.1754944e-38, %v473_v2  ;;  %v775_v11 = vrot.slane %v6484_v60, 3 }
  0xd2   :  { %v705_v15 = vrot.slane %v6484_v60, 1 }
  0xd3   :  { %v6021_v49 = vpop.eup %6020  ;;  %v451_v51 = vadd.f32 %v6019_v33, %v450_v45  ;;  %v4488_v59 = vmul.f32 -1.442695, %v356_v52 }
  0xd4   :  { %v6023_v53 = vpop.eup %6022  ;;  %v6481_v54 = vadd.f32 1.0, %v6021_v49  ;;  %v271_v55 = vpop.f32.mrf.mxu0 }
  0xd5   :  { %v455_v56 = vsel %vm454_vm7, %v6019_v33, %v451_v51  ;;  %v463_v58 = vmul.f32 %v6023_v53, %v418_v36  ;;  %v272_v4 = vadd.f32 %v6449_v62, %v271_v55  ;;  %vm468_vm9 = vweird.f32 %v6023_v53  ;;  %v325_v7 = vpop.f32.mrf.mxu1 }
  0xd6   :  { %6024 = vrcp.f32 %v6481_v54  ;;  %v460_v63 = vsel %vm457_vm8, %v459_v57, %v455_v56  ;;  %vm469_vm15 = vmor %vm467_vm12, %vm468_vm9  ;;  %vm482_vm1 = vweird.f32 %v6481_v54  ;;  %v488_v20 = vand.u32 2147483648, %v6481_v54 }
  0xd7   :  { %v464_v0 = vsub.f32 1.0, %v463_v58  ;;  %6026 = vpow2.f32 %v4488_v59  ;;  %v6489_v6 = vmul.f32 %v460_v63, %v6462_v9  ;;  %v6491_v3 = vadd.f32 %v320_v26, %v272_v4 }
  0xd8   :  { %v740_v9 = vrot.slane %v6484_v60, 2  ;;  %v486_v31 = vand.u32 2147483647, %v6481_v54  ;;  %v489_v35 = vor.u32 1.1754944e-38, %v488_v20 }
  0xd9   :  { %v465_v5 = vmul.f32 %v6023_v53, %v464_v0  ;;  %v357_v13 = vmul.f32 %v6455_v1, %v6491_v3  ;;  %v776_v25 = vrot.slane %v6489_v6, 3  ;;  %v741_v30 = vrot.slane %v6489_v6, 2 }
  0xda   :  { %v706_v32 = vrot.slane %v6489_v6, 1  ;;  %vm487_vm4 = vcmp.eq.f32.partialorder %v486_v31, 8.507059e+37 }
  0xdb   :  { %v466_v8 = vadd.f32 %v6023_v53, %v465_v5  ;;  %v4489_v24 = vmul.f32 -1.442695, %v357_v13  ;;  %v777_v36 = vsel %vm774_vm10, %v775_v11, %v776_v25  ;;  %v742_v42 = vsel %vm739_vm11, %v740_v9, %v741_v30 }
  0xdc   :  { %v6025_v12 = vpop.eup %6024  ;;  %v274_v14 = vpop.f32.mrf.mxu0  ;;  %v707_v49 = vsel %vm704_vm13, %v705_v15, %v706_v32 }
  0xdd   :  { %v6027_v16 = vpop.eup %6026  ;;  %v470_v18 = vsel %vm469_vm15, %v6023_v53, %v466_v8  ;;  %v478_v19 = vmul.f32 %v6025_v12, %v6481_v54  ;;  %v275_v21 = vadd.f32 %v6449_v62, %v274_v14  ;;  %vm483_vm2 = vweird.f32 %v6025_v12  ;;  %v328_v45 = vpop.f32.mrf.mxu1 }
  0xde   :  { %v475_v22 = vsel %vm472_vm14, %v474_v10, %v470_v18  ;;  %v6502_v23 = vadd.f32 1.0, %v6027_v16  ;;  %vm6531_vm3 = vmor %vm482_vm1, %vm483_vm2 }
  0xdf   :  { %v6506_v26 = vmul.f32 %v475_v22, %v6467_v17  ;;  %v479_v27 = vsub.f32 1.0, %v478_v19  ;;  %v6508_v29 = vadd.f32 %v323_v44, %v275_v21 }
  0xe0   :  { %6028 = vrcp.f32 %v6502_v23  ;;  %v503_v4 = vand.u32 2147483648, %v6502_v23  ;;  %v501_v8 = vand.u32 2147483647, %v6502_v23  ;;  %vm497_vm6 = vweird.f32 %v6502_v23 }
  0xe1   :  { %v480_v33 = vmul.f32 %v6025_v12, %v479_v27  ;;  %6030 = vpow2.f32 %v4489_v24  ;;  %v358_v34 = vmul.f32 %v6455_v1, %v6508_v29  ;;  %v778_v17 = vrot.slane %v6506_v26, 3 }
  0xe2   :  { %v743_v37 = vrot.slane %v6506_v26, 2  ;;  %v708_v38 = vrot.slane %v6506_v26, 1  ;;  %vm502_vm8 = vcmp.eq.f32.partialorder %v501_v8, 8.507059e+37 }
  0xe3   :  { %v481_v39 = vadd.f32 %v6025_v12, %v480_v33  ;;  %v4490_v40 = vmul.f32 -1.442695, %v358_v34  ;;  %v779_v41 = vsel %vm774_vm10, %v776_v25, %v778_v17 }
  0xe4   :  { %v276_v44 = vpop.f32.mrf.mxu0  ;;  %v5878_v46 = vpack.i.bf16 %v779_v41, %v777_v36  ;;  %v744_v48 = vsel %vm739_vm11, %v741_v30, %v743_v37  ;;  %v709_v50 = vsel %vm704_vm13, %v706_v32, %v708_v38 }
  0xe5   :  { %v485_v51 = vsel %vm6531_vm3, %v6025_v12, %v481_v39  ;;  %6032 = vpow2.f32 %v4490_v40  ;;  %v277_v52 = vadd.f32 %v6449_v62, %v276_v44  ;;  %v5868_v53 = vpack.i.bf16 %v744_v48, %v742_v42  ;;  %v330_v18 = vpop.f32.mrf.mxu1 }
  0xe6   :  { %v6029_v54 = vpop.eup %6028  ;;  %5879 = vrot.lane.b32.xlu2 %v5878_v46, %s6182_s1  ;;  %v5858_v55 = vpack.i.bf16 %v709_v50, %v707_v49  ;;  %v490_v57 = vsel %vm487_vm4, %v489_v35, %v485_v51 }
  0xe7   :  { %v6031_v56 = vpop.eup %6030  ;;  %v493_v58 = vmul.f32 %v6029_v54, %v6502_v23  ;;  %v6549_v59 = vadd.f32 %v325_v7, %v277_v52  ;;  %5869 = vrot.lane.b32.xlu1 %v5868_v53, %s6183_s29  ;;  %v6556_v2 = vmul.f32 %v490_v57, %v6472_v28  ;;  %vm498_vm5 = vweird.f32 %v6029_v54 }
  0xe8   :  { %v421_v61 = vadd.f32 1.0, %v6031_v56  ;;  %5859 = vrot.lane.b32.xlu0 %v5858_v55, %s6184_s4  ;;  %vm499_vm7 = vmor %vm497_vm6, %vm498_vm5  ;;  %v504_v28 = vor.u32 1.1754944e-38, %v503_v4 }
  0xe9   :  { %v494_v63 = vsub.f32 1.0, %v493_v58  ;;  %v359_v0 = vmul.f32 %v6455_v1, %v6549_v59  ;;  %v780_v19 = vrot.slane %v6556_v2, 3  ;;  %v745_v22 = vrot.slane %v6556_v2, 2 }
  0xea   :  { %6034 = vrcp.f32 %v421_v61  ;;  %v516_v27 = vand.u32 2147483647, %v421_v61  ;;  %v518_v23 = vand.u32 2147483648, %v421_v61  ;;  %vm512_vm9 = vweird.f32 %v421_v61 }
  0xeb   :  { %v6033_v5 = vpop.eup %6032  ;;  %v495_v7 = vmul.f32 %v6029_v54, %v494_v63  ;;  %v4491_v10 = vmul.f32 -1.442695, %v359_v0  ;;  %v781_v33 = vsel %vm774_vm10, %v778_v17, %v780_v19  ;;  %v746_v40 = vsel %vm739_vm11, %v743_v37, %v745_v22 }
  0xec   :  { %v6560_v12 = vadd.f32 1.0, %v6033_v5  ;;  %v279_v13 = vpop.f32.mrf.mxu0  ;;  %vm6581_vm12 = vcmp.eq.f32.partialorder %v516_v27, 8.507059e+37  ;;  %v519_v42 = vor.u32 1.1754944e-38, %v518_v23  ;;  %v710_v37 = vrot.slane %v6556_v2, 1 }
  0xed   :  { %v496_v14 = vadd.f32 %v6029_v54, %v495_v7  ;;  %6036 = vpow2.f32 %v4491_v10  ;;  %v280_v16 = vadd.f32 %v6449_v62, %v279_v13  ;;  %v333_v55 = vpop.f32.mrf.mxu1 }
  0xee   :  { %6038 = vrcp.f32 %v6560_v12  ;;  %v531_v48 = vand.u32 2147483647, %v6560_v12  ;;  %vm527_vm2 = vweird.f32 %v6560_v12 }
  0xef   :  { %v500_v20 = vsel %vm499_vm7, %v6029_v54, %v496_v14  ;;  %v6566_v21 = vadd.f32 %v328_v45, %v280_v16  ;;  %v533_v54 = vand.u32 2147483648, %v6560_v12 }
  0xf0   :  { %v6035_v24 = vpop.eup %6034  ;;  %v505_v25 = vsel %vm502_vm8, %v504_v28, %v500_v20  ;;  %vm532_vm4 = vcmp.eq.f32.partialorder %v531_v48, 8.507059e+37 }
  0xf1   :  { %v6570_v30 = vmul.f32 %v505_v25, %v6477_v47  ;;  %v508_v31 = vmul.f32 %v6035_v24, %v421_v61  ;;  %v360_v32 = vmul.f32 %v6455_v1, %v6566_v21  ;;  %vm513_vm14 = vweird.f32 %v6035_v24 }
  0xf2   :  { %vm514_vm15 = vmor %vm512_vm9, %vm513_vm14  ;;  %v711_v61 = vsel %vm704_vm13, %v708_v38, %v710_v37  ;;  %v534_v38 = vor.u32 1.1754944e-38, %v533_v54 }
  0xf3   :  { %v6037_v34 = vpop.eup %6036  ;;  %v509_v35 = vsub.f32 1.0, %v508_v31  ;;  %v4492_v36 = vmul.f32 -1.442695, %v360_v32  ;;  %v782_v39 = vrot.slane %v6570_v30, 3  ;;  %v747_v17 = vrot.slane %v6570_v30, 2 }
  0xf4   :  { %v6039_v47 = vpop.eup %6038  ;;  %v6585_v43 = vadd.f32 1.0, %v6037_v34  ;;  %v281_v44 = vpop.f32.mrf.mxu0  ;;  %v712_v49 = vrot.slane %v6570_v30, 1 }
  0xf5   :  { %v510_v45 = vmul.f32 %v6035_v24, %v509_v35  ;;  %v523_v46 = vmul.f32 %v6039_v47, %v6560_v12  ;;  %6040 = vpow2.f32 %v4492_v36  ;;  %v282_v52 = vadd.f32 %v6449_v62, %v281_v44 }
  0xf6   :  { %6042 = vrcp.f32 %v6585_v43  ;;  %v783_v53 = vsel %vm774_vm10, %v780_v19, %v782_v39  ;;  %vm528_vm1 = vweird.f32 %v6039_v47  ;;  %v748_v57 = vsel %vm739_vm11, %v745_v22, %v747_v17 }
  0xf7   :  { %v511_v50 = vadd.f32 %v6035_v24, %v510_v45  ;;  %v524_v51 = vsub.f32 1.0, %v523_v46  ;;  %v5883_v56 = vpack.i.bf16 %v783_v53, %v781_v33  ;;  %v6602_v0 = vadd.f32 %v330_v18, %v282_v52  ;;  %vm529_vm3 = vmor %vm527_vm2, %vm528_vm1 }
  0xf8   :  { %v5873_v4 = vpack.i.bf16 %v748_v57, %v746_v40  ;;  %v713_v7 = vsel %vm704_vm13, %v710_v37, %v712_v49  ;;  %v546_v18 = vand.u32 2147483647, %v6585_v43  ;;  %vm542_vm5 = vweird.f32 %v6585_v43 }
  0xf9   :  { %v515_v58 = vsel %vm514_vm15, %v6035_v24, %v511_v50  ;;  %v525_v63 = vmul.f32 %v6039_v47, %v524_v51  ;;  %5884 = vrot.lane.b32.xlu2 %v5883_v56, %s6182_s1  ;;  %v361_v13 = vmul.f32 %v6455_v1, %v6602_v0  ;;  %v5863_v14 = vpack.i.bf16 %v713_v7, %v711_v61 }
  0xfa   :  { %v520_v5 = vsel %vm6581_vm12, %v519_v42, %v515_v58  ;;  %5874 = vrot.lane.b32.xlu1 %v5873_v4, %s6183_s29  ;;  %v548_v23 = vand.u32 2147483648, %v6585_v43  ;;  %vm6632_vm6 = vcmp.eq.f32.partialorder %v546_v18, 8.507059e+37 }
  0xfb   :  { %v6041_v8 = vpop.eup %6040  ;;  %v526_v10 = vadd.f32 %v6039_v47, %v525_v63  ;;  %v6618_v28 = vmul.f32 %v520_v5, %v6491_v3  ;;  %v4493_v24 = vmul.f32 -1.442695, %v361_v13  ;;  %5864 = vrot.lane.b32.xlu0 %v5863_v14, %s6184_s4 }
  0xfc   :  { %v6043_v16 = vpop.eup %6042  ;;  %v6622_v19 = vadd.f32 1.0, %v6041_v8  ;;  %v284_v20 = vpop.f32.mrf.mxu0 }
  0xfd   :  { %v530_v22 = vsel %vm529_vm3, %v6039_v47, %v526_v10  ;;  %v538_v12 = vmul.f32 %v6043_v16, %v6585_v43  ;;  %v285_v32 = vadd.f32 %v6449_v62, %v284_v20  ;;  %v784_v33 = vrot.slane %v6618_v28, 3  ;;  %v335_v47 = vpop.f32.mrf.mxu1  ;;  %v5640_v10 = vld [vmem:[%s9118_s30 + $0xb8] sm:$0xff] }
  0xfe   :  { %v535_v25 = vsel %vm532_vm4, %v534_v38, %v530_v22  ;;  %6044 = vrcp.f32 %v6622_v19  ;;  %v749_v34 = vrot.slane %v6618_v28, 2  ;;  %vm543_vm7 = vweird.f32 %v6043_v16  ;;  %1314 = vmatpush.bf16.msrb.mxu1 %v5640_v10 }
  0xff   :  { %v6629_v3 = vmul.f32 %v535_v25, %v6508_v29  ;;  %v539_v27 = vsub.f32 1.0, %v538_v12  ;;  %6046 = vpow2.f32 %v4493_v24  ;;  %v6641_v40 = vadd.f32 %v333_v55, %v285_v32  ;;  %vm544_vm8 = vmor %vm542_vm5, %vm543_vm7 }
 0x100   :  { %v785_v41 = vsel %vm774_vm10, %v782_v39, %v784_v33  ;;  %v750_v42 = vsel %vm739_vm11, %v747_v17, %v749_v34  ;;  %v714_v44 = vrot.slane %v6618_v28, 1  ;;  %v549_v39 = vor.u32 1.1754944e-38, %v548_v23 }
 0x101   :  { %v540_v35 = vmul.f32 %v6043_v16, %v539_v27  ;;  %v786_v36 = vrot.slane %v6629_v3, 3  ;;  %v751_v29 = vrot.slane %v6629_v3, 2  ;;  %v716_v37 = vrot.slane %v6629_v3, 1 }
 0x102   :  { %v362_v51 = vmul.f32 %v6455_v1, %v6641_v40  ;;  %v715_v58 = vsel %vm704_vm13, %v712_v49, %v714_v44  ;;  %v561_v13 = vand.u32 2147483647, %v6622_v19  ;;  %v563_v14 = vand.u32 2147483648, %v6622_v19 }
 0x103   :  { %v541_v45 = vadd.f32 %v6043_v16, %v540_v35  ;;  %v787_v46 = vsel %vm774_vm10, %v784_v33, %v786_v36  ;;  %v752_v48 = vsel %vm739_vm11, %v749_v34, %v751_v29  ;;  %v717_v5 = vsel %vm704_vm13, %v714_v44, %v716_v37 }
 0x104   :  { %v6045_v50 = vpop.eup %6044  ;;  %v286_v17 = vpop.f32.mrf.mxu0  ;;  %v5898_v52 = vpack.i.bf16 %v787_v46, %v785_v41  ;;  %v5893_v53 = vpack.i.bf16 %v752_v48, %v750_v42  ;;  %v4494_v4 = vmul.f32 -1.442695, %v362_v51  ;;  %v5888_v49 = vpack.i.bf16 %v717_v5, %v715_v58  ;;  %v5648_v41 = vld [vmem:[%s9118_s30 + $0xf8] sm:$0xff] }
 0x105   :  { %v6047_v54 = vpop.eup %6046  ;;  %v545_v55 = vsel %vm544_vm8, %v6043_v16, %v541_v45  ;;  %v553_v56 = vmul.f32 %v6045_v50, %v6622_v19  ;;  %v287_v57 = vadd.f32 %v6449_v62, %v286_v17  ;;  %vm558_vm9 = vweird.f32 %v6045_v50  ;;  %v338_v12 = vpop.f32.mrf.mxu1  ;;  %1444 = vmatpush.bf16.msrb.mxu0 %v5648_v41 }
 0x106   :  { %v550_v43 = vsel %vm6632_vm6, %v549_v39, %v545_v55  ;;  %v6666_v63 = vadd.f32 1.0, %v6047_v54  ;;  %5899 = vrot.lane.b32.xlu2 %v5898_v52, %s6182_s1  ;;  %5894 = vrot.lane.b32.xlu1 %v5893_v53, %s6183_s29  ;;  %vm557_vm12 = vweird.f32 %v6622_v19  ;;  %vm562_vm15 = vcmp.eq.f32.partialorder %v561_v13, 8.507059e+37 }
 0x107   :  { %v6674_v61 = vmul.f32 %v550_v43, %v6549_v59  ;;  %v554_v7 = vsub.f32 1.0, %v553_v56  ;;  %v6676_v8 = vadd.f32 %v335_v47, %v287_v57  ;;  %5889 = vrot.lane.b32.xlu0 %v5888_v49, %s6184_s4  ;;  %vm559_vm14 = vmor %vm557_vm12, %vm558_vm9  ;;  %v564_v22 = vor.u32 1.1754944e-38, %v563_v14 }
 0x108   :  { %6048 = vrcp.f32 %v6666_v63  ;;  %vm572_vm2 = vweird.f32 %v6666_v63 }
 0x109   :  { %v555_v16 = vmul.f32 %v6045_v50, %v554_v7  ;;  %6050 = vpow2.f32 %v4494_v4  ;;  %v363_v59 = vmul.f32 %v6455_v1, %v6676_v8  ;;  %v788_v38 = vrot.slane %v6674_v61, 3 }
 0x10a   :  { %v753_v19 = vrot.slane %v6674_v61, 2  ;;  %v718_v44 = vrot.slane %v6674_v61, 1 }
 0x10b   :  { %v556_v18 = vadd.f32 %v6045_v50, %v555_v16  ;;  %v4495_v20 = vmul.f32 -1.442695, %v363_v59  ;;  %v789_v23 = vsel %vm774_vm10, %v786_v36, %v788_v38  ;;  %v576_v36 = vand.u32 2147483647, %v6666_v63 }
 0x10c   :  { %v289_v24 = vpop.f32.mrf.mxu0  ;;  %v754_v39 = vsel %vm739_vm11, %v751_v29, %v753_v19  ;;  %v719_v29 = vsel %vm704_vm13, %v716_v37, %v718_v44  ;;  %v5639_v37 = vld [vmem:[%s9118_s30 + $0xb0] sm:$0xff] }
 0x10d   :  { %v560_v25 = vsel %vm559_vm14, %v6045_v50, %v556_v18  ;;  %6052 = vpow2.f32 %v4495_v20  ;;  %v290_v27 = vadd.f32 %v6449_v62, %v289_v24  ;;  %v578_v50 = vand.u32 2147483648, %v6666_v63  ;;  %v340_v7 = vpop.f32.mrf.mxu1  ;;  %1315 = vmatpush.bf16.msrb.mxu1 %v5639_v37 }
 0x10e   :  { %v6049_v31 = vpop.eup %6048  ;;  %v565_v32 = vsel %vm562_vm15, %v564_v22, %v560_v25  ;;  %920 = vrot.lane.b32.xlu2 %v789_v23, %s6182_s1  ;;  %vm577_vm4 = vcmp.eq.f32.partialorder %v576_v36, 8.507059e+37 }
 0x10f   :  { %v6051_v33 = vpop.eup %6050  ;;  %v6696_v34 = vmul.f32 %v565_v32, %v6566_v21  ;;  %v568_v35 = vmul.f32 %v6049_v31, %v6666_v63  ;;  %v6699_v47 = vadd.f32 %v338_v12, %v290_v27  ;;  %vm573_vm1 = vweird.f32 %v6049_v31 }
 0x110   :  { %v6705_v42 = vadd.f32 1.0, %v6051_v33  ;;  %vm574_vm3 = vmor %vm572_vm2, %vm573_vm1  ;;  %v579_v5 = vor.u32 1.1754944e-38, %v578_v50 }
 0x111   :  { %v569_v45 = vsub.f32 1.0, %v568_v35  ;;  %v364_v46 = vmul.f32 %v6455_v1, %v6699_v47  ;;  %v755_v21 = vrot.slane %v6696_v34, 2  ;;  %v720_v48 = vrot.slane %v6696_v34, 1 }
 0x112   :  { %6054 = vrcp.f32 %v6705_v42  ;;  %v790_v18 = vrot.slane %v6696_v34, 3  ;;  %v591_v27 = vand.u32 2147483647, %v6705_v42  ;;  %v593_v23 = vand.u32 2147483648, %v6705_v42 }
 0x113   :  { %v6053_v51 = vpop.eup %6052  ;;  %v570_v17 = vmul.f32 %v6049_v31, %v569_v45  ;;  %v4496_v52 = vmul.f32 -1.442695, %v364_v46  ;;  %v756_v53 = vsel %vm739_vm11, %v753_v19, %v755_v21  ;;  %v721_v54 = vsel %vm704_vm13, %v718_v44, %v720_v48 }
 0x114   :  { %v6724_v55 = vadd.f32 1.0, %v6053_v51  ;;  %v291_v56 = vpop.f32.mrf.mxu0  ;;  %v5908_v57 = vpack.i.bf16 %v756_v53, %v754_v39  ;;  %v5903_v4 = vpack.i.bf16 %v721_v54, %v719_v29  ;;  %vm587_vm6 = vweird.f32 %v6705_v42 }
 0x115   :  { %v571_v58 = vadd.f32 %v6049_v31, %v570_v17  ;;  %6056 = vpow2.f32 %v4496_v52  ;;  %v292_v43 = vadd.f32 %v6449_v62, %v291_v56  ;;  %v791_v35 = vsel %vm774_vm10, %v788_v38, %v790_v18  ;;  %v343_v45 = vpop.f32.mrf.mxu1  ;;  %v5647_v38 = vld [vmem:[%s9118_s30 + $0xf0] sm:$0xff] }
 0x116   :  { %6058 = vrcp.f32 %v6724_v55  ;;  %5909 = vrot.lane.b32.xlu1 %v5908_v57, %s6183_s29  ;;  %5904 = vrot.lane.b32.xlu0 %v5903_v4, %s6184_s4  ;;  %v606_v33 = vand.u32 2147483647, %v6724_v55  ;;  %vm592_vm8 = vcmp.eq.f32.partialorder %v591_v27, 8.507059e+37  ;;  %v608_v50 = vand.u32 2147483648, %v6724_v55  ;;  %v5624_v27 = vld [vmem:[%s9118_s30 + $0x38] sm:$0xff] }
 0x117   :  { %v575_v63 = vsel %vm574_vm3, %v6049_v31, %v571_v58  ;;  %v6733_v49 = vadd.f32 %v340_v7, %v292_v43  ;;  %vm602_vm12 = vweird.f32 %v6724_v55  ;;  %1445 = vmatpush.bf16.msrb.mxu0 %v5647_v38  ;;  %1200 = vmatpush.bf16.msra.mxu3 %v5624_v27 }
 0x118   :  { %v6055_v10 = vpop.eup %6054  ;;  %v580_v13 = vsel %vm577_vm4, %v579_v5, %v575_v63  ;;  %vm607_vm14 = vcmp.eq.f32.partialorder %v606_v33, 8.507059e+37  ;;  %v609_v43 = vor.u32 1.1754944e-38, %v608_v50 }
 0x119   :  { %v6740_v14 = vmul.f32 %v580_v13, %v6602_v0  ;;  %v583_v16 = vmul.f32 %v6055_v10, %v6705_v42  ;;  %v365_v59 = vmul.f32 %v6455_v1, %v6733_v49  ;;  %vm588_vm5 = vweird.f32 %v6055_v10 }
 0x11a   :  { %vm589_vm7 = vmor %vm587_vm6, %vm588_vm5  ;;  %v594_v42 = vor.u32 1.1754944e-38, %v593_v23 }
 0x11b   :  { %v6057_v20 = vpop.eup %6056  ;;  %v584_v22 = vsub.f32 1.0, %v583_v16  ;;  %v4497_v12 = vmul.f32 -1.442695, %v365_v59  ;;  %v792_v24 = vrot.slane %v6740_v14, 3  ;;  %v757_v5 = vrot.slane %v6740_v14, 2 }
 0x11c   :  { %v6059_v25 = vpop.eup %6058  ;;  %v6749_v0 = vadd.f32 1.0, %v6057_v20  ;;  %v294_v31 = vpop.f32.mrf.mxu0 }
 0x11d   :  { %v585_v32 = vmul.f32 %v6055_v10, %v584_v22  ;;  %v598_v19 = vmul.f32 %v6059_v25, %v6724_v55  ;;  %6060 = vpow2.f32 %v4497_v12  ;;  %v295_v44 = vadd.f32 %v6449_v62, %v294_v31  ;;  %v345_v23 = vpop.f32.mrf.mxu1 }
 0x11e   :  { %6062 = vrcp.f32 %v6749_v0  ;;  %v793_v46 = vsel %vm774_vm10, %v790_v18, %v792_v24  ;;  %vm603_vm9 = vweird.f32 %v6059_v25  ;;  %v621_v16 = vand.u32 2147483647, %v6749_v0 }
 0x11f   :  { %v586_v41 = vadd.f32 %v6055_v10, %v585_v32  ;;  %v599_v36 = vsub.f32 1.0, %v598_v19  ;;  %v5918_v39 = vpack.i.bf16 %v793_v46, %v791_v35  ;;  %v6763_v52 = vadd.f32 %v343_v45, %v295_v44  ;;  %vm604_vm15 = vmor %vm602_vm12, %vm603_vm9  ;;  %v5646_v44 = vld [vmem:[%s9118_s30 + $0xe8] sm:$0xff] }
 0x120   :  { %v623_v18 = vand.u32 2147483648, %v6749_v0  ;;  %v758_v22 = vsel %vm739_vm11, %v755_v21, %v757_v5  ;;  %vm617_vm2 = vweird.f32 %v6749_v0  ;;  %vm622_vm4 = vcmp.eq.f32.partialorder %v621_v16, 8.507059e+37  ;;  %1446 = vmatpush.bf16.msrb.mxu0 %v5646_v44  ;;  %v5631_v44 = vld [vmem:[%s9118_s30 + $0x70] sm:$0xff] }
 0x121   :  { %v590_v51 = vsel %vm589_vm7, %v6055_v10, %v586_v41  ;;  %v600_v17 = vmul.f32 %v6059_v25, %v599_v36  ;;  %5919 = vrot.lane.b32.xlu1 %v5918_v39, %s6182_s1  ;;  %v366_v57 = vmul.f32 %v6455_v1, %v6763_v52  ;;  %v722_v10 = vrot.slane %v6740_v14, 1  ;;  %v5623_v39 = vld [vmem:[%s9118_s30 + $0x30] sm:$0xff] }
 0x122   :  { %v595_v53 = vsel %vm592_vm8, %v594_v42, %v590_v51  ;;  %v624_v46 = vor.u32 1.1754944e-38, %v623_v18  ;;  %1201 = vmatpush.bf16.msra.mxu3 %v5623_v39 }
 0x123   :  { %v6061_v54 = vpop.eup %6060  ;;  %v601_v56 = vadd.f32 %v6059_v25, %v600_v17  ;;  %v6773_v58 = vmul.f32 %v595_v53, %v6641_v40  ;;  %v4498_v37 = vmul.f32 -1.442695, %v366_v57  ;;  %v723_v31 = vsel %vm704_vm13, %v720_v48, %v722_v10  ;;  %v5638_v48 = vld [vmem:[%s9118_s30 + $0xa8] sm:$0xff]  ;;  %v5645_v57 = vld [vmem:[%s9118_s30 + $0xe0] sm:$0xff] }
 0x124   :  { %v6063_v29 = vpop.eup %6062  ;;  %v6775_v4 = vadd.f32 1.0, %v6061_v54  ;;  %v296_v55 = vpop.f32.mrf.mxu0  ;;  %1316 = vmatpush.bf16.msrb.mxu1 %v5638_v48  ;;  %1447 = vmatpush.bf16.msrb.mxu0 %v5645_v57  ;;  %v5630_v57 = vld [vmem:[%s9118_s30 + $0x68] sm:$0xff] }
 0x125   :  { %v605_v7 = vsel %vm604_vm15, %v6059_v25, %v601_v56  ;;  %v613_v63 = vmul.f32 %v6063_v29, %v6749_v0  ;;  %v297_v20 = vadd.f32 %v6449_v62, %v296_v55  ;;  %v759_v12 = vrot.slane %v6773_v58, 2  ;;  %v5637_v56 = vld [vmem:[%s9118_s30 + $0xa0] sm:$0xff] }
 0x126   :  { %v610_v13 = vsel %vm607_vm14, %v609_v43, %v605_v7  ;;  %6064 = vrcp.f32 %v6775_v4  ;;  %v724_v25 = vrot.slane %v6773_v58, 1  ;;  %vm618_vm1 = vweird.f32 %v6063_v29  ;;  %v5622_v7 = vld [vmem:[%s9118_s30 + $0x28] sm:$0xff] }
 0x127   :  { %v6783_v40 = vmul.f32 %v610_v13, %v6676_v8  ;;  %v614_v59 = vsub.f32 1.0, %v613_v63  ;;  %6066 = vpow2.f32 %v4498_v37  ;;  %v794_v62 = vrot.slane %v6773_v58, 3  ;;  %vm619_vm3 = vmor %vm617_vm2, %vm618_vm1  ;;  %v5636_v13 = vld [vmem:[%s9118_s30 + $0x98] sm:$0xff]  ;;  %1202 = vmatpush.bf16.msra.mxu3 %v5622_v7  ;;  %v5618_v7 = vld [vmem:[%s9118_s30 + $0x8] sm:$0xff] }
 0x128   :  { %v6799_v32 = vadd.f32 %v345_v23, %v297_v20  ;;  %v760_v21 = vsel %vm739_vm11, %v757_v5, %v759_v12  ;;  %v725_v19 = vsel %vm704_vm13, %v722_v10, %v724_v25  ;;  %v636_v63 = vand.u32 2147483647, %v6775_v4  ;;  %1317 = vmatpush.bf16.msrb.mxu1 %v5637_v56  ;;  %v5621_v20 = vld [vmem:[%s9118_s30 + $0x20] sm:$0xff] }
 0x129   :  { %v615_v8 = vmul.f32 %v6063_v29, %v614_v59  ;;  %v796_v33 = vrot.slane %v6783_v40, 3  ;;  %v5923_v41 = vpack.i.bf16 %v760_v21, %v758_v22  ;;  %v5913_v36 = vpack.i.bf16 %v725_v19, %v723_v31  ;;  %v5644_v22 = vld [vmem:[%s9118_s30 + $0xd8] sm:$0xff] }
 0x12a   :  { %v367_v42 = vmul.f32 %v6455_v1, %v6799_v32  ;;  %v795_v0 = vsel %vm774_vm10, %v792_v24, %v794_v62  ;;  %v726_v5 = vrot.slane %v6783_v40, 1  ;;  %v638_v37 = vand.u32 2147483648, %v6775_v4  ;;  %1448 = vmatpush.bf16.msrb.mxu0 %v5644_v22 }
 0x12b   :  { %v616_v35 = vadd.f32 %v6063_v29, %v615_v8  ;;  %v797_v50 = vsel %vm774_vm10, %v794_v62, %v796_v33  ;;  %5924 = vrot.lane.b32.xlu2 %v5923_v41, %s6183_s29  ;;  %5914 = vrot.lane.b32.xlu0 %v5913_v36, %s6184_s4  ;;  %v761_v55 = vrot.slane %v6783_v40, 2  ;;  %vm632_vm6 = vweird.f32 %v6775_v4  ;;  %v5620_v36 = vld [vmem:[%s9118_s30 + $0x18] sm:$0xff] }
 0x12c   :  { %v6065_v45 = vpop.eup %6064  ;;  %v5933_v1 = vpack.i.bf16 %v797_v50, %v795_v0  ;;  %v4499_v54 = vmul.f32 -1.442695, %v367_v42  ;;  %v727_v59 = vsel %vm704_vm13, %v724_v25, %v726_v5  ;;  %v639_v27 = vor.u32 1.1754944e-38, %v638_v37  ;;  %v5632_v25 = vld [vmem:[%s9118_s30 + $0x78] sm:$0xff]  ;;  %1318 = vmatpush.bf16.msrb.mxu1 %v5636_v13  ;;  %1203 = vmatpush.bf16.msra.mxu3 %v5621_v20 }
 0x12d   :  { %v6067_v51 = vpop.eup %6066  ;;  %v620_v17 = vsel %vm619_vm3, %v6063_v29, %v616_v35  ;;  %v628_v38 = vmul.f32 %v6065_v45, %v6775_v4  ;;  %vm633_vm5 = vweird.f32 %v6065_v45  ;;  %v762_v8 = vsel %vm739_vm11, %v759_v12, %v761_v55  ;;  %1103 = vmatpush.bf16.msra.mxu2 %v5632_v25  ;;  %v5628_v20 = vld [vmem:[%s9118_s30 + $0x58] sm:$0xff]  ;;  %v5627_v25 = vld [vmem:[%s9118_s30 + $0x50] sm:$0xff] }
 0x12e   :  { %v625_v53 = vsel %vm622_vm4, %v624_v46, %v620_v17  ;;  %v6828_v24 = vadd.f32 1.0, %v6067_v51  ;;  %5934 = vrot.lane.b32.xlu1 %v5933_v1, %s6182_s1  ;;  %vm634_vm7 = vmor %vm632_vm6, %vm633_vm5  ;;  %vm637_vm8 = vcmp.eq.f32.partialorder %v636_v63, 8.507059e+37  ;;  %v5643_v63 = vld [vmem:[%s9118_s30 + $0xd0] sm:$0xff]  ;;  %vm956_vm5 = vcmask 261120  }
 0x12f   :  { %v6837_v29 = vmul.f32 %v625_v53, %v6699_v47  ;;  %v629_v43 = vsub.f32 1.0, %v628_v38  ;;  %1449 = vmatpush.bf16.msrb.mxu0 %v5643_v63 }
 0x130   :  { %6068 = vrcp.f32 %v6828_v24  ;;  %1204 = vmatpush.bf16.msra.mxu3 %v5620_v36  ;;  %vm647_vm9 = vweird.f32 %v6828_v24  ;;  %v653_v56 = vand.u32 2147483648, %v6828_v24 }
 0x131   :  { %v630_v47 = vmul.f32 %v6065_v45, %v629_v43  ;;  %6070 = vpow2.f32 %v4499_v54  ;;  %v728_v10 = vrot.slane %v6837_v29, 1  ;;  %v798_v21 = vrot.slane %v6837_v29, 3  ;;  %1104 = vmatpush.bf16.msra.mxu2 %v5631_v44  ;;  %v5635_v43 = vld [vmem:[%s9118_s30 + $0x90] sm:$0xff] }
 0x132   :  { %v763_v19 = vrot.slane %v6837_v29, 2  ;;  %1319 = vmatpush.bf16.msrb.mxu1 %v5635_v43 }
 0x133   :  { %v631_v16 = vadd.f32 %v6065_v45, %v630_v47  ;;  %v729_v18 = vsel %vm704_vm13, %v726_v5, %v728_v10  ;;  %879 = vrot.lane.b32.xlu2 %v762_v8, %s6183_s29  ;;  %v799_v0 = vsel %vm774_vm10, %v796_v33, %v798_v21  ;;  %v5619_v33 = vld [vmem:[%s9118_s30 + $0x10] sm:$0xff]  ;;  %v651_v5 = vand.u32 2147483647, %v6828_v24 }
 0x134   :  { %v5928_v4 = vpack.i.bf16 %v729_v18, %v727_v59  ;;  %v764_v50 = vsel %vm739_vm11, %v761_v55, %v763_v19  ;;  %1205 = vmatpush.bf16.msra.mxu3 %v5619_v33  ;;  %v654_v47 = vor.u32 1.1754944e-38, %v653_v56  ;;  %v5617_v59 = vld [vmem:[%s9118_s30] sm:$0xff]  ;;  %v5642_v33 = vld [vmem:[%s9118_s30 + $0xc8] sm:$0xff] }
 0x135   :  { %v635_v23 = vsel %vm634_vm7, %v6065_v45, %v631_v16  ;;  %1105 = vmatpush.bf16.msra.mxu2 %v5630_v57  ;;  %vm652_vm15 = vcmp.eq.f32.partialorder %v651_v5, 8.507059e+37  ;;  %1450 = vmatpush.bf16.msrb.mxu0 %v5642_v33 }
 0x136   :  { %v6069_v31 = vpop.eup %6068  ;;  %v640_v62 = vsel %vm637_vm8, %v639_v27, %v635_v23  ;;  %5929 = vrot.lane.b32.xlu0 %v5928_v4, %s6184_s4 }
 0x137   :  { %v6071_v35 = vpop.eup %6070  ;;  %v6872_v12 = vmul.f32 %v640_v62, %v6733_v49  ;;  %v643_v41 = vmul.f32 %v6069_v31, %v6828_v24  ;;  %vm648_vm12 = vweird.f32 %v6069_v31  ;;  %v5629_v24 = vld [vmem:[%s9118_s30 + $0x60] sm:$0xff] }
 0x138   :  { %v431_v48 = vadd.f32 1.0, %v6071_v35  ;;  %vm649_vm14 = vmor %vm647_vm9, %vm648_vm12  ;;  %1206 = vmatpush.bf16.msra.mxu3 %v5618_v7 }
 0x139   :  { %v644_v45 = vsub.f32 1.0, %v643_v41  ;;  %v730_v46 = vrot.slane %v6872_v12, 1  ;;  %v800_v49 = vrot.slane %v6872_v12, 3  ;;  %v765_v42 = vrot.slane %v6872_v12, 2  ;;  %1106 = vmatpush.bf16.msra.mxu2 %v5629_v24 }
 0x13a   :  { %6072 = vrcp.f32 %v431_v48  ;;  %v668_v18 = vand.u32 2147483648, %v431_v48  ;;  %v666_v27 = vand.u32 2147483647, %v431_v48  ;;  %vm662_vm2 = vweird.f32 %v431_v48 }
 0x13b   :  { %v645_v39 = vmul.f32 %v6069_v31, %v644_v45  ;;  %v731_v51 = vsel %vm704_vm13, %v728_v10, %v730_v46  ;;  %v801_v17 = vsel %vm774_vm10, %v798_v21, %v800_v49  ;;  %v766_v38 = vsel %vm739_vm11, %v763_v19, %v765_v42 }
 0x13c   :  { %834 = vrot.lane.b32.xlu1 %v731_v51, %s6184_s4  ;;  %v5943_v1 = vpack.i.bf16 %v801_v17, %v799_v0  ;;  %v5938_v53 = vpack.i.bf16 %v766_v38, %v764_v50  ;;  %1207 = vmatpush.bf16.msra.mxu3 %v5617_v59  ;;  %v669_v23 = vor.u32 1.1754944e-38, %v668_v18  ;;  %vm667_vm4 = vcmp.eq.f32.partialorder %v666_v27, 8.507059e+37 }
 0x13d   :  { %v646_v54 = vadd.f32 %v6069_v31, %v645_v39  ;;  %1107 = vmatpush.bf16.msra.mxu2 %v5628_v20 }
 0x13e   :  { %5944 = vrot.lane.b32.xlu2 %v5943_v1, %s6182_s1  ;;  %5939 = vrot.lane.b32.xlu0 %v5938_v53, %s6183_s29  ;;  %v5633_v1 = vld [vmem:[%s9118_s30 + $0x80] sm:$0xff] }
 0x13f   :  { %v650_v55 = vsel %vm649_vm14, %v6069_v31, %v646_v54 }
 0x140   :  { %v6073_v37 = vpop.eup %6072  ;;  %v655_v13 = vsel %vm652_vm15, %v654_v47, %v650_v55  ;;  %v5880_v57 = vpop.permute.xlu2 %5879 }
 0x141   :  { %v658_v10 = vmul.f32 %v6073_v37, %v431_v48  ;;  %vm663_vm1 = vweird.f32 %v6073_v37  ;;  %v6928_v8 = vmul.f32 %v655_v13, %v6763_v52  ;;  %1108 = vmatpush.bf16.msra.mxu2 %v5627_v25  ;;  %v5881_v55 = vunpack.i.l.bf16 %v5880_v57  ;;  %v5641_v13 = vld [vmem:[%s9118_s30 + $0xc0] sm:$0xff] }
 0x142   :  { %vm664_vm3 = vmor %vm662_vm2, %vm663_vm1  ;;  %1451 = vmatpush.bf16.msrb.mxu0 %v5641_v13 }
 0x143   :  { %v659_v16 = vsub.f32 1.0, %v658_v10  ;;  %v802_v21 = vrot.slane %v6928_v8, 3  ;;  %v767_v19 = vrot.slane %v6928_v8, 2  ;;  %v732_v35 = vrot.slane %v6928_v8, 1 }
 0x145   :  { %v660_v22 = vmul.f32 %v6073_v37, %v659_v16  ;;  %v803_v44 = vsel %vm774_vm10, %v800_v49, %v802_v21  ;;  %v768_v45 = vsel %vm739_vm11, %v765_v42, %v767_v19  ;;  %v733_v50 = vsel %vm704_vm13, %v730_v46, %v732_v35  ;;  %v5626_v49 = vld [vmem:[%s9118_s30 + $0x48] sm:$0xff]  ;;  %v5625_v46 = vld [vmem:[%s9118_s30 + $0x40] sm:$0xff] }
 0x146   :  { %v5634_v42 = vld [vmem:[%s9118_s30 + $0x88] sm:$0xff]  ;;  %1109 = vmatpush.bf16.msra.mxu2 %v5626_v49 }
 0x147   :  { %v661_v4 = vadd.f32 %v6073_v37, %v660_v22  ;;  %1320 = vmatpush.bf16.msrb.mxu1 %v5634_v42 }
 0x149   :  { %v665_v31 = vsel %vm664_vm3, %v6073_v37, %v661_v4 }
 0x14a   :  { %v670_v62 = vsel %vm667_vm4, %v669_v23, %v665_v31  ;;  %1110 = vmatpush.bf16.msra.mxu2 %v5625_v46 }
 0x14b   :  { %v6936_v52 = vmul.f32 %v670_v62, %v6799_v32  ;;  %1321 = vmatpush.bf16.msrb.mxu1 %v5633_v1 }
 0x14d   :  { %v804_v41 = vrot.slane %v6936_v52, 3  ;;  %v769_v36 = vrot.slane %v6936_v52, 2  ;;  %v734_v48 = vrot.slane %v6936_v52, 1 }
 0x14f   :  { %v805_v32 = vsel %vm774_vm10, %v802_v21, %v804_v41  ;;  %v770_v0 = vsel %vm739_vm11, %v767_v19, %v769_v36  ;;  %v735_v39 = vsel %vm704_vm13, %v732_v35, %v734_v48  ;;  %v808_v53 = vsel %vm774_vm10, %v804_v41, %v775_v11 }
 0x150   :  { %v5958_v51 = vpack.i.bf16 %v805_v32, %v803_v44  ;;  %v5953_v17 = vpack.i.bf16 %v770_v0, %v768_v45  ;;  %v5948_v38 = vpack.i.bf16 %v735_v39, %v733_v50  ;;  %v773_v54 = vsel %vm739_vm11, %v769_v36, %v740_v9 }
 0x151   :  { %v738_v43 = vsel %vm704_vm13, %v734_v48, %v705_v15  ;;  %vm989_vm10 = vcmask 785408   ;;  %v5882_v9 = vunpack.i.h.bf16 %v5880_v57 }
 0x152   :  { %5959 = vrot.lane.b32.xlu2 %v5958_v51, %s6182_s1  ;;  %5954 = vrot.lane.b32.xlu1 %v5953_v17, %s6183_s29 }
 0x153   :  { %5949 = vrot.lane.b32.xlu0 %v5948_v38, %s6184_s4 }
 0x159   :  { %v5870_v56 = vpop.permute.xlu1 %5869 }
 0x15a   :  { %938 = vrot.lane.b32.xlu2 %v808_v53, %s6182_s1  ;;  %889 = vrot.lane.b32.xlu1 %v773_v54, %s6183_s29  ;;  %v5872_v5 = vunpack.i.h.bf16 %v5870_v56  ;;  %v5871_v7 = vunpack.i.l.bf16 %v5870_v56  ;;  %v5860_v63 = vpop.permute.xlu0 %5859 }
 0x15b   :  { %840 = vrot.lane.b32.xlu0 %v738_v43, %s6184_s4  ;;  %v5862_v11 = vunpack.i.h.bf16 %v5860_v63  ;;  %v5861_v37 = vunpack.i.l.bf16 %v5860_v63 }
 0x15d   :  { %v958_v24 = vsel %vm956_vm5, %v6489_v6, %v5862_v11  ;;  %v957_v47 = vsel %vm956_vm5, %v6484_v60, %v5861_v37  ;;  %v5885_v6 = vpop.permute.xlu2 %5884 }
 0x15e   :  { %v973_v10 = vsel %vm225_vm0, %v957_v47, %v5871_v7  ;;  %v974_v15 = vsel %vm225_vm0, %v958_v24, %v5872_v5  ;;  %v5887_v25 = vunpack.i.h.bf16 %v5885_v6  ;;  %v5886_v31 = vunpack.i.l.bf16 %v5885_v6 }
 0x15f   :  { %v6994_v16 = vsel %vm989_vm10, %v973_v10, %v5881_v55  ;;  %v991_v59 = vsel %vm989_vm10, %v974_v15, %v5882_v9 }
 0x160   :  { %v6998_v18 = vpack.c.bf16 %v991_v59, %v6994_v16 }
 0x162   :  { %1208 = vmatmul.bf16.vlgmr.msra.gmra.mxu3 %v6998_v18 }
 0x16c   :  { %v5875_v60 = vpop.permute.xlu1 %5874 }
 0x16d   :  { %v5877_v20 = vunpack.i.h.bf16 %v5875_v60  ;;  %v5876_v22 = vunpack.i.l.bf16 %v5875_v60  ;;  %v5865_v27 = vpop.permute.xlu0 %5864 }
 0x16e   :  { %v5867_v4 = vunpack.i.h.bf16 %v5865_v27  ;;  %v5866_v23 = vunpack.i.l.bf16 %v5865_v27 }
 0x170   :  { %v960_v62 = vsel %vm956_vm5, %v6556_v2, %v5867_v4  ;;  %v959_v21 = vsel %vm956_vm5, %v6506_v26, %v5866_v23  ;;  %v5900_v2 = vpop.permute.xlu2 %5899 }
 0x171   :  { %v975_v19 = vsel %vm225_vm0, %v959_v21, %v5876_v22  ;;  %v976_v35 = vsel %vm225_vm0, %v960_v62, %v5877_v20  ;;  %v5902_v51 = vunpack.i.h.bf16 %v5900_v2  ;;  %v5901_v17 = vunpack.i.l.bf16 %v5900_v2 }
 0x172   :  { %v992_v41 = vsel %vm989_vm10, %v975_v19, %v5886_v31  ;;  %v993_v36 = vsel %vm989_vm10, %v976_v35, %v5887_v25 }
 0x173   :  { %v7009_v48 = vpack.c.bf16 %v992_v41, %v991_v59  ;;  %v1023_v44 = vpack.c.bf16 %v993_v36, %v992_v41 }
 0x175   :  { %1111 = vmatmul.bf16.vlgmr.msra.gmra.mxu2 %v7009_v48  ;;  %1213 = vmatmul.bf16.gmra.mxu3 %v1023_v44 }
 0x176   :  { %1322 = vmatmul.bf16.vlgmr.msrb.gmra.mxu1 %v1023_v44 }
 0x178   :  { %v5895_v45 = vpop.permute.xlu1 %5894  ;;  %v921_v5 = vpop.permute.xlu2 %920 }
 0x179   :  { %v5897_v32 = vunpack.i.h.bf16 %v5895_v45  ;;  %v5896_v0 = vunpack.i.l.bf16 %v5895_v45  ;;  %v5890_v26 = vpop.permute.xlu0 %5889 }
 0x17a   :  { %v5892_v50 = vunpack.i.h.bf16 %v5890_v26  ;;  %v5891_v39 = vunpack.i.l.bf16 %v5890_v26 }
 0x17c   :  { %v962_v38 = vsel %vm956_vm5, %v6618_v28, %v5892_v50  ;;  %v961_v49 = vsel %vm956_vm5, %v6570_v30, %v5891_v39 }
 0x17d   :  { %v977_v42 = vsel %vm225_vm0, %v961_v49, %v5896_v0  ;;  %v978_v46 = vsel %vm225_vm0, %v962_v38, %v5897_v32 }
 0x17e   :  { %v994_v33 = vsel %vm989_vm10, %v977_v42, %v5901_v17  ;;  %v995_v1 = vsel %vm989_vm10, %v978_v46, %v5902_v51 }
 0x17f   :  { %v1048_v53 = vpack.c.bf16 %v994_v33, %v993_v36  ;;  %v1024_v54 = vpack.c.bf16 %v995_v1, %v994_v33 }
 0x181   :  { %1452 = vmatmul.bf16.vlgmr.msrb.gmra.mxu0 %v1048_v53 }
 0x185   :  { %1116 = vmatmul.bf16.gmra.mxu2 %v1048_v53  ;;  %1218 = vmatmul.bf16.gmra.mxu3 %v1024_v54  ;;  %v5925_v13 = vpop.permute.xlu2 %5924 }
 0x186   :  { %1327 = vmatmul.bf16.gmra.mxu1 %v1024_v54  ;;  %v5927_v20 = vunpack.i.h.bf16 %v5925_v13  ;;  %v5926_v22 = vunpack.i.l.bf16 %v5925_v13 }
 0x188   :  { %v5910_v56 = vpop.permute.xlu1 %5909  ;;  %v5905_v28 = vpop.permute.xlu0 %5904 }
 0x189   :  { %v5911_v57 = vunpack.i.l.bf16 %v5910_v56  ;;  %v5906_v43 = vunpack.i.l.bf16 %v5905_v28  ;;  %v5907_v11 = vunpack.i.h.bf16 %v5905_v28  ;;  %v5912_v9 = vunpack.i.h.bf16 %v5910_v56 }
 0x18b   :  { %v963_v30 = vsel %vm956_vm5, %v6629_v3, %v5906_v43  ;;  %v964_v55 = vsel %vm956_vm5, %v6674_v61, %v5907_v11 }
 0x18c   :  { %v979_v7 = vsel %vm225_vm0, %v963_v30, %v5911_v57  ;;  %v980_v10 = vsel %vm225_vm0, %v964_v55, %v5912_v9 }
 0x18d   :  { %v996_v63 = vsel %vm989_vm10, %v979_v7, %v921_v5  ;;  %v880_v36 = vpop.permute.xlu2 %879 }
 0x18e   :  { %v1049_v37 = vpack.c.bf16 %v996_v63, %v995_v1 }
 0x191   :  { %1457 = vmatmul.bf16.gmra.mxu0 %v1049_v37 }
 0x193   :  { %v5920_v24 = vpop.permute.xlu1 %5919 }
 0x194   :  { %v5921_v47 = vunpack.i.l.bf16 %v5920_v24  ;;  %v5922_v4 = vunpack.i.h.bf16 %v5920_v24 }
 0x195   :  { %1121 = vmatmul.bf16.gmra.mxu2 %v1049_v37 }
 0x196   :  { %v997_v15 = vsel %vm989_vm10, %v980_v10, %v5921_v47 }
 0x197   :  { %v1025_v3 = vpack.c.bf16 %v997_v15, %v996_v63 }
 0x198   :  { %v5945_v0 = vpop.permute.xlu2 %5944 }
 0x199   :  { %1223 = vmatmul.bf16.gmra.mxu3 %v1025_v3  ;;  %1332 = vmatmul.bf16.gmra.mxu1 %v1025_v3  ;;  %v5946_v51 = vunpack.i.l.bf16 %v5945_v0  ;;  %v5947_v54 = vunpack.i.h.bf16 %v5945_v0 }
 0x19d   :  { %v5915_v59 = vpop.permute.xlu0 %5914 }
 0x19e   :  { %v5917_v60 = vunpack.i.h.bf16 %v5915_v59  ;;  %v5916_v6 = vunpack.i.l.bf16 %v5915_v59 }
 0x1a0   :  { %v5935_v27 = vpop.permute.xlu1 %5934  ;;  %v966_v61 = vsel %vm956_vm5, %v6740_v14, %v5917_v60  ;;  %v965_v23 = vsel %vm956_vm5, %v6696_v34, %v5916_v6 }
 0x1a1   :  { %v5936_v25 = vunpack.i.l.bf16 %v5935_v27  ;;  %v981_v31 = vsel %vm225_vm0, %v965_v23, %v5926_v22  ;;  %v982_v62 = vsel %vm225_vm0, %v966_v61, %v5927_v20  ;;  %v5937_v2 = vunpack.i.h.bf16 %v5935_v27 }
 0x1a2   :  { %v998_v21 = vsel %vm989_vm10, %v981_v31, %v5922_v4 }
 0x1a3   :  { %v999_v19 = vsel %vm989_vm10, %v982_v62, %v5936_v25  ;;  %v1050_v35 = vpack.c.bf16 %v998_v21, %v997_v15 }
 0x1a4   :  { %v1026_v41 = vpack.c.bf16 %v999_v19, %v998_v21  ;;  %v7066_v21 = vld [vmem:[%s9119_s8] ss:$0 sm:$0xff] }
 0x1a5   :  { %1126 = vmatmul.bf16.gmra.mxu2 %v1050_v35  ;;  %1462 = vmatmul.bf16.gmra.mxu0 %v1050_v35 }
 0x1a8   :  { %v5930_v44 = vpop.permute.xlu0 %5929 }
 0x1a9   :  { %v5931_v45 = vunpack.i.l.bf16 %v5930_v44  ;;  %1228 = vmatmul.bf16.gmra.mxu3 %v1026_v41  ;;  %1337 = vmatmul.bf16.gmra.mxu1 %v1026_v41  ;;  %v5932_v32 = vunpack.i.h.bf16 %v5930_v44 }
 0x1ab   :  { %v967_v34 = vsel %vm956_vm5, %v6773_v58, %v5931_v45  ;;  %v968_v17 = vsel %vm956_vm5, %v6783_v40, %v5932_v32 }
 0x1ac   :  { %v983_v14 = vsel %vm225_vm0, %v967_v34, %v880_v36  ;;  %v5960_v57 = vpop.permute.xlu2 %5959 }
 0x1ad   :  { %v1000_v50 = vsel %vm989_vm10, %v983_v14, %v5937_v2  ;;  %v5961_v7 = vunpack.i.l.bf16 %v5960_v57  ;;  %v5962_v15 = vunpack.i.h.bf16 %v5960_v57 }
 0x1ae   :  { %v1051_v38 = vpack.c.bf16 %v1000_v50, %v999_v19  ;;  %v835_v58 = vpop.permute.xlu1 %834 }
 0x1af   :  { %v969_v1 = vsel %vm956_vm5, %v6837_v29, %v835_v58 }
 0x1b0   :  { %v5940_v26 = vpop.permute.xlu0 %5939 }
 0x1b1   :  { %v5941_v39 = vunpack.i.l.bf16 %v5940_v26  ;;  %v5942_v33 = vunpack.i.h.bf16 %v5940_v26 }
 0x1b3   :  { %v984_v49 = vsel %vm225_vm0, %v968_v17, %v5941_v39  ;;  %v985_v53 = vsel %vm225_vm0, %v969_v1, %v5942_v33  ;;  %v5660_v33 = vld [vmem:[%s9121_s6 + $0x58] sm:$0xff] }
 0x1b4   :  { %v1001_v42 = vsel %vm989_vm10, %v984_v49, %v5946_v51  ;;  %v1002_v40 = vsel %vm989_vm10, %v985_v53, %v5947_v54  ;;  %v939_v6 = vpop.permute.xlu2 %938  ;;  %2376 = vmatpush.bf16.msra.mxu0 %v5660_v33 }
 0x1b5   :  { %v1027_v46 = vpack.c.bf16 %v1001_v42, %v1000_v50  ;;  %1131 = vmatmul.bf16.gmra.mxu2 %v1051_v38  ;;  %1467 = vmatmul.bf16.gmra.mxu0 %v1051_v38  ;;  %v1052_v30 = vpack.c.bf16 %v1002_v40, %v1001_v42 }
 0x1b9   :  { %1233 = vmatmul.bf16.gmra.mxu3 %v1027_v46  ;;  %1342 = vmatmul.bf16.gmra.mxu1 %v1027_v46 }
 0x1c4   :  { %v5955_v56 = vpop.permute.xlu1 %5954 }
 0x1c5   :  { %v5956_v28 = vunpack.i.l.bf16 %v5955_v56  ;;  %v5950_v43 = vpop.permute.xlu0 %5949  ;;  %1136 = vmatmul.bf16.gmra.mxu2 %v1052_v30  ;;  %1472 = vmatmul.bf16.gmra.mxu0 %v1052_v30  ;;  %v5957_v9 = vunpack.i.h.bf16 %v5955_v56  ;;  %v5659_v56 = vld [vmem:[%s9121_s6 + $0x50] sm:$0xff] }
 0x1c6   :  { %v5951_v5 = vunpack.i.l.bf16 %v5950_v43  ;;  %v5952_v63 = vunpack.i.h.bf16 %v5950_v43  ;;  %2377 = vmatpush.bf16.msra.mxu0 %v5659_v56 }
 0x1c8   :  { %v970_v11 = vsel %vm956_vm5, %v6872_v12, %v5951_v5  ;;  %v971_v24 = vsel %vm956_vm5, %v6928_v8, %v5952_v63 }
 0x1c9   :  { %v986_v29 = vsel %vm225_vm0, %v970_v11, %v5956_v28  ;;  %v987_v10 = vsel %vm225_vm0, %v971_v24, %v5957_v9  ;;  %v5658_v9 = vld [vmem:[%s9121_s6 + $0x48] sm:$0xff] }
 0x1ca   :  { %v1003_v37 = vsel %vm989_vm10, %v986_v29, %v5961_v7  ;;  %v1004_v12 = vsel %vm989_vm10, %v987_v10, %v5962_v15  ;;  %2378 = vmatpush.bf16.msra.mxu0 %v5658_v9 }
 0x1cb   :  { %v1028_v55 = vpack.c.bf16 %v1003_v37, %v1002_v40  ;;  %v1053_v60 = vpack.c.bf16 %v1004_v12, %v1003_v37 }
 0x1cc   :  { %v890_v3 = vpop.permute.xlu1 %889 }
 0x1cd   :  { %1238 = vmatmul.bf16.gmra.mxu3 %v1028_v55  ;;  %1347 = vmatmul.bf16.gmra.mxu1 %v1028_v55  ;;  %v841_v47 = vpop.permute.xlu0 %840 }
 0x1ce   :  { %v972_v13 = vsel %vm956_vm5, %v6936_v52, %v841_v47  ;;  %vm1919_vm5 = vcmask 1043456  }
 0x1cf   :  { %v988_v59 = vsel %vm225_vm0, %v972_v13, %v890_v3  ;;  %v5657_v3 = vld [vmem:[%s9121_s6 + $0x40] sm:$0xff] }
 0x1d0   :  { %v1005_v8 = vsel %vm989_vm10, %v988_v59, %v939_v6  ;;  %2379 = vmatpush.bf16.msra.mxu0 %v5657_v3 }
 0x1d1   :  { %v1029_v20 = vpack.c.bf16 %v1005_v8, %v1004_v12  ;;  %v1054_v22 = vpack.c.bf16 %v6994_v16, %v1005_v8 }
 0x1d5   :  { %1141 = vmatmul.bf16.gmra.mxu2 %v1053_v60  ;;  %1477 = vmatmul.bf16.gmra.mxu0 %v1053_v60 }
 0x1dd   :  { %1243 = vmatmul.bf16.gmra.mxu3 %v1029_v20  ;;  %1352 = vmatmul.bf16.gmra.mxu1 %v1029_v20 }
 0x1e5   :  { %v1209_v27 = vpop.f32.mrf.mxu3  ;;  %1146 = vmatmul.bf16.gmra.mxu2 %v1054_v22  ;;  %1482 = vmatmul.bf16.gmra.mxu0 %v1054_v22 }
 0x1ed   :  { %1357 = vmatmul.bf16.gmra.mxu1 %v6998_v18  ;;  %v1211_v52 = vpop.f32.mrf.mxu3  ;;  %v7071_v18 = vld [vmem:[%s9120_s2] ss:$0 sm:$0xff] }
 0x1f3   :  { %v1323_v4 = vpop.f32.mrf.mxu1 }
 0x1f5   :  { %1487 = vmatmul.bf16.gmra.mxu0 %v7009_v48 }
 0x1f8   :  { %v1112_v61 = vpop.f32.mrf.mxu2  ;;  %v1214_v23 = vpop.f32.mrf.mxu3 }
 0x1f9   :  { %v1210_v25 = vadd.f32 %v1209_v27, %v1112_v61  ;;  %v5672_v27 = vld [vmem:[%s9121_s6 + $0xb8] sm:$0xff] }
 0x1fa   :  { %2234 = vmatpush.bf16.msrb.mxu3 %v5672_v27 }
 0x1fb   :  { %v1325_v31 = vpop.f32.mrf.mxu1  ;;  %v1363_v62 = vadd.f32 %v1323_v4, %v1210_v25 }
 0x1fe   :  { %v1453_v16 = vpop.f32.mrf.mxu0 }
 0x1ff   :  { %v1493_v19 = vadd.f32 %v1453_v16, %v1363_v62  ;;  %v5671_v62 = vld [vmem:[%s9121_s6 + $0xb0] sm:$0xff] }
 0x200   :  { %v1114_v35 = vpop.f32.mrf.mxu2  ;;  %v1216_v41 = vpop.f32.mrf.mxu3  ;;  %2235 = vmatpush.bf16.msrb.mxu3 %v5671_v62 }
 0x201   :  { %v1212_v48 = vadd.f32 %v1211_v52, %v1114_v35  ;;  %v7074_v36 = vadd.f32 %v7066_v21, %v1493_v19 }
 0x203   :  { %v1328_v44 = vpop.f32.mrf.mxu1  ;;  %v1533_v45 = vmul.f32 %v7071_v18, %v7074_v36  ;;  %v1364_v14 = vadd.f32 %v1325_v31, %v1212_v48 }
 0x205   :  { %v4676_v34 = vmul.f32 -1.442695, %v1533_v45 }
 0x206   :  { %v1455_v2 = vpop.f32.mrf.mxu0 }
 0x207   :  { %6074 = vpow2.f32 %v4676_v34  ;;  %v1494_v32 = vadd.f32 %v1455_v2, %v1364_v14 }
 0x208   :  { %v1117_v0 = vpop.f32.mrf.mxu2  ;;  %v1219_v50 = vpop.f32.mrf.mxu3 }
 0x209   :  { %v1215_v26 = vadd.f32 %v1214_v23, %v1117_v0  ;;  %v7079_v39 = vadd.f32 %v7066_v21, %v1494_v32 }
 0x20b   :  { %v1534_v51 = vmul.f32 %v7071_v18, %v7079_v39  ;;  %v1330_v38 = vpop.f32.mrf.mxu1  ;;  %v1365_v42 = vadd.f32 %v1328_v44, %v1215_v26 }
 0x20d   :  { %v6075_v17 = vpop.eup %6074  ;;  %v4677_v49 = vmul.f32 -1.442695, %v1534_v51 }
 0x20e   :  { %v7083_v46 = vadd.f32 1.0, %v6075_v17  ;;  %v1458_v58 = vpop.f32.mrf.mxu0 }
 0x20f   :  { %6076 = vpow2.f32 %v4677_v49  ;;  %v1495_v1 = vadd.f32 %v1458_v58, %v1365_v42  ;;  %v5670_v49 = vld [vmem:[%s9121_s6 + $0xa8] sm:$0xff] }
 0x210   :  { %6078 = vrcp.f32 %v7083_v46  ;;  %v1119_v53 = vpop.f32.mrf.mxu2  ;;  %v1221_v57 = vpop.f32.mrf.mxu3  ;;  %v1622_v16 = vand.u32 2147483647, %v7083_v46  ;;  %v1624_v32 = vand.u32 2147483648, %v7083_v46  ;;  %vm1618_vm9 = vweird.f32 %v7083_v46  ;;  %2236 = vmatpush.bf16.msrb.mxu3 %v5670_v49 }
 0x211   :  { %v1217_v54 = vadd.f32 %v1216_v41, %v1119_v53  ;;  %v7090_v40 = vadd.f32 %v7066_v21, %v1495_v1 }
 0x212   :  { %vm7160_vm14 = vcmp.eq.f32.partialorder %v1622_v16, 8.507059e+37  ;;  %v1625_v56 = vor.u32 1.1754944e-38, %v1624_v32 }
 0x213   :  { %v1535_v28 = vmul.f32 %v7071_v18, %v7090_v40  ;;  %v1366_v7 = vadd.f32 %v1330_v38, %v1217_v54 }
 0x215   :  { %v6077_v43 = vpop.eup %6076  ;;  %v4678_v30 = vmul.f32 -1.442695, %v1535_v28 }
 0x216   :  { %v1333_v5 = vpop.f32.mrf.mxu1  ;;  %v7097_v63 = vpop.eup %6078  ;;  %v7099_v11 = vadd.f32 1.0, %v6077_v43 }
 0x217   :  { %v1460_v29 = vpop.f32.mrf.mxu0  ;;  %6080 = vpow2.f32 %v4678_v30  ;;  %v1614_v24 = vmul.f32 %v7097_v63, %v7083_v46  ;;  %vm1619_vm6 = vweird.f32 %v7097_v63 }
 0x218   :  { %v1496_v37 = vadd.f32 %v1460_v29, %v1366_v7  ;;  %6082 = vrcp.f32 %v7099_v11  ;;  %v1122_v55 = vpop.f32.mrf.mxu2  ;;  %v1639_v19 = vand.u32 2147483648, %v7099_v11  ;;  %vm1633_vm7 = vweird.f32 %v7099_v11  ;;  %vm7156_vm12 = vmor %vm1618_vm9, %vm1619_vm6 }
 0x219   :  { %v1615_v12 = vsub.f32 1.0, %v1614_v24  ;;  %v1220_v20 = vadd.f32 %v1219_v50, %v1122_v55  ;;  %v1637_v34 = vand.u32 2147483647, %v7099_v11 }
 0x21a   :  { %v7108_v47 = vadd.f32 %v7066_v21, %v1496_v37  ;;  %v1640_v46 = vor.u32 1.1754944e-38, %v1639_v19 }
 0x21b   :  { %v1616_v4 = vmul.f32 %v7097_v63, %v1615_v12  ;;  %v1367_v23 = vadd.f32 %v1333_v5, %v1220_v20  ;;  %vm1638_vm15 = vcmp.eq.f32.partialorder %v1637_v34, 8.507059e+37 }
 0x21c   :  { %v1536_v10 = vmul.f32 %v7071_v18, %v7108_v47  ;;  %v7112_v15 = vpop.f32.mrf.mxu3 }
 0x21d   :  { %v6081_v13 = vpop.eup %6080  ;;  %v1617_v44 = vadd.f32 %v7097_v63, %v1616_v4 }
 0x21e   :  { %v4679_v59 = vmul.f32 -1.442695, %v1536_v10  ;;  %v1335_v60 = vpop.f32.mrf.mxu1  ;;  %v6083_v6 = vpop.eup %6082  ;;  %v7117_v8 = vadd.f32 1.0, %v6081_v13 }
 0x21f   :  { %v1629_v22 = vmul.f32 %v6083_v6, %v7099_v11  ;;  %vm1634_vm13 = vweird.f32 %v6083_v6  ;;  %v1621_v1 = vsel %vm7156_vm12, %v7097_v63, %v1617_v44  ;;  %v5669_v63 = vld [vmem:[%s9121_s6 + $0xa0] sm:$0xff] }
 0x220   :  { %6084 = vpow2.f32 %v4679_v59  ;;  %v1124_v52 = vpop.f32.mrf.mxu2  ;;  %vm7138_vm8 = vmor %vm1633_vm7, %vm1634_vm13  ;;  %v1654_v28 = vand.u32 2147483648, %v7117_v8  ;;  %v1652_v7 = vand.u32 2147483647, %v7117_v8  ;;  %v1626_v29 = vsel %vm7160_vm14, %v1625_v56, %v1621_v1  ;;  %2237 = vmatpush.bf16.msrb.mxu3 %v5669_v63 }
 0x221   :  { %6086 = vrcp.f32 %v7117_v8  ;;  %v1630_v61 = vsub.f32 1.0, %v1629_v22  ;;  %v1222_v50 = vadd.f32 %v1221_v57, %v1124_v52  ;;  %vm1648_vm2 = vweird.f32 %v7117_v8 }
 0x222   :  { %v1463_v25 = vpop.f32.mrf.mxu0  ;;  %v1655_v3 = vor.u32 1.1754944e-38, %v1654_v28  ;;  %vm1653_vm4 = vcmp.eq.f32.partialorder %v1652_v7, 8.507059e+37 }
 0x223   :  { %v1631_v31 = vmul.f32 %v6083_v6, %v1630_v61  ;;  %v1497_v35 = vadd.f32 %v1463_v25, %v1367_v23  ;;  %v1368_v43 = vadd.f32 %v1335_v60, %v1222_v50  ;;  %v7188_v60 = vmul.f32 %v1626_v29, %v7074_v36 }
 0x224   :  { %v7131_v41 = vpop.f32.mrf.mxu3 }
 0x225   :  { %v1632_v45 = vadd.f32 %v6083_v6, %v1631_v31  ;;  %v7145_v51 = vadd.f32 %v7066_v21, %v1497_v35  ;;  %v1920_v25 = vrot.slane %v7188_v60, 4 }
 0x226   :  { %v6085_v48 = vpop.eup %6084  ;;  %v1338_v14 = vpop.f32.mrf.mxu1 }
 0x227   :  { %v6087_v2 = vpop.eup %6086  ;;  %v7142_v26 = vadd.f32 1.0, %v6085_v48  ;;  %v1636_v17 = vsel %vm7138_vm8, %v6083_v6, %v1632_v45  ;;  %v1537_v54 = vmul.f32 %v7071_v18, %v7145_v51 }
 0x228   :  { %v1644_v38 = vmul.f32 %v6087_v2, %v7117_v8  ;;  %v1127_v33 = vpop.f32.mrf.mxu2  ;;  %v1641_v57 = vsel %vm1638_vm15, %v1640_v46, %v1636_v17  ;;  %vm1649_vm1 = vweird.f32 %v6087_v2 }
 0x229   :  { %6088 = vrcp.f32 %v7142_v26  ;;  %v4680_v11 = vmul.f32 -1.442695, %v1537_v54  ;;  %v7178_v9 = vmul.f32 %v1641_v57, %v7079_v39  ;;  %vm1650_vm3 = vmor %vm1648_vm2, %vm1649_vm1  ;;  %v1225_v13 = vadd.f32 %v7112_v15, %v1127_v33 }
 0x22a   :  { %v1645_v53 = vsub.f32 1.0, %v1644_v38  ;;  %v1465_v30 = vpop.f32.mrf.mxu0  ;;  %v1669_v17 = vand.u32 2147483648, %v7142_v26  ;;  %vm1663_vm13 = vweird.f32 %v7142_v26  ;;  %v1667_v49 = vand.u32 2147483647, %v7142_v26 }
 0x22b   :  { %v1498_v37 = vadd.f32 %v1465_v30, %v1368_v43  ;;  %6090 = vpow2.f32 %v4680_v11  ;;  %v1921_v27 = vrot.slane %v7178_v9, 4  ;;  %v1369_v4 = vadd.f32 %v1338_v14, %v1225_v13 }
 0x22c   :  { %v1646_v5 = vmul.f32 %v6087_v2, %v1645_v53  ;;  %v1229_v59 = vpop.f32.mrf.mxu3  ;;  %v1670_v56 = vor.u32 1.1754944e-38, %v1669_v17  ;;  %vm1668_vm7 = vcmp.eq.f32.partialorder %v1667_v49, 8.507059e+37 }
 0x22d   :  { %v7185_v12 = vadd.f32 %v7066_v21, %v1498_v37  ;;  %v1922_v19 = vsel %vm1919_vm5, %v1920_v25, %v1921_v27 }
 0x22e   :  { %v1647_v55 = vadd.f32 %v6087_v2, %v1646_v5  ;;  %v1340_v24 = vpop.f32.mrf.mxu1 }
 0x22f   :  { %v7181_v10 = vpop.eup %6088  ;;  %v1538_v20 = vmul.f32 %v7071_v18, %v7185_v12 }
 0x230   :  { %v1651_v39 = vsel %vm1650_vm3, %v6087_v2, %v1647_v55  ;;  %v1659_v6 = vmul.f32 %v7181_v10, %v7142_v26  ;;  %v1129_v22 = vpop.f32.mrf.mxu2  ;;  %vm1664_vm10 = vweird.f32 %v7181_v10 }
 0x231   :  { %v1656_v8 = vsel %vm1653_vm4, %v1655_v3, %v1651_v39  ;;  %v4681_v36 = vmul.f32 -1.442695, %v1538_v20  ;;  %v6091_v23 = vpop.eup %6090  ;;  %v1227_v45 = vadd.f32 %v7131_v41, %v1129_v22  ;;  %vm1665_vm6 = vmor %vm1663_vm13, %vm1664_vm10 }
 0x232   :  { %v7196_v15 = vmul.f32 %v1656_v8, %v7090_v40  ;;  %v1660_v52 = vsub.f32 1.0, %v1659_v6  ;;  %v1468_v61 = vpop.f32.mrf.mxu0  ;;  %v1601_v62 = vadd.f32 1.0, %v6091_v23 }
 0x233   :  { %6092 = vpow2.f32 %v4681_v36  ;;  %v1499_v16 = vadd.f32 %v1468_v61, %v1369_v4  ;;  %v1370_v38 = vadd.f32 %v1340_v24, %v1227_v45 }
 0x234   :  { %v1923_v31 = vrot.slane %v7196_v15, 4  ;;  %v1661_v35 = vmul.f32 %v7181_v10, %v1660_v52  ;;  %6094 = vrcp.f32 %v1601_v62  ;;  %v1231_v14 = vpop.f32.mrf.mxu3  ;;  %v1682_v30 = vand.u32 2147483647, %v1601_v62 }
 0x235   :  { %v7211_v34 = vadd.f32 %v7066_v21, %v1499_v16  ;;  %v1684_v5 = vand.u32 2147483648, %v1601_v62  ;;  %vm1678_vm9 = vweird.f32 %v1601_v62  ;;  %v1888_v23 = vrot.slane %v7196_v15, 2 }
 0x236   :  { %v1924_v40 = vsel %vm1919_vm5, %v1921_v27, %v1923_v31  ;;  %v1343_v48 = vpop.f32.mrf.mxu1  ;;  %v1662_v32 = vadd.f32 %v7181_v10, %v1661_v35  ;;  %vm1683_vm14 = vcmp.eq.f32.partialorder %v1682_v30, 8.507059e+37 }
 0x237   :  { %v7207_v44 = vpack.c.bf16 %v1924_v40, %v1922_v19  ;;  %v1539_v0 = vmul.f32 %v7071_v18, %v7211_v34  ;;  %v1685_v6 = vor.u32 1.1754944e-38, %v1684_v5 }
 0x238   :  { %v1132_v2 = vpop.f32.mrf.mxu2  ;;  %v1666_v1 = vsel %vm1665_vm6, %v7181_v10, %v1662_v32 }
 0x239   :  { %4820 = vmatmul.msk.bf16.vlgmr.msra.gmra.mxu0 %vm225_vm0, %v7207_v44  ;;  %v6093_v50 = vpop.eup %6092  ;;  %v4682_v58 = vmul.f32 -1.442695, %v1539_v0  ;;  %v1230_v54 = vadd.f32 %v1229_v59, %v1132_v2  ;;  %v1671_v43 = vsel %vm1668_vm7, %v1670_v56, %v1666_v1 }
 0x23a   :  { %v1470_v41 = vpop.f32.mrf.mxu0  ;;  %v7222_v42 = vadd.f32 1.0, %v6093_v50  ;;  %v6095_v46 = vpop.eup %6094  ;;  %v7234_v3 = vmul.f32 %v1671_v43, %v7108_v47 }
 0x23b   :  { %v1500_v33 = vadd.f32 %v1470_v41, %v1370_v38  ;;  %v1674_v53 = vmul.f32 %v6095_v46, %v1601_v62  ;;  %vm1679_vm8 = vweird.f32 %v6095_v46  ;;  %v1371_v29 = vadd.f32 %v1343_v48, %v1230_v54 }
 0x23c   :  { %6096 = vrcp.f32 %v7222_v42  ;;  %v1234_v55 = vpop.f32.mrf.mxu3  ;;  %vm1680_vm12 = vmor %vm1678_vm9, %vm1679_vm8  ;;  %v1925_v36 = vrot.slane %v7234_v3, 4  ;;  %v1890_v35 = vrot.slane %v7234_v3, 2  ;;  %vm1693_vm15 = vweird.f32 %v7222_v42 }
 0x23d   :  { %6098 = vpow2.f32 %v4682_v58  ;;  %v7227_v57 = vadd.f32 %v7066_v21, %v1500_v33  ;;  %v1675_v26 = vsub.f32 1.0, %v1674_v53  ;;  %v1699_v32 = vand.u32 2147483648, %v7222_v42 }
 0x23e   :  { %v1345_v28 = vpop.f32.mrf.mxu1  ;;  %v1926_v41 = vsel %vm1919_vm5, %v1923_v31, %v1925_v36  ;;  %v1697_v58 = vand.u32 2147483647, %v7222_v42 }
 0x23f   :  { %v1540_v7 = vmul.f32 %v7071_v18, %v7227_v57  ;;  %v1676_v63 = vmul.f32 %v6095_v46, %v1675_v26  ;;  %v1700_v26 = vor.u32 1.1754944e-38, %v1699_v32 }
 0x240   :  { %v1134_v11 = vpop.f32.mrf.mxu2  ;;  %vm1698_vm3 = vcmp.eq.f32.partialorder %v1697_v58, 8.507059e+37 }
 0x241   :  { %v4683_v37 = vmul.f32 -1.442695, %v1540_v7  ;;  %v1677_v13 = vadd.f32 %v6095_v46, %v1676_v63  ;;  %v1232_v27 = vadd.f32 %v1231_v14, %v1134_v11  ;;  %v5668_v63 = vld [vmem:[%s9121_s6 + $0x98] sm:$0xff] }
 0x242   :  { %v1473_v24 = vpop.f32.mrf.mxu0  ;;  %v7231_v10 = vpop.eup %6096  ;;  %2195 = vmatpush.bf16.msrb.mxu2 %v5668_v63 }
 0x243   :  { %v1501_v59 = vadd.f32 %v1473_v24, %v1371_v29  ;;  %v6099_v39 = vpop.eup %6098  ;;  %v1689_v8 = vmul.f32 %v7231_v10, %v7222_v42  ;;  %6100 = vpow2.f32 %v4683_v37  ;;  %v1681_v20 = vsel %vm1680_vm12, %v6095_v46, %v1677_v13 }
 0x244   :  { %v7238_v22 = vadd.f32 1.0, %v6099_v39  ;;  %v1686_v47 = vsel %vm1683_vm14, %v1685_v6, %v1681_v20  ;;  %vm1694_vm1 = vweird.f32 %v7231_v10  ;;  %v1236_v46 = vpop.f32.mrf.mxu3  ;;  %v1891_v42 = vsel %vm739_vm11, %v1888_v23, %v1890_v35 }
 0x245   :  { %v7241_v52 = vadd.f32 %v7066_v21, %v1501_v59  ;;  %v1690_v4 = vsub.f32 1.0, %v1689_v8  ;;  %v7245_v61 = vmul.f32 %v1686_v47, %v7145_v51  ;;  %v1372_v51 = vadd.f32 %v1345_v28, %v1232_v27  ;;  %vm7275_vm2 = vmor %vm1693_vm15, %vm1694_vm1 }
 0x246   :  { %6102 = vrcp.f32 %v7238_v22  ;;  %v1712_v7 = vand.u32 2147483647, %v7238_v22  ;;  %vm1708_vm10 = vweird.f32 %v7238_v22 }
 0x247   :  { %v1691_v62 = vmul.f32 %v7231_v10, %v1690_v4  ;;  %v1541_v16 = vmul.f32 %v7071_v18, %v7241_v52  ;;  %v1892_v48 = vrot.slane %v7245_v61, 2  ;;  %v1927_v45 = vrot.slane %v7245_v61, 4 }
 0x248   :  { %v1137_v19 = vpop.f32.mrf.mxu2  ;;  %vm1713_vm6 = vcmp.eq.f32.partialorder %v1712_v7, 8.507059e+37 }
 0x249   :  { %v6101_v14 = vpop.eup %6100  ;;  %v1692_v2 = vadd.f32 %v7231_v10, %v1691_v62  ;;  %v4684_v0 = vmul.f32 -1.442695, %v1541_v16  ;;  %v1928_v49 = vsel %vm1919_vm5, %v1925_v36, %v1927_v45  ;;  %v1893_v1 = vsel %vm739_vm11, %v1890_v35, %v1892_v48 }
 0x24a   :  { %v1348_v40 = vpop.f32.mrf.mxu1  ;;  %v1475_v50 = vpop.f32.mrf.mxu0  ;;  %v7259_v17 = vadd.f32 1.0, %v6101_v14  ;;  %v7268_v33 = vpack.c.bf16 %v1928_v49, %v1926_v41  ;;  %v1235_v31 = vadd.f32 %v1234_v55, %v1137_v19  ;;  %v5963_v30 = vpack.i.bf16 %v1893_v1, %v1891_v42 }
 0x24b   :  { %v1502_v38 = vadd.f32 %v1475_v50, %v1372_v51  ;;  %6104 = vpow2.f32 %v4684_v0  ;;  %v1696_v56 = vsel %vm7275_vm2, %v7231_v10, %v1692_v2  ;;  %v1714_v55 = vand.u32 2147483648, %v7238_v22 }
 0x24c   :  { %v6103_v53 = vpop.eup %6102  ;;  %6106 = vrcp.f32 %v7259_v17  ;;  %4764 = vmatmul.msk.bf16.vlgmr.msrb.gmra.mxu3 %vm225_vm0, %v7268_v33  ;;  %4821 = vmatmul.msk.bf16.gmra.mxu0 %vm225_vm0, %v7268_v33  ;;  %v1701_v37 = vsel %vm1698_vm3, %v1700_v26, %v1696_v56  ;;  %v1373_v24 = vadd.f32 %v1348_v40, %v1235_v31  ;;  %v1727_v14 = vand.u32 2147483647, %v7259_v17 }
 0x24d   :  { %v1704_v28 = vmul.f32 %v6103_v53, %v7238_v22  ;;  %v7292_v43 = vadd.f32 %v7066_v21, %v1502_v38  ;;  %5964 = vrot.lane.b32.xlu0 %v5963_v30, %s6183_s29  ;;  %vm1709_vm4 = vweird.f32 %v6103_v53  ;;  %v7305_v47 = vmul.f32 %v1701_v37, %v7185_v12 }
 0x24e   :  { %vm1710_vm13 = vmor %vm1708_vm10, %vm1709_vm4  ;;  %v1715_v62 = vor.u32 1.1754944e-38, %v1714_v55  ;;  %v1729_v22 = vand.u32 2147483648, %v7259_v17  ;;  %vm1723_vm8 = vweird.f32 %v7259_v17  ;;  %vm7325_vm9 = vcmp.eq.f32.partialorder %v1727_v14, 8.507059e+37 }
 0x24f   :  { %v1705_v5 = vsub.f32 1.0, %v1704_v28  ;;  %v1542_v10 = vmul.f32 %v7071_v18, %v7292_v43  ;;  %v1894_v41 = vrot.slane %v7305_v47, 2  ;;  %v1929_v58 = vrot.slane %v7305_v47, 4 }
 0x250   :  { %v1139_v11 = vpop.f32.mrf.mxu2  ;;  %v1239_v35 = vpop.f32.mrf.mxu3  ;;  %v1730_v28 = vor.u32 1.1754944e-38, %v1729_v22 }
 0x251   :  { %v6105_v13 = vpop.eup %6104  ;;  %v1706_v59 = vmul.f32 %v6103_v53, %v1705_v5  ;;  %v4685_v20 = vmul.f32 -1.442695, %v1542_v10  ;;  %v1237_v16 = vadd.f32 %v1236_v46, %v1139_v11  ;;  %v1895_v11 = vsel %vm739_vm11, %v1892_v48, %v1894_v41 }
 0x252   :  { %v1350_v29 = vpop.f32.mrf.mxu1  ;;  %v1478_v39 = vpop.f32.mrf.mxu0  ;;  %v7302_v8 = vadd.f32 1.0, %v6105_v13  ;;  %v1930_v10 = vsel %vm1919_vm5, %v1927_v45, %v1929_v58 }
 0x253   :  { %v6107_v6 = vpop.eup %6106  ;;  %v1503_v27 = vadd.f32 %v1478_v39, %v1373_v24  ;;  %v1707_v4 = vadd.f32 %v6103_v53, %v1706_v59  ;;  %v1374_v49 = vadd.f32 %v1350_v29, %v1237_v16 }
 0x254   :  { %v1719_v36 = vmul.f32 %v6107_v6, %v7259_v17  ;;  %6108 = vrcp.f32 %v7302_v8  ;;  %vm1724_vm7 = vweird.f32 %v6107_v6  ;;  %v1742_v13 = vand.u32 2147483647, %v7302_v8 }
 0x255   :  { %v1711_v19 = vsel %vm1710_vm13, %v6103_v53, %v1707_v4  ;;  %6110 = vpow2.f32 %v4685_v20  ;;  %v7311_v51 = vadd.f32 %v7066_v21, %v1503_v27  ;;  %vm7329_vm12 = vmor %vm1723_vm8, %vm1724_vm7  ;;  %v1744_v59 = vand.u32 2147483648, %v7302_v8 }
 0x256   :  { %v1720_v40 = vsub.f32 1.0, %v1719_v36  ;;  %v1716_v12 = vsel %vm1713_vm6, %v1715_v62, %v1711_v19  ;;  %v5667_v36 = vld [vmem:[%s9121_s6 + $0x90] sm:$0xff]  ;;  %vm1738_vm15 = vweird.f32 %v7302_v8  ;;  %vm1743_vm2 = vcmp.eq.f32.partialorder %v1742_v13, 8.507059e+37 }
 0x257   :  { %v7316_v2 = vmul.f32 %v1716_v12, %v7211_v34  ;;  %v1543_v0 = vmul.f32 %v7071_v18, %v7311_v51  ;;  %v1745_v22 = vor.u32 1.1754944e-38, %v1744_v59  ;;  %2196 = vmatpush.bf16.msrb.mxu2 %v5667_v36 }
 0x258   :  { %v1721_v32 = vmul.f32 %v6107_v6, %v1720_v40  ;;  %v1142_v50 = vpop.f32.mrf.mxu2  ;;  %v1241_v20 = vpop.f32.mrf.mxu3 }
 0x259   :  { %v1896_v46 = vrot.slane %v7316_v2, 2  ;;  %v1931_v1 = vrot.slane %v7316_v2, 4  ;;  %v4686_v54 = vmul.f32 -1.442695, %v1543_v0  ;;  %v1240_v7 = vadd.f32 %v1239_v35, %v1142_v50 }
 0x25a   :  { %v1353_v38 = vpop.f32.mrf.mxu1  ;;  %v1722_v53 = vadd.f32 %v6107_v6, %v1721_v32  ;;  %v1480_v34 = vpop.f32.mrf.mxu0 }
 0x25b   :  { %v6109_v31 = vpop.eup %6108  ;;  %v1504_v42 = vadd.f32 %v1480_v34, %v1374_v49  ;;  %6112 = vpow2.f32 %v4686_v54  ;;  %v1897_v37 = vsel %vm739_vm11, %v1894_v41, %v1896_v46  ;;  %v1932_v48 = vsel %vm1919_vm5, %v1929_v58, %v1931_v1 }
 0x25c   :  { %v6111_v26 = vpop.eup %6110  ;;  %v1734_v5 = vmul.f32 %v6109_v31, %v7302_v8  ;;  %v1726_v17 = vsel %vm7329_vm12, %v6107_v6, %v1722_v53  ;;  %v5968_v24 = vpack.i.bf16 %v1897_v37, %v1895_v11  ;;  %vm1739_vm14 = vweird.f32 %v6109_v31 }
 0x25d   :  { %v7339_v63 = vadd.f32 1.0, %v6111_v26  ;;  %v7342_v29 = vadd.f32 %v7066_v21, %v1504_v42  ;;  %v1731_v39 = vsel %vm7325_vm9, %v1730_v28, %v1726_v17  ;;  %v7361_v45 = vpack.c.bf16 %v1932_v48, %v1930_v10  ;;  %vm1740_vm1 = vmor %vm1738_vm15, %vm1739_vm14 }
 0x25e   :  { %v1735_v55 = vsub.f32 1.0, %v1734_v5  ;;  %5969 = vrot.lane.b32.xlu1 %v5968_v24, %s6183_s29  ;;  %v1375_v62 = vadd.f32 %v1353_v38, %v1240_v7  ;;  %v7372_v14 = vmul.f32 %v1731_v39, %v7227_v57 }
 0x25f   :  { %6114 = vrcp.f32 %v7339_v63  ;;  %v1544_v27 = vmul.f32 %v7071_v18, %v7342_v29  ;;  %4765 = vmatmul.msk.bf16.gmra.mxu3 %vm225_vm0, %v7361_v45  ;;  %4822 = vmatmul.msk.bf16.gmra.mxu0 %vm225_vm0, %v7361_v45  ;;  %v1757_v58 = vand.u32 2147483647, %v7339_v63  ;;  %vm1753_vm3 = vweird.f32 %v7339_v63 }
 0x260   :  { %v1736_v6 = vmul.f32 %v6109_v31, %v1735_v55  ;;  %v1144_v4 = vpop.f32.mrf.mxu2  ;;  %v1898_v54 = vrot.slane %v7372_v14, 2  ;;  %v1933_v30 = vrot.slane %v7372_v14, 4  ;;  %v1244_v17 = vpop.f32.mrf.mxu3 }
 0x261   :  { %v6113_v16 = vpop.eup %6112  ;;  %v4687_v40 = vmul.f32 -1.442695, %v1544_v27  ;;  %v1242_v41 = vadd.f32 %v1241_v20, %v1144_v4  ;;  %vm7394_vm10 = vcmp.eq.f32.partialorder %v1757_v58, 8.507059e+37 }
 0x262   :  { %v1737_v19 = vadd.f32 %v6109_v31, %v1736_v6  ;;  %v1355_v35 = vpop.f32.mrf.mxu1  ;;  %v1483_v12 = vpop.f32.mrf.mxu0  ;;  %v7375_v32 = vadd.f32 1.0, %v6113_v16  ;;  %v1899_v59 = vsel %vm739_vm11, %v1896_v46, %v1898_v54  ;;  %v1934_v46 = vsel %vm1919_vm5, %v1931_v1, %v1933_v30 }
 0x263   :  { %v1505_v0 = vadd.f32 %v1483_v12, %v1375_v62  ;;  %6116 = vpow2.f32 %v4687_v40  ;;  %v1376_v42 = vadd.f32 %v1355_v35, %v1242_v41 }
 0x264   :  { %v1741_v8 = vsel %vm1740_vm1, %v6109_v31, %v1737_v19  ;;  %6118 = vrcp.f32 %v7375_v32  ;;  %v1774_v35 = vand.u32 2147483648, %v7375_v32  ;;  %vm1768_vm7 = vweird.f32 %v7375_v32 }
 0x265   :  { %v6115_v50 = vpop.eup %6114  ;;  %v1746_v38 = vsel %vm1743_vm2, %v1745_v22, %v1741_v8  ;;  %v7384_v53 = vadd.f32 %v7066_v21, %v1505_v0  ;;  %v1772_v0 = vand.u32 2147483647, %v7375_v32  ;;  %v5666_v8 = vld [vmem:[%s9121_s6 + $0x88] sm:$0xff] }
 0x266   :  { %v7379_v49 = vmul.f32 %v1746_v38, %v7241_v52  ;;  %v1749_v57 = vmul.f32 %v6115_v50, %v7339_v63  ;;  %v1759_v52 = vand.u32 2147483648, %v7339_v63  ;;  %vm1754_vm4 = vweird.f32 %v6115_v50  ;;  %2197 = vmatpush.bf16.msrb.mxu2 %v5666_v8 }
 0x267   :  { %v1545_v26 = vmul.f32 %v7071_v18, %v7384_v53  ;;  %vm1755_vm13 = vmor %vm1753_vm3, %vm1754_vm4  ;;  %vm1773_vm9 = vcmp.eq.f32.partialorder %v1772_v0, 8.507059e+37 }
 0x268   :  { %v1900_v34 = vrot.slane %v7379_v49, 2  ;;  %v1935_v31 = vrot.slane %v7379_v49, 4  ;;  %v1750_v56 = vsub.f32 1.0, %v1749_v57  ;;  %v1147_v28 = vpop.f32.mrf.mxu2  ;;  %v1760_v36 = vor.u32 1.1754944e-38, %v1759_v52 }
 0x269   :  { %v6117_v5 = vpop.eup %6116  ;;  %v4688_v48 = vmul.f32 -1.442695, %v1545_v26  ;;  %v1245_v62 = vadd.f32 %v1244_v17, %v1147_v28  ;;  %v1775_v28 = vor.u32 1.1754944e-38, %v1774_v35 }
 0x26a   :  { %v1751_v7 = vmul.f32 %v6115_v50, %v1750_v56  ;;  %v1485_v37 = vpop.f32.mrf.mxu0  ;;  %v1901_v55 = vsel %vm739_vm11, %v1898_v54, %v1900_v34  ;;  %v6119_v24 = vpop.eup %6118  ;;  %v7401_v10 = vadd.f32 1.0, %v6117_v5  ;;  %v1936_v4 = vsel %vm1919_vm5, %v1933_v30, %v1935_v31 }
 0x26b   :  { %v1506_v13 = vadd.f32 %v1485_v37, %v1376_v42  ;;  %v1764_v6 = vmul.f32 %v6119_v24, %v7375_v32  ;;  %v1358_v20 = vpop.f32.mrf.mxu1  ;;  %v5973_v27 = vpack.i.bf16 %v1901_v55, %v1899_v59  ;;  %v7424_v12 = vpack.c.bf16 %v1936_v4, %v1934_v46  ;;  %v1246_v32 = vpop.f32.mrf.mxu3 }
 0x26c   :  { %v1752_v39 = vadd.f32 %v6115_v50, %v1751_v7  ;;  %6120 = vrcp.f32 %v7401_v10  ;;  %vm1769_vm6 = vweird.f32 %v6119_v24  ;;  %vm1783_vm14 = vweird.f32 %v7401_v10 }
 0x26d   :  { %v1765_v19 = vsub.f32 1.0, %v1764_v6  ;;  %6122 = vpow2.f32 %v4688_v48  ;;  %v7418_v40 = vadd.f32 %v7066_v21, %v1506_v13  ;;  %5974 = vrot.lane.b32.xlu2 %v5973_v27, %s6183_s29  ;;  %vm1770_vm8 = vmor %vm1768_vm7, %vm1769_vm6  ;;  %v1789_v6 = vand.u32 2147483648, %v7401_v10 }
 0x26e   :  { %v1756_v16 = vsel %vm1755_vm13, %v6115_v50, %v1752_v39  ;;  %v1377_v50 = vadd.f32 %v1358_v20, %v1245_v62  ;;  %v1787_v0 = vand.u32 2147483647, %v7401_v10 }
 0x26f   :  { %v1761_v63 = vsel %vm7394_vm10, %v1760_v36, %v1756_v16  ;;  %v1766_v22 = vmul.f32 %v6119_v24, %v1765_v19  ;;  %v1546_v1 = vmul.f32 %v7071_v18, %v7418_v40  ;;  %4766 = vmatmul.msk.bf16.gmra.mxu3 %vm225_vm0, %v7424_v12  ;;  %4823 = vmatmul.msk.bf16.gmra.mxu0 %vm225_vm0, %v7424_v12 }
 0x270   :  { %v7433_v38 = vmul.f32 %v1761_v63, %v7292_v43  ;;  %v1149_v58 = vpop.f32.mrf.mxu2  ;;  %vm1788_vm1 = vcmp.eq.f32.partialorder %v1787_v0, 8.507059e+37 }
 0x271   :  { %v1767_v41 = vadd.f32 %v6119_v24, %v1766_v22  ;;  %v4689_v57 = vmul.f32 -1.442695, %v1546_v1  ;;  %v1247_v7 = vadd.f32 %v1246_v32, %v1149_v58 }
 0x272   :  { %v1488_v54 = vpop.f32.mrf.mxu0  ;;  %v6121_v56 = vpop.eup %6120  ;;  %v1902_v48 = vrot.slane %v7433_v38, 2 }
 0x273   :  { %v1507_v52 = vadd.f32 %v1488_v54, %v1377_v50  ;;  %v6123_v42 = vpop.eup %6122  ;;  %v1771_v43 = vsel %vm1770_vm8, %v6119_v24, %v1767_v41  ;;  %v1779_v26 = vmul.f32 %v6121_v56, %v7401_v10  ;;  %6124 = vpow2.f32 %v4689_v57  ;;  %v1360_v55 = vpop.f32.mrf.mxu1 }
 0x274   :  { %v1776_v30 = vsel %vm1773_vm9, %v1775_v28, %v1771_v43  ;;  %v7441_v5 = vadd.f32 1.0, %v6123_v42  ;;  %vm1784_vm12 = vweird.f32 %v6121_v56  ;;  %v1378_v20 = vadd.f32 %v1360_v55, %v1247_v7 }
 0x275   :  { %v7444_v11 = vadd.f32 %v7066_v21, %v1507_v52  ;;  %v7447_v17 = vmul.f32 %v1776_v30, %v7311_v51  ;;  %v1780_v37 = vsub.f32 1.0, %v1779_v26  ;;  %v1937_v51 = vrot.slane %v7433_v38, 4  ;;  %vm1785_vm15 = vmor %vm1783_vm14, %vm1784_vm12 }
 0x276   :  { %6126 = vrcp.f32 %v7441_v5  ;;  %v1903_v46 = vsel %vm739_vm11, %v1900_v34, %v1902_v48  ;;  %v1790_v57 = vor.u32 1.1754944e-38, %v1789_v6  ;;  %v1804_v28 = vand.u32 2147483648, %v7441_v5 }
 0x277   :  { %v1904_v24 = vrot.slane %v7447_v17, 2  ;;  %v1939_v13 = vrot.slane %v7447_v17, 4  ;;  %v1781_v59 = vmul.f32 %v6121_v56, %v1780_v37  ;;  %v1547_v39 = vmul.f32 %v7071_v18, %v7444_v11  ;;  %v5664_v37 = vld [vmem:[%s9121_s6 + $0x78] sm:$0xff] }
 0x278   :  { %v1938_v34 = vsel %vm1919_vm5, %v1935_v31, %v1937_v51  ;;  %vm1798_vm3 = vweird.f32 %v7441_v5  ;;  %v1805_v55 = vor.u32 1.1754944e-38, %v1804_v28 }
 0x279   :  { %v6125_v27 = vpop.eup %6124  ;;  %v1782_v4 = vadd.f32 %v6121_v56, %v1781_v59  ;;  %v4690_v36 = vmul.f32 -1.442695, %v1547_v39  ;;  %v1905_v16 = vsel %vm739_vm11, %v1902_v48, %v1904_v24  ;;  %v1940_v35 = vsel %vm1919_vm5, %v1937_v51, %v1939_v13  ;;  %v5663_v51 = vld [vmem:[%s9121_s6 + $0x70] sm:$0xff] }
 0x27a   :  { %v1490_v62 = vpop.f32.mrf.mxu0  ;;  %v7463_v19 = vadd.f32 1.0, %v6125_v27  ;;  %v5978_v22 = vpack.i.bf16 %v1905_v16, %v1903_v46  ;;  %v7477_v41 = vpack.c.bf16 %v1940_v35, %v1938_v34 }
 0x27b   :  { %v1508_v63 = vadd.f32 %v1490_v62, %v1378_v20  ;;  %6128 = vpow2.f32 %v4690_v36  ;;  %v1786_v8 = vsel %vm1785_vm15, %v6121_v56, %v1782_v4  ;;  %v1802_v56 = vand.u32 2147483647, %v7441_v5 }
 0x27c   :  { %v6127_v1 = vpop.eup %6126  ;;  %6130 = vrcp.f32 %v7463_v19  ;;  %5979 = vrot.lane.b32.xlu0 %v5978_v22, %s6183_s29  ;;  %v1791_v54 = vsel %vm1788_vm1, %v1790_v57, %v1786_v8  ;;  %v1819_v39 = vand.u32 2147483648, %v7463_v19  ;;  %vm1813_vm6 = vweird.f32 %v7463_v19 }
 0x27d   :  { %v1794_v50 = vmul.f32 %v6127_v1, %v7441_v5  ;;  %v7480_v10 = vadd.f32 %v7066_v21, %v1508_v63  ;;  %vm1799_vm2 = vweird.f32 %v6127_v1  ;;  %v5665_v21 = vld [vmem:[%s9121_s6 + $0x80] sm:$0xff]  ;;  %vm1803_vm10 = vcmp.eq.f32.partialorder %v1802_v56, 8.507059e+37 }
 0x27e   :  { %2198 = vmatpush.bf16.msrb.mxu2 %v5665_v21  ;;  %vm1800_vm4 = vmor %vm1798_vm3, %vm1799_vm2  ;;  %v1820_v63 = vor.u32 1.1754944e-38, %v1819_v39 }
 0x27f   :  { %v1795_v58 = vsub.f32 1.0, %v1794_v50  ;;  %v1548_v52 = vmul.f32 %v7071_v18, %v7480_v10  ;;  %4767 = vmatmul.msk.bf16.gmra.mxu3 %vm225_vm0, %v7477_v41  ;;  %4824 = vmatmul.msk.bf16.gmra.mxu0 %vm225_vm0, %v7477_v41  ;;  %v7496_v18 = vmul.f32 %v1791_v54, %v7342_v29 }
 0x281   :  { %v6129_v31 = vpop.eup %6128  ;;  %v1796_v42 = vmul.f32 %v6127_v1, %v1795_v58  ;;  %v4691_v32 = vmul.f32 -1.442695, %v1548_v52  ;;  %v1906_v20 = vrot.slane %v7496_v18, 2  ;;  %v1941_v27 = vrot.slane %v7496_v18, 4 }
 0x282   :  { %v6131_v43 = vpop.eup %6130  ;;  %v7493_v26 = vadd.f32 1.0, %v6129_v31  ;;  %2199 = vmatpush.bf16.msrb.mxu2 %v5664_v37 }
 0x283   :  { %v1797_v30 = vadd.f32 %v6127_v1, %v1796_v42  ;;  %v1809_v7 = vmul.f32 %v6131_v43, %v7463_v19  ;;  %vm1814_vm13 = vweird.f32 %v6131_v43  ;;  %v1942_v50 = vsel %vm1919_vm5, %v1939_v13, %v1941_v27 }
 0x284   :  { %6132 = vrcp.f32 %v7493_v26  ;;  %vm7517_vm7 = vmor %vm1813_vm6, %vm1814_vm13  ;;  %v1832_v31 = vand.u32 2147483647, %v7493_v26  ;;  %v1886_v13 = vrot.slane %v7178_v9, 2  ;;  %v1885_v42 = vrot.slane %v7188_v60, 2 }
 0x285   :  { %v1801_v48 = vsel %vm1800_vm4, %v6127_v1, %v1797_v30  ;;  %v1810_v59 = vsub.f32 1.0, %v1809_v7  ;;  %6134 = vpow2.f32 %v4691_v32  ;;  %v1907_v1 = vsel %vm739_vm11, %v1904_v24, %v1906_v20  ;;  %v5662_v32 = vld [vmem:[%s9121_s6 + $0x68] sm:$0xff] }
 0x286   :  { %v1806_v29 = vsel %vm1803_vm10, %v1805_v55, %v1801_v48  ;;  %2200 = vmatpush.bf16.msrb.mxu2 %v5663_v51  ;;  %v1834_v24 = vand.u32 2147483648, %v7493_v26  ;;  %vm1828_vm12 = vweird.f32 %v7493_v26  ;;  %vm1833_vm15 = vcmp.eq.f32.partialorder %v1832_v31, 8.507059e+37 }
 0x287   :  { %v7506_v5 = vmul.f32 %v1806_v29, %v7384_v53  ;;  %v1811_v6 = vmul.f32 %v6131_v43, %v1810_v59  ;;  %v1817_v53 = vand.u32 2147483647, %v7463_v19  ;;  %vm2887_vm10 = vcmask 1041408  }
 0x288   :  { %vm2883_vm13 = vcmask 23552  }
 0x289   :  { %v1908_v4 = vrot.slane %v7506_v5, 2  ;;  %v1943_v36 = vrot.slane %v7506_v5, 4  ;;  %v1812_v62 = vadd.f32 %v6131_v43, %v1811_v6  ;;  %vm1818_vm8 = vcmp.eq.f32.partialorder %v1817_v53, 8.507059e+37 }
 0x28a   :  { %v6133_v46 = vpop.eup %6132  ;;  %2201 = vmatpush.bf16.msrb.mxu2 %v5662_v32 }
 0x28b   :  { %v6135_v35 = vpop.eup %6134  ;;  %v1816_v22 = vsel %vm7517_vm7, %v6131_v43, %v1812_v62  ;;  %v1824_v0 = vmul.f32 %v6133_v46, %v7493_v26  ;;  %v1909_v34 = vsel %vm739_vm11, %v1906_v20, %v1908_v4  ;;  %v1944_v57 = vsel %vm1919_vm5, %v1941_v27, %v1943_v36 }
 0x28c   :  { %v1612_v19 = vadd.f32 1.0, %v6135_v35  ;;  %v5983_v8 = vpack.i.bf16 %v1909_v34, %v1907_v1  ;;  %v7534_v54 = vpack.c.bf16 %v1944_v57, %v1942_v50  ;;  %v1821_v28 = vsel %vm1818_vm8, %v1820_v63, %v1816_v22  ;;  %v5683_v57 = vld [vmem:[%s9121_s6 + $0x110] sm:$0xff] }
 0x28d   :  { %v1825_v58 = vsub.f32 1.0, %v1824_v0  ;;  %vm1829_vm9 = vweird.f32 %v6133_v46  ;;  %v7542_v56 = vmul.f32 %v1821_v28, %v7418_v40  ;;  %v1889_v43 = vsel %vm739_vm11, %v1886_v13, %v1888_v23 }
 0x28e   :  { %6136 = vrcp.f32 %v1612_v19  ;;  %5984 = vrot.lane.b32.xlu1 %v5983_v8, %s6183_s29  ;;  %vm1830_vm14 = vmor %vm1828_vm12, %vm1829_vm9  ;;  %v1835_v40 = vor.u32 1.1754944e-38, %v1834_v24  ;;  %v1887_v26 = vsel %vm739_vm11, %v1885_v42, %v1886_v13  ;;  %v1847_v51 = vand.u32 2147483647, %v1612_v19  ;;  %v5682_v24 = vld [vmem:[%s9121_s6 + $0x108] sm:$0xff] }
 0x28f   :  { %v1826_v52 = vmul.f32 %v6133_v46, %v1825_v58  ;;  %4768 = vmatmul.msk.bf16.gmra.mxu3 %vm225_vm0, %v7534_v54  ;;  %4825 = vmatmul.msk.bf16.gmra.mxu0 %vm225_vm0, %v7534_v54  ;;  %v5998_v55 = vpack.i.bf16 %v1889_v43, %v1887_v26  ;;  %v1910_v23 = vrot.slane %v7542_v56, 2  ;;  %v1945_v20 = vrot.slane %v7542_v56, 4 }
 0x290   :  { %v1849_v27 = vand.u32 2147483648, %v1612_v19  ;;  %vm1843_vm2 = vweird.f32 %v1612_v19  ;;  %vm1848_vm4 = vcmp.eq.f32.partialorder %v1847_v51, 8.507059e+37 }
 0x291   :  { %v1827_v21 = vadd.f32 %v6133_v46, %v1826_v52  ;;  %v1911_v53 = vsel %vm739_vm11, %v1908_v4, %v1910_v23  ;;  %v1946_v22 = vsel %vm1919_vm5, %v1943_v36, %v1945_v20  ;;  %v5681_v52 = vld [vmem:[%s9121_s6 + $0x100] sm:$0xff] }
 0x292   :  { %v1850_v35 = vor.u32 1.1754944e-38, %v1849_v27 }
 0x293   :  { %v1831_v30 = vsel %vm1830_vm14, %v6133_v46, %v1827_v21  ;;  %v5680_v21 = vld [vmem:[%s9121_s6 + $0xf8] sm:$0xff] }
 0x294   :  { %v6137_v7 = vpop.eup %6136  ;;  %v1836_v37 = vsel %vm1833_vm15, %v1835_v40, %v1831_v30 }
 0x295   :  { %v7557_v48 = vmul.f32 %v1836_v37, %v7444_v11  ;;  %v1839_v59 = vmul.f32 %v6137_v7, %v1612_v19  ;;  %vm1844_vm1 = vweird.f32 %v6137_v7  ;;  %v5684_v19 = vld [vmem:[%s9121_s6 + $0x118] sm:$0xff] }
 0x296   :  { %5999 = vrot.lane.b32.xlu1 %v5998_v55, %s6183_s29  ;;  %vm1845_vm3 = vmor %vm1843_vm2, %vm1844_vm1  ;;  %2543 = vmatpush.bf16.msra.mxu3 %v5684_v19  ;;  %v5651_v19 = vld [vmem:[%s9121_s6 + $0x10] sm:$0xff] }
 0x297   :  { %v1912_v29 = vrot.slane %v7557_v48, 2  ;;  %v1947_v39 = vrot.slane %v7557_v48, 4  ;;  %v1840_v6 = vsub.f32 1.0, %v1839_v59  ;;  %v5679_v59 = vld [vmem:[%s9121_s6 + $0xf0] sm:$0xff] }
 0x299   :  { %v1841_v62 = vmul.f32 %v6137_v7, %v1840_v6  ;;  %v1913_v11 = vsel %vm739_vm11, %v1910_v23, %v1912_v29  ;;  %v1948_v16 = vsel %vm1919_vm5, %v1945_v20, %v1947_v39  ;;  %v5655_v23 = vld [vmem:[%s9121_s6 + $0x30] sm:$0xff] }
 0x29a   :  { %v5988_v46 = vpack.i.bf16 %v1913_v11, %v1911_v53  ;;  %v7571_v1 = vpack.c.bf16 %v1948_v16, %v1946_v22  ;;  %2544 = vmatpush.bf16.msra.mxu3 %v5683_v57  ;;  %v5678_v53 = vld [vmem:[%s9121_s6 + $0xe8] sm:$0xff] }
 0x29b   :  { %v1842_v63 = vadd.f32 %v6137_v7, %v1841_v62 }
 0x29c   :  { %5989 = vrot.lane.b32.xlu2 %v5988_v46, %s6183_s29 }
 0x29d   :  { %v1846_v0 = vsel %vm1845_vm3, %v6137_v7, %v1842_v63 }
 0x29e   :  { %v1851_v4 = vsel %vm1848_vm4, %v1850_v35, %v1846_v0  ;;  %2545 = vmatpush.bf16.msra.mxu3 %v5682_v24  ;;  %v5652_v35 = vld [vmem:[%s9121_s6 + $0x18] sm:$0xff] }
 0x29f   :  { %v7574_v34 = vmul.f32 %v1851_v4, %v7480_v10  ;;  %4769 = vmatmul.msk.bf16.gmra.mxu3 %vm225_vm0, %v7571_v1  ;;  %4826 = vmatmul.msk.bf16.gmra.mxu0 %vm225_vm0, %v7571_v1  ;;  %v5661_v10 = vld [vmem:[%s9121_s6 + $0x60] sm:$0xff] }
 0x2a0   :  { %2202 = vmatpush.bf16.msrb.mxu2 %v5661_v10 }
 0x2a1   :  { %v1914_v36 = vrot.slane %v7574_v34, 2  ;;  %v1949_v28 = vrot.slane %v7574_v34, 4 }
 0x2a2   :  { %2546 = vmatpush.bf16.msra.mxu3 %v5681_v52 }
 0x2a3   :  { %v1915_v8 = vsel %vm739_vm11, %v1912_v29, %v1914_v36  ;;  %v1918_v50 = vsel %vm739_vm11, %v1914_v36, %v1885_v42  ;;  %v1950_v31 = vsel %vm1919_vm5, %v1947_v39, %v1949_v28  ;;  %v1968_v13 = vsel %vm1919_vm5, %v1949_v28, %v1920_v25  ;;  %v5656_v25 = vld [vmem:[%s9121_s6 + $0x38] sm:$0xff] }
 0x2a4   :  { %v5993_v58 = vpack.i.bf16 %v1918_v50, %v1915_v8  ;;  %v7604_v42 = vpack.c.bf16 %v1968_v13, %v1950_v31  ;;  %2504 = vmatpush.bf16.msra.mxu2 %v5680_v21  ;;  %2337 = vmatpush.bf16.msra.mxu1 %v5656_v25  ;;  %v5649_v50 = vld [vmem:[%s9121_s6] sm:$0xff]  ;;  %v5676_v25 = vld [vmem:[%s9121_s6 + $0xd8] sm:$0xff]  ;;  %vm2579_vm5 = vcmask 1040384  }
 0x2a6   :  { %5994 = vrot.lane.b32.xlu0 %v5993_v58, %s6183_s29 }
 0x2a8   :  { %2505 = vmatpush.bf16.msra.mxu2 %v5679_v59  ;;  %2338 = vmatpush.bf16.msra.mxu1 %v5655_v23  ;;  %v5675_v23 = vld [vmem:[%s9121_s6 + $0xd0] sm:$0xff] }
 0x2ac   :  { %2506 = vmatpush.bf16.msra.mxu2 %v5678_v53 }
 0x2af   :  { %4770 = vmatmul.msk.bf16.gmra.mxu3 %vm225_vm0, %v7604_v42  ;;  %4827 = vmatmul.msk.bf16.gmra.mxu0 %vm225_vm0, %v7604_v42 }
 0x2b6   :  { %v7613_v43 = vpop.f32.mrf.mxu0 }
 0x2be   :  { %v2383_v32 = vpop.f32.mrf.mxu0 }
 0x2bf   :  { %4771 = vmatmul.msk.bf16.gmra.mxu3 %vm225_vm0, %v7207_v44  ;;  %v5965_v40 = vpop.permute.xlu0 %5964 }
 0x2c0   :  { %v5967_v30 = vunpack.i.h.bf16 %v5965_v40  ;;  %v5966_v26 = vunpack.i.l.bf16 %v5965_v40 }
 0x2c2   :  { %v2020_v7 = vsel %vm225_vm0, %v7196_v15, %v5966_v26  ;;  %v2021_v37 = vsel %vm225_vm0, %v7234_v3, %v5967_v30 }
 0x2c3   :  { %v7624_v55 = vpack.c.bf16 %v2021_v37, %v2020_v7 }
 0x2c5   :  { %2203 = vmatmul.bf16.vlgmr.msrb.gmra.mxu2 %v7624_v55 }
 0x2c7   :  { %v5975_v46 = vpop.permute.xlu2 %5974 }
 0x2c8   :  { %v5977_v16 = vunpack.i.h.bf16 %v5975_v46  ;;  %v5976_v63 = vunpack.i.l.bf16 %v5975_v46 }
 0x2c9   :  { %v2385_v29 = vpop.f32.mrf.mxu0 }
 0x2ca   :  { %v2024_v22 = vsel %vm225_vm0, %v7316_v2, %v5976_v63  ;;  %v2025_v0 = vsel %vm225_vm0, %v7372_v14, %v5977_v16  ;;  %v5650_v2 = vld [vmem:[%s9121_s6 + $0x8] sm:$0xff] }
 0x2cb   :  { %v7665_v8 = vpack.c.bf16 %v2025_v0, %v2024_v22  ;;  %v5673_v0 = vld [vmem:[%s9121_s6 + $0xc0] sm:$0xff] }
 0x2cf   :  { %v7633_v39 = vpop.f32.mrf.mxu3  ;;  %4900 = vmatmul.msk.bf16.vlgmr.msra.gmra.mxu3 %vm225_vm0, %v7361_v45  ;;  %v5654_v45 = vld [vmem:[%s9121_s6 + $0x28] sm:$0xff] }
 0x2d0   :  { %v5970_v15 = vpop.permute.xlu1 %5969  ;;  %2339 = vmatpush.bf16.msra.mxu1 %v5654_v45 }
 0x2d1   :  { %v5972_v3 = vunpack.i.h.bf16 %v5970_v15  ;;  %v5971_v6 = vunpack.i.l.bf16 %v5970_v15  ;;  %v2386_v20 = vpop.f32.mrf.mxu0 }
 0x2d3   :  { %v2022_v51 = vsel %vm225_vm0, %v7245_v61, %v5971_v6  ;;  %v2023_v27 = vsel %vm225_vm0, %v7305_v47, %v5972_v3  ;;  %v5653_v61 = vld [vmem:[%s9121_s6 + $0x20] sm:$0xff] }
 0x2d4   :  { %v7641_v62 = vpack.c.bf16 %v2023_v27, %v2022_v51  ;;  %2340 = vmatpush.bf16.msra.mxu1 %v5653_v61  ;;  %v5674_v61 = vld [vmem:[%s9121_s6 + $0xc8] sm:$0xff] }
 0x2d6   :  { %2207 = vmatmul.bf16.gmra.mxu2 %v7641_v62 }
 0x2d7   :  { %v2241_v11 = vpop.f32.mrf.mxu3 }
 0x2d8   :  { %2341 = vmatpush.bf16.msra.mxu1 %v5652_v35 }
 0x2dc   :  { %v2388_v47 = vpop.f32.mrf.mxu0  ;;  %2342 = vmatpush.bf16.msra.mxu1 %v5651_v19 }
 0x2df   :  { %4901 = vmatmul.msk.bf16.gmra.mxu3 %vm225_vm0, %v7424_v12  ;;  %v5677_v12 = vld [vmem:[%s9121_s6 + $0xe0] sm:$0xff] }
 0x2e0   :  { %2507 = vmatpush.bf16.msra.mxu2 %v5677_v12  ;;  %2343 = vmatpush.bf16.msra.mxu1 %v5650_v2 }
 0x2e2   :  { %v2243_v4 = vpop.f32.mrf.mxu3 }
 0x2e4   :  { %v2389_v36 = vpop.f32.mrf.mxu0  ;;  %2344 = vmatpush.bf16.msra.mxu1 %v5649_v50  ;;  %2508 = vmatpush.bf16.msra.mxu2 %v5676_v25 }
 0x2e6   :  { %2210 = vmatmul.bf16.gmra.mxu2 %v7665_v8 }
 0x2e8   :  { %2509 = vmatpush.bf16.msra.mxu2 %v5675_v23 }
 0x2ea   :  { %v2244_v14 = vpop.f32.mrf.mxu3 }
 0x2ec   :  { %v2391_v10 = vpop.f32.mrf.mxu0  ;;  %2510 = vmatpush.bf16.msra.mxu2 %v5674_v61 }
 0x2ee   :  { %v5980_v57 = vpop.permute.xlu0 %5979 }
 0x2ef   :  { %v5982_v58 = vunpack.i.h.bf16 %v5980_v57  ;;  %v5981_v28 = vunpack.i.l.bf16 %v5980_v57  ;;  %4902 = vmatmul.msk.bf16.gmra.mxu3 %vm225_vm0, %v7477_v41 }
 0x2f0   :  { %2511 = vmatpush.bf16.msra.mxu2 %v5673_v0  ;;  %v5695_v0 = vld [vmem:[%s9082_s11 + $0x4c] sm:$0xf0] }
 0x2f1   :  { %v2026_v24 = vsel %vm225_vm0, %v7379_v49, %v5981_v28  ;;  %v2027_v52 = vsel %vm225_vm0, %v7433_v38, %v5982_v58 }
 0x2f2   :  { %v2246_v31 = vpop.f32.mrf.mxu3  ;;  %v7683_v13 = vpack.c.bf16 %v2027_v52, %v2026_v24 }
 0x2f4   :  { %v2392_v21 = vpop.f32.mrf.mxu0 }
 0x2f6   :  { %2213 = vmatmul.bf16.gmra.mxu2 %v7683_v13  ;;  %v5990_v3 = vpop.permute.xlu2 %5989 }
 0x2f7   :  { %v5992_v27 = vunpack.i.h.bf16 %v5990_v3  ;;  %v5991_v53 = vunpack.i.l.bf16 %v5990_v3 }
 0x2f9   :  { %v2030_v11 = vsel %vm225_vm0, %v7506_v5, %v5991_v53  ;;  %v5697_v53 = vld [vmem:[%s9082_s11 + $0x64] sm:$0xf] }
 0x2fa   :  { %v2247_v32 = vpop.f32.mrf.mxu3 }
 0x2fc   :  { %v7689_v40 = vpop.f32.mrf.mxu0 }
 0x2ff   :  { %4903 = vmatmul.msk.bf16.gmra.mxu3 %vm225_vm0, %v7534_v54 }
 0x300   :  { %v5985_v41 = vpop.permute.xlu1 %5984 }
 0x301   :  { %v5987_v49 = vunpack.i.h.bf16 %v5985_v41  ;;  %v5986_v38 = vunpack.i.l.bf16 %v5985_v41 }
 0x302   :  { %v2249_v7 = vpop.f32.mrf.mxu3 }
 0x303   :  { %v2028_v30 = vsel %vm225_vm0, %v7447_v17, %v5986_v38  ;;  %v2029_v26 = vsel %vm225_vm0, %v7496_v18, %v5987_v49 }
 0x304   :  { %v7697_v37 = vpack.c.bf16 %v2029_v26, %v2028_v30  ;;  %v2396_v59 = vpop.f32.mrf.mxu0 }
 0x306   :  { %2216 = vmatmul.bf16.gmra.mxu2 %v7697_v37 }
 0x308   :  { %v6000_v29 = vpop.permute.xlu1 %5999 }
 0x309   :  { %v6002_v54 = vunpack.i.h.bf16 %v6000_v29  ;;  %v6001_v15 = vunpack.i.l.bf16 %v6000_v29 }
 0x30a   :  { %v2250_v20 = vpop.f32.mrf.mxu3 }
 0x30b   :  { %v2019_v17 = vsel %vm225_vm0, %v7178_v9, %v6002_v54  ;;  %v2018_v18 = vsel %vm225_vm0, %v7188_v60, %v6001_v15  ;;  %v2031_v9 = vsel %vm225_vm0, %v7542_v56, %v5992_v27 }
 0x30c   :  { %v7707_v6 = vpack.c.bf16 %v2019_v17, %v2018_v18  ;;  %v2398_v51 = vpop.f32.mrf.mxu0  ;;  %v2070_v46 = vpack.c.bf16 %v2031_v9, %v2030_v11  ;;  %v5699_v18 = vld [vmem:[%s9082_s11 + $0x6c] sm:$0xf0]  ;;  %v4961_v11 = vld [vmem:[%s9082_s11 + $0x70] sm:$0xf0]  ;;  %v5698_v9 = vld [vmem:[%s9082_s11 + $0x6c] sm:$0xf] }
 0x30e   :  { %2345 = vmatmul.bf16.vlgmr.msra.gmra.mxu1 %v7707_v6 }
 0x30f   :  { %4904 = vmatmul.msk.bf16.gmra.mxu3 %vm225_vm0, %v7571_v1 }
 0x312   :  { %v7716_v45 = vpop.f32.mrf.mxu3 }
 0x314   :  { %v2399_v60 = vpop.f32.mrf.mxu0 }
 0x315   :  { %v4964_v60 = vor.u32 %v5697_v53, %v4961_v11  ;;  %v4929_v53 = vld [vmem:[%s9082_s11 + $0x30] sm:$0xf0]  ;;  %v5690_v11 = vld [vmem:[%s9082_s11 + $0x2c] sm:$0xf] }
 0x316   :  { %2220 = vmatmul.bf16.gmra.mxu2 %v2070_v46 }
 0x317   :  { %2738 = vmatpush.bf16.msrb.mxu0 %v4964_v60  ;;  %v6008_v60 = vld [vmem:[%s9081_s10] ss:$0 sm:$0xff] }
 0x318   :  { %v5995_v47 = vpop.permute.xlu0 %5994 }
 0x319   :  { %v5997_v1 = vunpack.i.h.bf16 %v5995_v47  ;;  %v5996_v5 = vunpack.i.l.bf16 %v5995_v47 }
 0x31a   :  { %v2254_v16 = vpop.f32.mrf.mxu3 }
 0x31b   :  { %v2032_v56 = vsel %vm225_vm0, %v7557_v48, %v5996_v5  ;;  %v2033_v35 = vsel %vm225_vm0, %v7574_v34, %v5997_v1 }
 0x31c   :  { %v2401_v63 = vpop.f32.mrf.mxu0  ;;  %v2072_v19 = vpack.c.bf16 %v2033_v35, %v2032_v56 }
 0x31e   :  { %2349 = vmatmul.bf16.gmra.mxu1 %v7624_v55 }
 0x31f   :  { %4905 = vmatmul.msk.bf16.gmra.mxu3 %vm225_vm0, %v7604_v42 }
 0x322   :  { %v2256_v22 = vpop.f32.mrf.mxu3 }
 0x323   :  { %v4943_v22 = vld [vmem:[%s9082_s11 + $0x40] sm:$0xf] }
 0x324   :  { %v2402_v4 = vpop.f32.mrf.mxu0 }
 0x326   :  { %2223 = vmatmul.bf16.gmra.mxu2 %v2072_v19 }
 0x32a   :  { %v2257_v36 = vpop.f32.mrf.mxu3 }
 0x32c   :  { %v2404_v12 = vpop.f32.mrf.mxu0 }
 0x32e   :  { %2352 = vmatmul.bf16.gmra.mxu1 %v7641_v62 }
 0x32f   :  { %4906 = vmatmul.msk.bf16.gmra.mxu3 %vm225_vm0, %v7207_v44 }
 0x332   :  { %v2259_v48 = vpop.f32.mrf.mxu3 }
 0x334   :  { %v2405_v42 = vpop.f32.mrf.mxu0 }
 0x336   :  { %2226 = vmatmul.bf16.gmra.mxu2 %v7707_v6 }
 0x33a   :  { %v2260_v34 = vpop.f32.mrf.mxu3 }
 0x33e   :  { %2355 = vmatmul.bf16.gmra.mxu1 %v7665_v8 }
 0x33f   :  { %4907 = vmatmul.msk.bf16.gmra.mxu3 %vm225_vm0, %v7268_v33 }
 0x342   :  { %v2262_v2 = vpop.f32.mrf.mxu3 }
 0x343   :  { %v5693_v2 = vld [vmem:[%s9082_s11 + $0x44] sm:$0xf] }
 0x346   :  { %2512 = vmatmul.bf16.vlgmr.msra.gmra.mxu2 %v7641_v62 }
 0x348   :  { %v2204_v14 = vpop.f32.mrf.mxu2 }
 0x349   :  { %v2240_v41 = vadd.f32 %v7633_v39, %v2204_v14  ;;  %v4959_v39 = vld [vmem:[%s9082_s11 + $0x60] sm:$0xf]  ;;  %v4945_v14 = vld [vmem:[%s9082_s11 + $0x50] sm:$0xf0] }
 0x34a   :  { %v2263_v50 = vpop.f32.mrf.mxu3  ;;  %v4960_v3 = vor.u32 %v5699_v18, %v4959_v39 }
 0x34b   :  { %v5694_v50 = vld [vmem:[%s9082_s11 + $0x4c] sm:$0xf] }
 0x34c   :  { %2725 = vmatpush.bf16.msrb.mxu1 %v4960_v3 }
 0x34e   :  { %2358 = vmatmul.bf16.gmra.mxu1 %v7683_v13 }
 0x350   :  { %v2206_v10 = vpop.f32.mrf.mxu2 }
 0x352   :  { %v7740_v57 = vpop.f32.mrf.mxu3 }
 0x356   :  { %2516 = vmatmul.bf16.gmra.mxu2 %v7665_v8 }
 0x359   :  { %v2208_v44 = vpop.f32.mrf.mxu2 }
 0x35a   :  { %v2550_v58 = vpop.f32.mrf.mxu3  ;;  %v4948_v44 = vor.u32 %v5693_v2, %v4945_v14  ;;  %v4935_v14 = vld [vmem:[%s9082_s11 + $0x28] sm:$0xf] }
 0x35b   :  { %v4953_v58 = vld [vmem:[%s9082_s11 + $0x58] sm:$0xf0] }
 0x35c   :  { %2739 = vmatpush.bf16.msrb.mxu0 %v4948_v44  ;;  %v4919_v44 = vld [vmem:[%s9082_s11 + $0x8] sm:$0xf] }
 0x35e   :  { %2362 = vmatmul.bf16.gmra.mxu1 %v7697_v37 }
 0x361   :  { %v2209_v28 = vpop.f32.mrf.mxu2 }
 0x362   :  { %v2552_v24 = vpop.f32.mrf.mxu3  ;;  %v4956_v28 = vor.u32 %v5694_v50, %v4953_v58  ;;  %v5692_v50 = vld [vmem:[%s9082_s11 + $0x34] sm:$0xf0] }
 0x366   :  { %2519 = vmatmul.bf16.gmra.mxu2 %v7683_v13 }
 0x369   :  { %v2211_v33 = vpop.f32.mrf.mxu2 }
 0x36a   :  { %v2553_v52 = vpop.f32.mrf.mxu3 }
 0x36e   :  { %2365 = vmatmul.bf16.gmra.mxu1 %v2070_v46 }
 0x371   :  { %v2212_v62 = vpop.f32.mrf.mxu2 }
 0x372   :  { %v2555_v31 = vpop.f32.mrf.mxu3 }
 0x376   :  { %2522 = vmatmul.bf16.gmra.mxu2 %v7697_v37 }
 0x379   :  { %v2214_v21 = vpop.f32.mrf.mxu2 }
 0x37a   :  { %v2556_v25 = vpop.f32.mrf.mxu3 }
 0x37e   :  { %2368 = vmatmul.bf16.gmra.mxu1 %v2072_v19 }
 0x381   :  { %v2215_v32 = vpop.f32.mrf.mxu2 }
 0x382   :  { %v2558_v8 = vpop.f32.mrf.mxu3 }
 0x386   :  { %2525 = vmatmul.bf16.gmra.mxu2 %v2070_v46 }
 0x389   :  { %v7747_v49 = vpop.f32.mrf.mxu2 }
 0x38a   :  { %v2559_v30 = vpop.f32.mrf.mxu3 }
 0x38b   :  { %v2346_v38 = vpop.f32.mrf.mxu1 }
 0x38c   :  { %v2347_v13 = vadd.f32 %v2346_v38, %v2240_v41  ;;  %v4927_v41 = vld [vmem:[%s9082_s11 + $0x20] sm:$0xf]  ;;  %v5691_v38 = vld [vmem:[%s9082_s11 + $0x2c] sm:$0xf0] }
 0x38d   :  { %v4928_v30 = vor.u32 %v5691_v38, %v4927_v41 }
 0x38e   :  { %v2382_v48 = vadd.f32 %v7613_v43, %v2347_v13  ;;  %v6185_v43 = vmov 65535  }
 0x391   :  { %v2219_v26 = vpop.f32.mrf.mxu2 }
 0x392   :  { %v7749_v59 = vpop.f32.mrf.mxu3 }
 0x393   :  { %v2348_v7 = vpop.f32.mrf.mxu1 }
 0x396   :  { %2529 = vmatmul.bf16.gmra.mxu2 %v2072_v19  ;;  %v4944_v19 = vor.u32 %v5695_v0, %v4943_v22 }
 0x398   :  { %2726 = vmatpush.bf16.msrb.mxu1 %v4944_v19  ;;  %v4967_v19 = vld [vmem:[%s9082_s11 + $0x68] sm:$0xf] }
 0x399   :  { %v2221_v23 = vpop.f32.mrf.mxu2 }
 0x39a   :  { %v2563_v29 = vpop.f32.mrf.mxu3 }
 0x39b   :  { %v2350_v37 = vpop.f32.mrf.mxu1 }
 0x39c   :  { %2727 = vmatpush.bf16.msrb.mxu1 %v4928_v30 }
 0x3a1   :  { %v2222_v54 = vpop.f32.mrf.mxu2 }
 0x3a2   :  { %v2565_v17 = vpop.f32.mrf.mxu3 }
 0x3a3   :  { %v2351_v15 = vpop.f32.mrf.mxu1  ;;  %v2253_v17 = vadd.f32 %v7716_v45, %v7747_v49  ;;  %v6007_v45 = vld [vmem:[%s9080_s9] ss:$0 sm:$0xff]  ;;  %v4937_v49 = vld [vmem:[%s9082_s11 + $0x38] sm:$0xf0] }
 0x3a6   :  { %2532 = vmatmul.bf16.gmra.mxu2 %v7707_v6  ;;  %v4969_v6 = vld [vmem:[%s9082_s11 + $0x78] sm:$0xf0] }
 0x3a7   :  { %v4972_v46 = vor.u32 %v5698_v9, %v4969_v6  ;;  %v4940_v9 = vor.u32 %v5690_v11, %v4937_v49 }
 0x3a9   :  { %v2224_v20 = vpop.f32.mrf.mxu2  ;;  %2764 = vmatpush.bf16.msrb.mxu2 %v4972_v46  ;;  %v4911_v46 = vld [vmem:[%s9082_s11] sm:$0xf] }
 0x3aa   :  { %v2566_v27 = vpop.f32.mrf.mxu3 }
 0x3ab   :  { %v2353_v51 = vpop.f32.mrf.mxu1  ;;  %v5689_v27 = vld [vmem:[%s9082_s11 + $0x24] sm:$0xf] }
 0x3ad   :  { %2765 = vmatpush.bf16.msrb.mxu2 %v4956_v28  ;;  %v5688_v28 = vld [vmem:[%s9082_s11 + $0x14] sm:$0xf0] }
 0x3b1   :  { %v2225_v61 = vpop.f32.mrf.mxu2  ;;  %2766 = vmatpush.bf16.msrb.mxu2 %v4940_v9 }
 0x3b2   :  { %v2568_v16 = vpop.f32.mrf.mxu3  ;;  %v5687_v61 = vld [vmem:[%s9082_s11 + $0xc] sm:$0xf0] }
 0x3b3   :  { %v2354_v47 = vpop.f32.mrf.mxu1 }
 0x3b4   :  { %v5685_v47 = vld [vmem:[%s9082_s11 + $0x4] sm:$0xf] }
 0x3b6   :  { %2535 = vmatmul.bf16.gmra.mxu2 %v7624_v55  ;;  %v2868_v55 = vld [vmem:[%s9083_s14] sm:$0x3f] }
 0x3b7   :  { %2879 = vst [vmem:[#allocation1] ss:$4 sm:$0xff] %v2868_v55 }
 0x3b9   :  { %v2227_v63 = vpop.f32.mrf.mxu2 }
 0x3ba   :  { %v2569_v5 = vpop.f32.mrf.mxu3 }
 0x3bb   :  { %v2356_v1 = vpop.f32.mrf.mxu1  ;;  %v4913_v5 = vld [vmem:[%s9082_s11 + $0x10] sm:$0xf0] }
 0x3bc   :  { %v4912_v1 = vor.u32 %v5687_v61, %v4911_v46  ;;  %v4916_v22 = vor.u32 %v5685_v47, %v4913_v5  ;;  %v5145_v46 = vld [vmem:[%s9085_s18 + $0x138] sm:$0xf]  ;;  %v5798_v61 = vld [vmem:[%s9085_s18 + $0x140] sm:$0xf0]  ;;  %v5265_v5 = vld [vmem:[%s9085_s18 + $0x228] sm:$0xf] }
 0x3be   :  { %v2880_v62 = vld.sshfl [vmem:[#allocation1] sm:$0xff pattern:$0x73625140]  ;;  %2728 = vmatpush.bf16.msrb.mxu1 %v4912_v1  ;;  %v5771_v1 = vld [vmem:[%s9085_s18 + $0x68] sm:$0xf0] }
 0x3c1   :  { %v2228_v56 = vpop.f32.mrf.mxu2 }
 0x3c2   :  { %v2571_v4 = vpop.f32.mrf.mxu3  ;;  %v5686_v56 = vld [vmem:[%s9082_s11 + $0xc] sm:$0xf] }
 0x3c3   :  { %v2357_v35 = vpop.f32.mrf.mxu1 }
 0x3c4   :  { %v4921_v35 = vld [vmem:[%s9082_s11 + $0x18] sm:$0xf0] }
 0x3c5   :  { %v4924_v0 = vor.u32 %v5686_v56, %v4921_v35  ;;  %v5361_v56 = vld [vmem:[%s9085_s18 + $0x2e8] sm:$0xf]  ;;  %v5828_v35 = vld [vmem:[%s9085_s18 + $0x230] sm:$0xf0] }
 0x3c7   :  { %2767 = vmatpush.bf16.msrb.mxu2 %v4924_v0  ;;  %v5133_v0 = vld [vmem:[%s9085_s18 + $0x120] sm:$0xf] }
 0x3c9   :  { %v2513_v36 = vpop.f32.mrf.mxu2 }
 0x3ca   :  { %v2549_v42 = vadd.f32 %v7740_v57, %v2513_v36  ;;  %v2572_v34 = vpop.f32.mrf.mxu3  ;;  %v2888_v57 = vsel %vm2579_vm5, 4294967295, %v6185_v43  ;;  %v5700_v36 = vld [vmem:[%s9082_s11 + $0x74] sm:$0xf0] }
 0x3cb   :  { %v2359_v12 = vpop.f32.mrf.mxu1  ;;  %v7796_v24 = vsel %vm2887_vm10, %v2888_v57, 0  ;;  %v4968_v55 = vor.u32 %v5700_v36, %v4967_v19  ;;  %v5266_v19 = vor.u32 %v5828_v35, %v5265_v5  ;;  %v5834_v35 = vld [vmem:[%s9085_s18 + $0x260] sm:$0xf0] }
 0x3cc   :  { %v2574_v10 = vadd.f32 %v2549_v42, %v2382_v48  ;;  %v2890_v31 = vand.u32 %v7796_v24, %v2880_v62  ;;  %v2360_v39 = vadd.f32 %v2359_v12, %v2253_v17  ;;  %v4951_v48 = vld [vmem:[%s9082_s11 + $0x48] sm:$0xf]  ;;  %v5696_v42 = vld [vmem:[%s9082_s11 + $0x54] sm:$0xf0] }
 0x3cd   :  { %2751 = vmatpush.bf16.msra.mxu1 %v4968_v55  ;;  %v4952_v2 = vor.u32 %v5696_v42, %v4951_v48  ;;  %v2881_v62 = vld.sshfl [vmem:[#allocation1 + $0x8] sm:$0xff pattern:$0x73625140]  ;;  %v5825_v55 = vld [vmem:[%s9085_s18 + $0x218] sm:$0xf0] }
 0x3ce   :  { %2903 = vmatpush.bf16.msrb.mxu3 %v2890_v31  ;;  %v2395_v3 = vadd.f32 %v7689_v40, %v2360_v39  ;;  %v4932_v40 = vor.u32 %v5689_v27, %v4929_v53  ;;  %v5061_v27 = vld [vmem:[%s9085_s18 + $0x90] sm:$0xf]  ;;  %v5777_v53 = vld [vmem:[%s9085_s18 + $0x98] sm:$0xf0]  ;;  %v5025_v42 = vld [vmem:[%s9085_s18 + $0x48] sm:$0xf] }
 0x3cf   :  { %v5062_v49 = vor.u32 %v5777_v53, %v5061_v27  ;;  %v5837_v27 = vld [vmem:[%s9085_s18 + $0x278] sm:$0xf0] }
 0x3d0   :  { %2740 = vmatpush.bf16.msrb.mxu0 %v4932_v40  ;;  %v5801_v40 = vld [vmem:[%s9085_s18 + $0x158] sm:$0xf0] }
 0x3d1   :  { %v2515_v33 = vpop.f32.mrf.mxu2  ;;  %2752 = vmatpush.bf16.msra.mxu1 %v4952_v2 }
 0x3d2   :  { %v4920_v33 = vor.u32 %v5688_v28, %v4919_v44  ;;  %v5013_v28 = vld [vmem:[%s9085_s18 + $0x30] sm:$0xf] }
 0x3d3   :  { %v2361_v52 = vpop.f32.mrf.mxu1 }
 0x3d4   :  { %2741 = vmatpush.bf16.msrb.mxu0 %v4916_v22  ;;  %v2867_v52 = vld [vmem:[%s9084_s0] sm:$0x3]  ;;  %v5852_v22 = vld [vmem:[%s9085_s18 + $0x2f0] sm:$0xf0] }
 0x3d5   :  { %v5362_v2 = vor.u32 %v5852_v22, %v5361_v56  ;;  %v5289_v56 = vld [vmem:[%s9085_s18 + $0x258] sm:$0xf]  ;;  %v5217_v22 = vld [vmem:[%s9085_s18 + $0x1c8] sm:$0xf] }
 0x3d9   :  { %v2517_v21 = vpop.f32.mrf.mxu2 }
 0x3da   :  { %v7873_v21 = vpack.c.bf16 %v2867_v52, %v2867_v52 }
 0x3db   :  { %v2363_v25 = vpop.f32.mrf.mxu1 }
 0x3dc   :  { %v2892_v25 = vand.u32 %v7796_v24, %v2881_v62  ;;  %4981 = vmatmul.msk.bf16.vlgmr.msrb.gmra.mxu3 %vm2883_vm13, %v7873_v21  ;;  %v5337_v62 = vld [vmem:[%s9085_s18 + $0x2b8] sm:$0xf] }
 0x3de   :  { %2916 = vmatpush.bf16.msra.mxu0 %v2892_v25  ;;  %v5846_v25 = vld [vmem:[%s9085_s18 + $0x2c0] sm:$0xf0] }
 0x3e1   :  { %v2518_v32 = vpop.f32.mrf.mxu2 }
 0x3e3   :  { %v2364_v8 = vpop.f32.mrf.mxu1 }
 0x3e9   :  { %v2520_v13 = vpop.f32.mrf.mxu2 }
 0x3eb   :  { %v2366_v26 = vpop.f32.mrf.mxu1 }
 0x3f1   :  { %v2521_v7 = vpop.f32.mrf.mxu2 }
 0x3f3   :  { %v2367_v23 = vpop.f32.mrf.mxu1 }
 0x3f9   :  { %v2523_v37 = vpop.f32.mrf.mxu2 }
 0x3fa   :  { %v2882_v37 = vld.sshfl [vmem:[#allocation1 + $0x10] sm:$0xff pattern:$0x73625140] }
 0x3fb   :  { %v2369_v29 = vpop.f32.mrf.mxu1  ;;  %v2894_v17 = vand.u32 %v7796_v24, %v2882_v37  ;;  %v5840_v37 = vld [vmem:[%s9085_s18 + $0x290] sm:$0xf0] }
 0x401   :  { %v2524_v54 = vpop.f32.mrf.mxu2 }
 0x403   :  { %v2370_v15 = vpop.f32.mrf.mxu1 }
 0x409   :  { %v2526_v18 = vpop.f32.mrf.mxu2 }
 0x40a   :  { %v2562_v20 = vadd.f32 %v7749_v59, %v2526_v18  ;;  %v5073_v18 = vld [vmem:[%s9085_s18 + $0xa8] sm:$0xf] }
 0x40c   :  { %v2575_v51 = vadd.f32 %v2562_v20, %v2395_v3  ;;  %v5780_v3 = vld [vmem:[%s9085_s18 + $0xb0] sm:$0xf0]  ;;  %v5169_v20 = vld [vmem:[%s9085_s18 + $0x168] sm:$0xf] }
 0x40d   :  { %v5074_v24 = vor.u32 %v5780_v3, %v5073_v18  ;;  %v5241_v3 = vld [vmem:[%s9085_s18 + $0x1f8] sm:$0xf] }
 0x40e   :  { %v2577_v59 = vrot.slane %v2575_v51, 7  ;;  %v5804_v51 = vld [vmem:[%s9085_s18 + $0x170] sm:$0xf0] }
 0x40f   :  { %v5170_v11 = vor.u32 %v5804_v51, %v5169_v20  ;;  %3729 = vmatpush.bf16.msra.mxu2 %v5074_v24  ;;  %v5822_v20 = vld [vmem:[%s9085_s18 + $0x200] sm:$0xf0]  ;;  %v5301_v24 = vld [vmem:[%s9085_s18 + $0x270] sm:$0xf] }
 0x410   :  { %v2580_v6 = vsel %vm2579_vm5, %v2574_v10, %v2577_v59  ;;  %v4936_v10 = vor.u32 %v5692_v50, %v4935_v14  ;;  %v5349_v14 = vld [vmem:[%s9085_s18 + $0x2d0] sm:$0xf]  ;;  %v5242_v51 = vor.u32 %v5822_v20, %v5241_v3  ;;  %v5302_v53 = vor.u32 %v5837_v27, %v5301_v24  ;;  %v5181_v3 = vld [vmem:[%s9085_s18 + $0x180] sm:$0xf]  ;;  %v5807_v20 = vld [vmem:[%s9085_s18 + $0x188] sm:$0xf0] }
 0x411   :  { %v2585_v16 = vadd.f32 %v6007_v45, %v2580_v6  ;;  %v2528_v63 = vpop.f32.mrf.mxu2  ;;  %v5157_v45 = vld [vmem:[%s9085_s18 + $0x150] sm:$0xf]  ;;  %3742 = vmatpush.bf16.msra.mxu3 %v5170_v11  ;;  %v5774_v6 = vld [vmem:[%s9085_s18 + $0x80] sm:$0xf0]  ;;  %v4989_v11 = vld [vmem:[%s9085_s18] sm:$0xf]  ;;  %v5182_v24 = vor.u32 %v5807_v20, %v5181_v3 }
 0x412   :  { %2753 = vmatpush.bf16.msra.mxu1 %v4936_v10  ;;  %v5158_v9 = vor.u32 %v5801_v40, %v5157_v45  ;;  %v5037_v63 = vld [vmem:[%s9085_s18 + $0x60] sm:$0xf]  ;;  %v5849_v10 = vld [vmem:[%s9085_s18 + $0x2d8] sm:$0xf0]  ;;  %v5759_v45 = vld [vmem:[%s9085_s18 + $0x8] sm:$0xf0] }
 0x413   :  { %v2590_v4 = vmul.f32 %v6008_v60, %v2585_v16  ;;  %v5049_v60 = vld [vmem:[%s9085_s18 + $0x78] sm:$0xf]  ;;  %3730 = vmatpush.bf16.msra.mxu2 %v5062_v49  ;;  %v5038_v36 = vor.u32 %v5771_v1, %v5037_v63  ;;  %v5350_v52 = vor.u32 %v5849_v10, %v5349_v14  ;;  %v4990_v40 = vor.u32 %v5759_v45, %v4989_v11  ;;  %v5085_v49 = vld [vmem:[%s9085_s18 + $0xc0] sm:$0xf]  ;;  %v5831_v14 = vld [vmem:[%s9085_s18 + $0x248] sm:$0xf0] }
 0x414   :  { %v5050_v47 = vor.u32 %v5774_v6, %v5049_v60  ;;  %v5819_v6 = vld [vmem:[%s9085_s18 + $0x1e8] sm:$0xf0]  ;;  %v5171_v63 = vld [vmem:[%s9085_s18 + $0x174] sm:$0xf0] }
 0x415   :  { %v4908_v12 = vmul.f32 -1.442695, %v2590_v4  ;;  %3743 = vmatpush.bf16.msra.mxu3 %v5158_v9  ;;  %v5795_v4 = vld [vmem:[%s9085_s18 + $0x128] sm:$0xf0]  ;;  %v5229_v9 = vld [vmem:[%s9085_s18 + $0x1e0] sm:$0xf] }
 0x416   :  { %2754 = vmatpush.bf16.msra.mxu1 %v4920_v33  ;;  %v5134_v50 = vor.u32 %v5795_v4, %v5133_v0  ;;  %v5765_v33 = vld [vmem:[%s9085_s18 + $0x38] sm:$0xf0]  ;;  %v5290_v0 = vor.u32 %v5834_v35, %v5289_v56  ;;  %v5816_v4 = vld [vmem:[%s9085_s18 + $0x1d0] sm:$0xf0]  ;;  %v5363_v10 = vld [vmem:[%s9085_s18 + $0x2f4] sm:$0xf0] }
 0x417   :  { %6138 = vpow2.f32 %v4908_v12  ;;  %3731 = vmatpush.bf16.msra.mxu2 %v5050_v47  ;;  %v5253_v12 = vld [vmem:[%s9085_s18 + $0x210] sm:$0xf]  ;;  %v5075_v47 = vld [vmem:[%s9085_s18 + $0xb4] sm:$0xf0]  ;;  %v5111_v35 = vld [vmem:[%s9085_s18 + $0xfc] sm:$0xf0] }
 0x418   :  { %v5254_v44 = vor.u32 %v5825_v55, %v5253_v12  ;;  %v5218_v12 = vor.u32 %v5816_v4, %v5217_v22  ;;  %v5027_v27 = vld [vmem:[%s9085_s18 + $0x54] sm:$0xf0]  ;;  %v5824_v22 = vld [vmem:[%s9085_s18 + $0x214] sm:$0xf] }
 0x419   :  { %v2530_v34 = vpop.f32.mrf.mxu2  ;;  %v5123_v45 = vld [vmem:[%s9085_s18 + $0x114] sm:$0xf0] }
 0x41a   :  { %v5768_v34 = vld [vmem:[%s9085_s18 + $0x50] sm:$0xf0] }
 0x41b   :  { %3732 = vmatpush.bf16.msra.mxu2 %v5038_v36  ;;  %v5063_v36 = vld [vmem:[%s9085_s18 + $0x9c] sm:$0xf0] }
 0x41d   :  { %v6139_v43 = vpop.eup %6138 }
 0x41e   :  { %v2594_v57 = vadd.f32 1.0, %v6139_v43  ;;  %v5121_v43 = vld [vmem:[%s9085_s18 + $0x108] sm:$0xf] }
 0x420   :  { %6140 = vrcp.f32 %v2594_v57  ;;  %v2606_v38 = vand.u32 2147483648, %v2594_v57  ;;  %v2604_v13 = vand.u32 2147483647, %v2594_v57  ;;  %vm2600_vm7 = vweird.f32 %v2594_v57 }
 0x421   :  { %v2531_v58 = vpop.f32.mrf.mxu2 }
 0x422   :  { %v2607_v7 = vor.u32 1.1754944e-38, %v2606_v38  ;;  %vm2605_vm9 = vcmp.eq.f32.partialorder %v2604_v13, 8.507059e+37  ;;  %v5026_v58 = vor.u32 %v5768_v34, %v5025_v42  ;;  %v5338_v38 = vor.u32 %v5846_v25, %v5337_v62  ;;  %v5325_v13 = vld [vmem:[%s9085_s18 + $0x2a0] sm:$0xf]  ;;  %v5797_v62 = vld [vmem:[%s9085_s18 + $0x13c] sm:$0xf] }
 0x423   :  { %v5159_v42 = vld [vmem:[%s9085_s18 + $0x15c] sm:$0xf0]  ;;  %v5147_v25 = vld [vmem:[%s9085_s18 + $0x144] sm:$0xf0] }
 0x424   :  { %3733 = vmatpush.bf16.msra.mxu2 %v5026_v58  ;;  %v5277_v34 = vld [vmem:[%s9085_s18 + $0x240] sm:$0xf]  ;;  %v5813_v58 = vld [vmem:[%s9085_s18 + $0x1b8] sm:$0xf0] }
 0x426   :  { %v6141_v31 = vpop.eup %6140 }
 0x427   :  { %v2596_v32 = vmul.f32 %v6141_v31, %v2594_v57  ;;  %vm2601_vm6 = vweird.f32 %v6141_v31  ;;  %v5792_v57 = vld [vmem:[%s9085_s18 + $0x110] sm:$0xf0] }
 0x428   :  { %vm2602_vm8 = vmor %vm2600_vm7, %vm2601_vm6 }
 0x429   :  { %v2597_v8 = vsub.f32 1.0, %v2596_v32  ;;  %v2533_v41 = vpop.f32.mrf.mxu2  ;;  %v5109_v32 = vld [vmem:[%s9085_s18 + $0xf0] sm:$0xf] }
 0x42a   :  { %v5014_v41 = vor.u32 %v5765_v33, %v5013_v28  ;;  %v5773_v33 = vld [vmem:[%s9085_s18 + $0x7c] sm:$0xf] }
 0x42b   :  { %v2598_v30 = vmul.f32 %v6141_v31, %v2597_v8  ;;  %v5789_v8 = vld [vmem:[%s9085_s18 + $0xf8] sm:$0xf0] }
 0x42c   :  { %3734 = vmatpush.bf16.msra.mxu2 %v5014_v41  ;;  %v5351_v41 = vld [vmem:[%s9085_s18 + $0x2dc] sm:$0xf0] }
 0x42d   :  { %v2599_v26 = vadd.f32 %v6141_v31, %v2598_v30  ;;  %v5110_v30 = vor.u32 %v5789_v8, %v5109_v32  ;;  %v5150_v32 = vor.u32 %v5797_v62, %v5147_v25  ;;  %v5848_v8 = vld [vmem:[%s9085_s18 + $0x2d4] sm:$0xf]  ;;  %v5243_v62 = vld [vmem:[%s9085_s18 + $0x204] sm:$0xf0] }
 0x42f   :  { %v2603_v23 = vsel %vm2602_vm8, %v6141_v31, %v2599_v26  ;;  %v5122_v31 = vor.u32 %v5792_v57, %v5121_v43  ;;  %v5843_v26 = vld [vmem:[%s9085_s18 + $0x2a8] sm:$0xf0]  ;;  %v5278_v43 = vor.u32 %v5831_v14, %v5277_v34  ;;  %v5761_v14 = vld [vmem:[%s9085_s18 + $0x1c] sm:$0xf] }
 0x430   :  { %v2608_v29 = vsel %vm2605_vm9, %v2607_v7, %v2603_v23  ;;  %v5326_v7 = vor.u32 %v5843_v26, %v5325_v13  ;;  %v5313_v23 = vld [vmem:[%s9085_s18 + $0x288] sm:$0xf]  ;;  %v5810_v13 = vld [vmem:[%s9085_s18 + $0x1a0] sm:$0xf0] }
 0x431   :  { %v2610_v54 = vmul.f32 %v2608_v29, %v2585_v16  ;;  %v2534_v15 = vpop.f32.mrf.mxu2  ;;  %v5146_v16 = vor.u32 %v5798_v61, %v5145_v46  ;;  %v5314_v29 = vor.u32 %v5840_v37, %v5313_v23  ;;  %v5779_v46 = vld [vmem:[%s9085_s18 + $0xac] sm:$0xf]  ;;  %v5230_v61 = vor.u32 %v5819_v6, %v5229_v9  ;;  %v5039_v23 = vld [vmem:[%s9085_s18 + $0x6c] sm:$0xf0]  ;;  %v5794_v37 = vld [vmem:[%s9085_s18 + $0x124] sm:$0xf] }
 0x432   :  { %v5762_v15 = vld [vmem:[%s9085_s18 + $0x20] sm:$0xf0]  ;;  %v5078_v1 = vor.u32 %v5779_v46, %v5075_v47  ;;  %v5327_v6 = vld [vmem:[%s9085_s18 + $0x2ac] sm:$0xf0] }
 0x433   :  { %v2627_v39 = vpack.c.bf16 %v2610_v54, %v2610_v54  ;;  %3744 = vmatpush.bf16.msra.mxu3 %v5146_v16  ;;  %v5001_v54 = vld [vmem:[%s9085_s18 + $0x18] sm:$0xf]  ;;  %v5803_v16 = vld [vmem:[%s9085_s18 + $0x16c] sm:$0xf] }
 0x434   :  { %v5174_v5 = vor.u32 %v5803_v16, %v5171_v63  ;;  %v5764_v63 = vld [vmem:[%s9085_s18 + $0x34] sm:$0xf] }
 0x435   :  { %4973 = vmatmul.msk.bf16.vlgmr.msrb.gmra.mxu1 %vm225_vm0, %v2627_v39  ;;  %4974 = vmatmul.msk.bf16.vlgmr.msrb.gmra.mxu0 %vm225_vm0, %v2627_v39 }
 0x436   :  { %4976 = vmatmul.msk.bf16.vlgmr.msrb.gmra.mxu2 %vm225_vm0, %v2627_v39  ;;  %2929 = vmatpush.bf16.msrb.mxu1 %v2894_v17  ;;  %v5002_v17 = vor.u32 %v5762_v15, %v5001_v54  ;;  %v5135_v54 = vld [vmem:[%s9085_s18 + $0x12c] sm:$0xf0] }
 0x437   :  { %3755 = vmatpush.bf16.msrb.mxu0 %v5266_v19  ;;  %3745 = vmatpush.bf16.msra.mxu3 %v5134_v50  ;;  %v5776_v19 = vld [vmem:[%s9085_s18 + $0x94] sm:$0xf]  ;;  %v5851_v50 = vld [vmem:[%s9085_s18 + $0x2ec] sm:$0xf]  ;;  %v5138_v15 = vor.u32 %v5794_v37, %v5135_v54  ;;  %v5087_v54 = vld [vmem:[%s9085_s18 + $0xcc] sm:$0xf0] }
 0x438   :  { %3735 = vmatpush.bf16.msra.mxu2 %v5002_v17  ;;  %v5066_v55 = vor.u32 %v5776_v19, %v5063_v36  ;;  %v5366_v57 = vor.u32 %v5851_v50, %v5363_v10  ;;  %v5845_v17 = vld [vmem:[%s9085_s18 + $0x2bc] sm:$0xf]  ;;  %v5839_v36 = vld [vmem:[%s9085_s18 + $0x28c] sm:$0xf]  ;;  %v5003_v50 = vld [vmem:[%s9085_s18 + $0x24] sm:$0xf0] }
 0x439   :  { %v2536_v59 = vpop.f32.mrf.mxu2 }
 0x43a   :  { %v5783_v59 = vld [vmem:[%s9085_s18 + $0xc8] sm:$0xf0] }
 0x43b   :  { %3756 = vmatpush.bf16.msrb.mxu0 %v5254_v44  ;;  %3746 = vmatpush.bf16.msra.mxu3 %v5122_v31  ;;  %v5086_v60 = vor.u32 %v5783_v59, %v5085_v49  ;;  %v5205_v44 = vld [vmem:[%s9085_s18 + $0x1b0] sm:$0xf]  ;;  %v5267_v49 = vld [vmem:[%s9085_s18 + $0x234] sm:$0xf0] }
 0x43c   :  { %3736 = vmatpush.bf16.msra.mxu2 %v4990_v40  ;;  %v5206_v28 = vor.u32 %v5813_v58, %v5205_v44  ;;  %v5827_v40 = vld [vmem:[%s9085_s18 + $0x22c] sm:$0xf]  ;;  %v5785_v44 = vld [vmem:[%s9085_s18 + $0xdc] sm:$0xf]  ;;  %v5099_v58 = vld [vmem:[%s9085_s18 + $0xe4] sm:$0xf0] }
 0x43d   :  { %v5270_v9 = vor.u32 %v5827_v40, %v5267_v49  ;;  %v5815_v40 = vld [vmem:[%s9085_s18 + $0x1cc] sm:$0xf]  ;;  %v5219_v49 = vld [vmem:[%s9085_s18 + $0x1d4] sm:$0xf0] }
 0x43f   :  { %3747 = vmatpush.bf16.msra.mxu3 %v5110_v30  ;;  %3757 = vmatpush.bf16.msrb.mxu0 %v5242_v51  ;;  %v5193_v30 = vld [vmem:[%s9085_s18 + $0x198] sm:$0xf]  ;;  %v5767_v51 = vld [vmem:[%s9085_s18 + $0x4c] sm:$0xf] }
 0x440   :  { %3781 = vmatpush.bf16.msrb.mxu2 %v5078_v1  ;;  %v5194_v26 = vor.u32 %v5810_v13, %v5193_v30  ;;  %v5030_v11 = vor.u32 %v5767_v51, %v5027_v27  ;;  %v5015_v1 = vld [vmem:[%s9085_s18 + $0x3c] sm:$0xf0]  ;;  %v5758_v13 = vld [vmem:[%s9085_s18 + $0x4] sm:$0xf] }
 0x441   :  { %v2537_v48 = vpop.f32.mrf.mxu2  ;;  %v5018_v56 = vor.u32 %v5764_v63, %v5015_v1  ;;  %v5812_v63 = vld [vmem:[%s9085_s18 + $0x1b4] sm:$0xf] }
 0x442   :  { %v5800_v48 = vld [vmem:[%s9085_s18 + $0x154] sm:$0xf] }
 0x443   :  { %3758 = vmatpush.bf16.msrb.mxu0 %v5230_v61  ;;  %v8178_v61 = vld [vmem:[%s9087_s13] sm:$0xf] }
 0x444   :  { %3782 = vmatpush.bf16.msrb.mxu2 %v5066_v55  ;;  %v2775_v55 = vperm.slane %v8178_v61, 0 }
 0x445   :  { %4975 = vmatmul.msk.bf16.vlgmr.msra.gmra.mxu1 %vm225_vm0, %v2627_v39  ;;  %4982 = vmatmul.msk.bf16.vlgmr.msra.gmra.mxu0 %vm2883_vm13, %v7873_v21  ;;  %v5786_v39 = vld [vmem:[%s9085_s18 + $0xe0] sm:$0xf0] }
 0x446   :  { %3768 = vmatpush.bf16.msra.mxu1 %v5362_v2  ;;  %v5162_v2 = vor.u32 %v5800_v48, %v5159_v42  ;;  %v2776_v48 = vperm.slane %v8178_v61, 1 }
 0x447   :  { %3759 = vmatpush.bf16.msrb.mxu0 %v5218_v12  ;;  %v5315_v12 = vld [vmem:[%s9085_s18 + $0x294] sm:$0xf0] }
 0x448   :  { %v5318_v42 = vor.u32 %v5839_v36, %v5315_v12  ;;  %v2777_v12 = vperm.slane %v8178_v61, 2 }
 0x44a   :  { %3769 = vmatpush.bf16.msra.mxu1 %v5350_v52  ;;  %v5051_v52 = vld [vmem:[%s9085_s18 + $0x84] sm:$0xf0] }
 0x44b   :  { %v5054_v31 = vor.u32 %v5773_v33, %v5051_v52  ;;  %3760 = vmatpush.bf16.msrb.mxu0 %v5206_v28  ;;  %v5102_v33 = vor.u32 %v5785_v44, %v5099_v58  ;;  %v5821_v52 = vld [vmem:[%s9085_s18 + $0x1fc] sm:$0xf] }
 0x44d   :  { %3783 = vmatpush.bf16.msrb.mxu2 %v5054_v31 }
 0x44e   :  { %3770 = vmatpush.bf16.msra.mxu1 %v5338_v38  ;;  %v5354_v38 = vor.u32 %v5848_v8, %v5351_v41  ;;  %v5836_v8 = vld [vmem:[%s9085_s18 + $0x274] sm:$0xf]  ;;  %v5303_v41 = vld [vmem:[%s9085_s18 + $0x27c] sm:$0xf0] }
 0x44f   :  { %3761 = vmatpush.bf16.msrb.mxu0 %v5194_v26  ;;  %v5306_v30 = vor.u32 %v5836_v8, %v5303_v41  ;;  %v4991_v26 = vld [vmem:[%s9085_s18 + $0xc] sm:$0xf0] }
 0x452   :  { %3771 = vmatpush.bf16.msra.mxu1 %v5326_v7  ;;  %v5770_v7 = vld [vmem:[%s9085_s18 + $0x64] sm:$0xf] }
 0x453   :  { %3762 = vmatpush.bf16.msrb.mxu0 %v5182_v24 }
 0x455   :  { %4983 = vmatmul.msk.bf16.vlgmr.msrb.gmra.mxu1 %vm2883_vm13, %v7873_v21  ;;  %v5097_v21 = vld [vmem:[%s9085_s18 + $0xd8] sm:$0xf] }
 0x456   :  { %3772 = vmatpush.bf16.msra.mxu1 %v5314_v29  ;;  %v5098_v18 = vor.u32 %v5786_v39, %v5097_v21  ;;  %v5042_v29 = vor.u32 %v5770_v7, %v5039_v23  ;;  %v5339_v21 = vld [vmem:[%s9085_s18 + $0x2c4] sm:$0xf0]  ;;  %v8142_v39 = vld [vmem:[%s9086_s12] sm:$0xf]  ;;  %v5782_v7 = vld [vmem:[%s9085_s18 + $0xc4] sm:$0xf] }
 0x457   :  { %v2630_v46 = vperm.slane %v8142_v39, 0  ;;  %v2631_v47 = vperm.slane %v8142_v39, 1  ;;  %3807 = vmatpush.bf16.msra.mxu0 %v5270_v9  ;;  %v5222_v9 = vor.u32 %v5815_v40, %v5219_v49 }
 0x458   :  { %3748 = vmatpush.bf16.msra.mxu3 %v5098_v18  ;;  %v5342_v18 = vor.u32 %v5845_v17, %v5339_v21  ;;  %3784 = vmatpush.bf16.msrb.mxu2 %v5042_v29  ;;  %v4994_v29 = vor.u32 %v5758_v13, %v4991_v26  ;;  %v5090_v17 = vor.u32 %v5782_v7, %v5087_v54  ;;  %v5818_v21 = vld [vmem:[%s9085_s18 + $0x1e4] sm:$0xf] }
 0x45a   :  { %3773 = vmatpush.bf16.msra.mxu1 %v5302_v53  ;;  %v5791_v53 = vld [vmem:[%s9085_s18 + $0x10c] sm:$0xf] }
 0x45b   :  { %v5126_v59 = vor.u32 %v5791_v53, %v5123_v45  ;;  %v5833_v53 = vld [vmem:[%s9085_s18 + $0x25c] sm:$0xf] }
 0x45c   :  { %3749 = vmatpush.bf16.msra.mxu3 %v5086_v60  ;;  %v5842_v60 = vld [vmem:[%s9085_s18 + $0x2a4] sm:$0xf]  ;;  %3785 = vmatpush.bf16.msrb.mxu2 %v5030_v11  ;;  %v5291_v11 = vld [vmem:[%s9085_s18 + $0x264] sm:$0xf0] }
 0x45d   :  { %v5330_v16 = vor.u32 %v5842_v60, %v5327_v6  ;;  %v5294_v45 = vor.u32 %v5833_v53, %v5291_v11  ;;  %v5830_v6 = vld [vmem:[%s9085_s18 + $0x244] sm:$0xf] }
 0x45e   :  { %3774 = vmatpush.bf16.msra.mxu1 %v5290_v0  ;;  %v5255_v0 = vld [vmem:[%s9085_s18 + $0x21c] sm:$0xf0] }
 0x45f   :  { %v5258_v19 = vor.u32 %v5824_v22, %v5255_v0  ;;  %v8223_v28 = vpop.f32.mrf.mxu3  ;;  %v2632_v22 = vperm.slane %v8142_v39, 2 }
 0x460   :  { %3794 = vmatpush.bf16.msrb.mxu3 %v5174_v5  ;;  %v5788_v5 = vld [vmem:[%s9085_s18 + $0xf4] sm:$0xf]  ;;  %3786 = vmatpush.bf16.msrb.mxu2 %v5018_v56 }
 0x461   :  { %v5114_v4 = vor.u32 %v5788_v5, %v5111_v35  ;;  %3808 = vmatpush.bf16.msra.mxu0 %v5258_v19  ;;  %v5207_v5 = vld [vmem:[%s9085_s18 + $0x1bc] sm:$0xf0] }
 0x462   :  { %3775 = vmatpush.bf16.msra.mxu1 %v5278_v43  ;;  %v5210_v0 = vor.u32 %v5812_v63, %v5207_v5 }
 0x464   :  { %3795 = vmatpush.bf16.msrb.mxu3 %v5162_v2 }
 0x466   :  { %3820 = vmatpush.bf16.msrb.mxu1 %v5366_v57  ;;  %v5006_v57 = vor.u32 %v5761_v14, %v5003_v50 }
 0x467   :  { %v2907_v60 = vpop.f32.mrf.mxu3 }
 0x468   :  { %3796 = vmatpush.bf16.msrb.mxu3 %v5150_v32  ;;  %v2633_v32 = vperm.slane %v8142_v39, 3  ;;  %3787 = vmatpush.bf16.msrb.mxu2 %v5006_v57  ;;  %v8301_v39 = vld [vmem:[%s9088_s15] sm:$0x7] }
 0x469   :  { %v2872_v44 = vperm.slane %v8301_v39, 0 }
 0x46a   :  { %3821 = vmatpush.bf16.msrb.mxu1 %v5354_v38  ;;  %v5246_v38 = vor.u32 %v5821_v52, %v5243_v62 }
 0x46b   :  { %v8334_v7 = vadd.f32 %v8223_v28, %v2872_v44 }
 0x46c   :  { %3797 = vmatpush.bf16.msrb.mxu3 %v5138_v15  ;;  %v2778_v15 = vperm.slane %v8178_v61, 3  ;;  %3809 = vmatpush.bf16.msra.mxu0 %v5246_v38  ;;  %v5195_v61 = vld [vmem:[%s9085_s18 + $0x1a4] sm:$0xf0] }
 0x46d   :  { %3788 = vmatpush.bf16.msrb.mxu2 %v4994_v29 }
 0x46e   :  { %3822 = vmatpush.bf16.msrb.mxu1 %v5342_v18  ;;  %v5231_v18 = vld [vmem:[%s9085_s18 + $0x1ec] sm:$0xf0] }
 0x46f   :  { %v5234_v20 = vor.u32 %v5818_v21, %v5231_v18 }
 0x470   :  { %3798 = vmatpush.bf16.msrb.mxu3 %v5126_v59 }
 0x471   :  { %3810 = vmatpush.bf16.msra.mxu0 %v5234_v20  ;;  %v2873_v20 = vperm.slane %v8301_v39, 1 }
 0x472   :  { %3823 = vmatpush.bf16.msrb.mxu1 %v5330_v16 }
 0x474   :  { %3799 = vmatpush.bf16.msrb.mxu3 %v5114_v4 }
 0x475   :  { %3811 = vmatpush.bf16.msra.mxu0 %v5222_v9 }
 0x476   :  { %3824 = vmatpush.bf16.msrb.mxu1 %v5318_v42  ;;  %v5809_v42 = vld [vmem:[%s9085_s18 + $0x19c] sm:$0xf] }
 0x477   :  { %v5198_v58 = vor.u32 %v5809_v42, %v5195_v61  ;;  %v5165_v42 = vld [vmem:[%s9085_s18 + $0x158] sm:$0xf]  ;;  %v5802_v61 = vld [vmem:[%s9085_s18 + $0x160] sm:$0xf0] }
 0x478   :  { %3800 = vmatpush.bf16.msrb.mxu3 %v5102_v33 }
 0x479   :  { %3812 = vmatpush.bf16.msra.mxu0 %v5210_v0 }
 0x47a   :  { %3825 = vmatpush.bf16.msrb.mxu1 %v5306_v30  ;;  %v8330_v30 = vld [vmem:[%s9085_s18 + $0xb8] sm:$0xf0] }
 0x47c   :  { %3801 = vmatpush.bf16.msrb.mxu3 %v5090_v17 }
 0x47d   :  { %3813 = vmatpush.bf16.msra.mxu0 %v5198_v58  ;;  %v5369_v58 = vld [vmem:[%s9085_s18 + $0x2f0] sm:$0xf] }
 0x47e   :  { %3826 = vmatpush.bf16.msrb.mxu1 %v5294_v45 }
 0x4b2   :  { %v2730_v34 = vpop.f32.mrf.mxu1  ;;  %v2743_v2 = vpop.f32.mrf.mxu0 }
 0x4b3   :  { %v8213_v10 = vadd.f32 %v2730_v34, %v2630_v46  ;;  %v8215_v43 = vadd.f32 %v2743_v2, %v2631_v47  ;;  %v5279_v46 = vld [vmem:[%s9085_s18 + $0x24c] sm:$0xf0] }
 0x4b4   :  { %v5282_v16 = vor.u32 %v5830_v6, %v5279_v46  ;;  %v5177_v46 = vld [vmem:[%s9085_s18 + $0x170] sm:$0xf] }
 0x4b5   :  { %v2783_v31 = vmul.f32 %v2775_v55, %v8213_v10  ;;  %v2784_v25 = vmul.f32 %v2776_v48, %v8215_v43 }
 0x4b6   :  { %3827 = vmatpush.bf16.msrb.mxu1 %v5282_v16 }
 0x4b7   :  { %v4977_v23 = vmul.f32 -1.442695, %v2783_v31  ;;  %v4978_v37 = vmul.f32 -1.442695, %v2784_v25  ;;  %v8319_v25 = vld [vmem:[%s9089_s16] sm:$0x7] }
 0x4b8   :  { %v2937_v21 = vperm.slane %v8319_v25, 0 }
 0x4b9   :  { %6142 = vpow2.f32 %v4977_v23  ;;  %v2769_v3 = vpop.f32.mrf.mxu2  ;;  %v5806_v23 = vld [vmem:[%s9085_s18 + $0x184] sm:$0xf] }
 0x4ba   :  { %6144 = vpow2.f32 %v4978_v37  ;;  %v8259_v24 = vadd.f32 %v2769_v3, %v2633_v32  ;;  %v2732_v51 = vpop.f32.mrf.mxu1  ;;  %v2745_v27 = vpop.f32.mrf.mxu0  ;;  %v8324_v32 = vld [vmem:[%s9085_s18 + $0xb0] sm:$0xf] }
 0x4bb   :  { %v5183_v37 = vld [vmem:[%s9085_s18 + $0x18c] sm:$0xf0]  ;;  %v5082_v28 = vor.u32 %v8330_v30, %v8324_v32 }
 0x4bc   :  { %v2786_v59 = vmul.f32 %v2778_v15, %v8259_v24  ;;  %v5186_v51 = vor.u32 %v5806_v23, %v5183_v37  ;;  %v2939_v37 = vperm.slane %v8319_v25, 2 }
 0x4be   :  { %v4980_v47 = vmul.f32 -1.442695, %v2786_v59  ;;  %3814 = vmatpush.bf16.msra.mxu0 %v5186_v51 }
 0x4bf   :  { %v6143_v1 = vpop.eup %6142 }
 0x4c0   :  { %v6145_v56 = vpop.eup %6144  ;;  %v8286_v35 = vadd.f32 1.0, %v6143_v1  ;;  %6146 = vpow2.f32 %v4980_v47  ;;  %v5805_v47 = vld [vmem:[%s9085_s18 + $0x178] sm:$0xf0] }
 0x4c1   :  { %v8289_v4 = vadd.f32 1.0, %v6145_v56  ;;  %v2771_v19 = vpop.f32.mrf.mxu2 }
 0x4c2   :  { %6148 = vrcp.f32 %v8286_v35  ;;  %v2756_v36 = vpop.f32.mrf.mxu1  ;;  %v8293_v55 = vpop.f32.mrf.mxu0  ;;  %v2812_v38 = vand.u32 2147483647, %v8286_v35  ;;  %v2814_v13 = vand.u32 2147483648, %v8286_v35  ;;  %vm2808_vm14 = vweird.f32 %v8286_v35  ;;  %v5069_v19 = vld [vmem:[%s9085_s18 + $0x98] sm:$0xf] }
 0x4c3   :  { %6150 = vrcp.f32 %v8289_v4  ;;  %v8296_v48 = vadd.f32 %v2756_v36, %v2632_v22  ;;  %v2827_v54 = vand.u32 2147483647, %v8289_v4  ;;  %v2829_v15 = vand.u32 2147483648, %v8289_v4 }
 0x4c4   :  { %v2815_v27 = vor.u32 1.1754944e-38, %v2814_v13  ;;  %vm2823_vm1 = vweird.f32 %v8289_v4  ;;  %vm2813_vm2 = vcmp.eq.f32.partialorder %v2812_v38, 8.507059e+37  ;;  %v2938_v36 = vperm.slane %v8319_v25, 1  ;;  %v5799_v38 = vld [vmem:[%s9085_s18 + $0x148] sm:$0xf0] }
 0x4c5   :  { %v2785_v2 = vmul.f32 %v2777_v12, %v8296_v48  ;;  %vm2828_vm4 = vcmp.eq.f32.partialorder %v2827_v54, 8.507059e+37  ;;  %v2830_v49 = vor.u32 1.1754944e-38, %v2829_v15 }
 0x4c6   :  { %v6147_v34 = vpop.eup %6146 }
 0x4c7   :  { %v8310_v14 = vadd.f32 1.0, %v6147_v34  ;;  %v4979_v57 = vmul.f32 -1.442695, %v2785_v2  ;;  %v8384_v34 = vadd.f32 %v8293_v55, %v2873_v20  ;;  %v5853_v55 = vld [vmem:[%s9085_s18 + $0x2f8] sm:$0xf0] }
 0x4c8   :  { %v6149_v50 = vpop.eup %6148 }
 0x4c9   :  { %v6151_v33 = vpop.eup %6150  ;;  %v2804_v52 = vmul.f32 %v6149_v50, %v8286_v35  ;;  %6152 = vrcp.f32 %v8310_v14  ;;  %vm2809_vm0 = vweird.f32 %v6149_v50  ;;  %v2857_v5 = vand.u32 2147483647, %v8310_v14 }
 0x4ca   :  { %v2819_v62 = vmul.f32 %v6151_v33, %v8289_v4  ;;  %v2758_v31 = vpop.f32.mrf.mxu1  ;;  %v2920_v8 = vpop.f32.mrf.mxu0  ;;  %6154 = vpow2.f32 %v4979_v57  ;;  %vm2824_vm12 = vweird.f32 %v6151_v33  ;;  %vm2810_vm15 = vmor %vm2808_vm14, %vm2809_vm0  ;;  %v2859_v56 = vand.u32 2147483648, %v8310_v14 }
 0x4cb   :  { %v2805_v41 = vsub.f32 1.0, %v2804_v52  ;;  %vm2825_vm3 = vmor %vm2823_vm1, %vm2824_vm12  ;;  %v5178_v4 = vor.u32 %v5805_v47, %v5177_v46  ;;  %vm2853_vm13 = vweird.f32 %v8310_v14  ;;  %vm2858_vm7 = vcmp.eq.f32.partialorder %v2857_v5, 8.507059e+37  ;;  %v5033_v47 = vld [vmem:[%s9085_s18 + $0x50] sm:$0xf] }
 0x4cc   :  { %v2820_v26 = vsub.f32 1.0, %v2819_v62  ;;  %v2860_v2 = vor.u32 1.1754944e-38, %v2859_v56  ;;  %v5166_v52 = vor.u32 %v5802_v61, %v5165_v42  ;;  %v5775_v62 = vld [vmem:[%s9085_s18 + $0x88] sm:$0xf0]  ;;  %v2944_v8 = vmul.f32 %v2938_v36, %v8384_v34  ;;  %v5273_v5 = vld [vmem:[%s9085_s18 + $0x230] sm:$0xf] }
 0x4cd   :  { %v2806_v29 = vmul.f32 %v6149_v50, %v2805_v41  ;;  %v5153_v41 = vld [vmem:[%s9085_s18 + $0x140] sm:$0xf]  ;;  %v5333_v36 = vld [vmem:[%s9085_s18 + $0x2a8] sm:$0xf] }
 0x4ce   :  { %v2821_v17 = vmul.f32 %v6151_v33, %v2820_v26  ;;  %v5370_v26 = vor.u32 %v5853_v55, %v5369_v58  ;;  %v5154_v25 = vor.u32 %v5799_v38, %v5153_v41  ;;  %v4985_v51 = vmul.f32 -1.442695, %v2944_v8  ;;  %v5009_v41 = vld [vmem:[%s9085_s18 + $0x20] sm:$0xf]  ;;  %v5763_v38 = vld [vmem:[%s9085_s18 + $0x28] sm:$0xf0] }
 0x4cf   :  { %v6153_v18 = vpop.eup %6152  ;;  %v2807_v3 = vadd.f32 %v6149_v50, %v2806_v29  ;;  %v5850_v29 = vld [vmem:[%s9085_s18 + $0x2e0] sm:$0xf0] }
 0x4d0   :  { %v2822_v53 = vadd.f32 %v6151_v33, %v2821_v17  ;;  %v2849_v11 = vmul.f32 %v6153_v18, %v8310_v14  ;;  %v6155_v45 = vpop.eup %6154  ;;  %vm2854_vm5 = vweird.f32 %v6153_v18  ;;  %v2943_v14 = vmul.f32 %v2937_v21, %v8334_v7  ;;  %v5045_v21 = vld [vmem:[%s9085_s18 + $0x68] sm:$0xf] }
 0x4d1   :  { %v2811_v40 = vsel %vm2810_vm15, %v6149_v50, %v2807_v3  ;;  %v8352_v6 = vadd.f32 1.0, %v6155_v45  ;;  %vm2855_vm6 = vmor %vm2853_vm13, %vm2854_vm5  ;;  %v2874_v50 = vperm.slane %v8301_v39, 2  ;;  %v5057_v39 = vld [vmem:[%s9085_s18 + $0x80] sm:$0xf]  ;;  %v5141_v3 = vld [vmem:[%s9085_s18 + $0x128] sm:$0xf] }
 0x4d2   :  { %v2816_v59 = vsel %vm2813_vm2, %v2815_v27, %v2811_v40  ;;  %v2826_v9 = vsel %vm2825_vm3, %v6151_v33, %v2822_v53  ;;  %v2850_v60 = vsub.f32 1.0, %v2849_v11  ;;  %v2931_v16 = vpop.f32.mrf.mxu1  ;;  %v4984_v15 = vmul.f32 -1.442695, %v2943_v14  ;;  %v5796_v53 = vld [vmem:[%s9085_s18 + $0x130] sm:$0xf0] }
 0x4d3   :  { %v2863_v63 = vmul.f32 %v2816_v59, %v8213_v10  ;;  %v2831_v1 = vsel %vm2828_vm4, %v2830_v49, %v2826_v9  ;;  %6156 = vrcp.f32 %v8352_v6  ;;  %v5778_v10 = vld [vmem:[%s9085_s18 + $0xa0] sm:$0xf0]  ;;  %v8411_v23 = vadd.f32 %v2931_v16, %v2874_v50  ;;  %v5345_v59 = vld [vmem:[%s9085_s18 + $0x2c0] sm:$0xf]  ;;  %v5847_v9 = vld [vmem:[%s9085_s18 + $0x2c8] sm:$0xf0] }
 0x4d4   :  { %v2864_v35 = vmul.f32 %v2831_v1, %v8215_v43  ;;  %v2851_v22 = vmul.f32 %v6153_v18, %v2850_v60  ;;  %v5070_v44 = vor.u32 %v5778_v10, %v5069_v19  ;;  %v5058_v17 = vor.u32 %v5775_v62, %v5057_v39  ;;  %v5769_v16 = vld [vmem:[%s9085_s18 + $0x58] sm:$0xf0]  ;;  %v5766_v50 = vld [vmem:[%s9085_s18 + $0x40] sm:$0xf0]  ;;  %v5117_v14 = vld [vmem:[%s9085_s18 + $0xf8] sm:$0xf] }
 0x4d5   :  { %v8365_v0 = vpack.c.bf16 %v2863_v63, %v2863_v63  ;;  %v2844_v20 = vand.u32 2147483648, %v8352_v6  ;;  %v2842_v45 = vand.u32 2147483647, %v8352_v6  ;;  %v2945_v40 = vmul.f32 %v2939_v37, %v8411_v23  ;;  %v5129_v63 = vld [vmem:[%s9085_s18 + $0x110] sm:$0xf] }
 0x4d6   :  { %v8374_v12 = vpack.c.bf16 %v2864_v35, %v2864_v35  ;;  %v2852_v43 = vadd.f32 %v6153_v18, %v2851_v22  ;;  %vm2838_vm9 = vweird.f32 %v8352_v6  ;;  %6158 = vpow2.f32 %v4984_v15  ;;  %v5787_v37 = vld [vmem:[%s9085_s18 + $0xe8] sm:$0xf0]  ;;  %v5249_v15 = vld [vmem:[%s9085_s18 + $0x200] sm:$0xf] }
 0x4d7   :  { %3737 = vmatmul.bf16.vlgmr.msra.gmra.mxu2 %v8365_v0  ;;  %v5142_v46 = vor.u32 %v5796_v53, %v5141_v3  ;;  %v2845_v1 = vor.u32 1.1754944e-38, %v2844_v20  ;;  %6160 = vpow2.f32 %v4985_v51  ;;  %vm2843_vm12 = vcmp.eq.f32.partialorder %v2842_v45, 8.507059e+37  ;;  %v5760_v51 = vld [vmem:[%s9085_s18 + $0x10] sm:$0xf0]  ;;  %v5237_v45 = vld [vmem:[%s9085_s18 + $0x1e8] sm:$0xf] }
 0x4d8   :  { %v2856_v57 = vsel %vm2855_vm6, %v6153_v18, %v2852_v43  ;;  %3750 = vmatmul.bf16.vlgmr.msra.gmra.mxu3 %v8374_v12  ;;  %3833 = vmatpush.bf16.msra.mxu2 %v5082_v28  ;;  %v5772_v18 = vld [vmem:[%s9085_s18 + $0x70] sm:$0xf0]  ;;  %v4986_v35 = vmul.f32 -1.442695, %v2945_v40  ;;  %v5346_v22 = vor.u32 %v5847_v9, %v5345_v59  ;;  %v5034_v10 = vor.u32 %v5769_v16, %v5033_v47  ;;  %v5457_v40 = vld [vmem:[%s9090_s17 + $0xa8] sm:$0xf] }
 0x4d9   :  { %v2861_v33 = vsel %vm2858_vm7, %v2860_v2, %v2856_v57  ;;  %3846 = vmatpush.bf16.msra.mxu3 %v5178_v4  ;;  %v6157_v31 = vpop.eup %6156  ;;  %v5046_v49 = vor.u32 %v5772_v18, %v5045_v21  ;;  %v5829_v4 = vld [vmem:[%s9085_s18 + $0x238] sm:$0xf0]  ;;  %v5844_v43 = vld [vmem:[%s9085_s18 + $0x2b0] sm:$0xf0]  ;;  %v5021_v2 = vld [vmem:[%s9085_s18 + $0x38] sm:$0xf]  ;;  %v5010_v21 = vor.u32 %v5763_v38, %v5009_v41 }
 0x4da   :  { %v2866_v32 = vmul.f32 %v2861_v33, %v8259_v24  ;;  %v2933_v30 = vpop.f32.mrf.mxu1  ;;  %v2834_v13 = vmul.f32 %v6157_v31, %v8352_v6  ;;  %v5357_v24 = vld [vmem:[%s9085_s18 + $0x2d8] sm:$0xf]  ;;  %vm2839_vm8 = vweird.f32 %v6157_v31  ;;  %v5793_v6 = vld [vmem:[%s9085_s18 + $0x118] sm:$0xf0]  ;;  %v5274_v57 = vor.u32 %v5829_v4, %v5273_v5  ;;  %v4997_v18 = vld [vmem:[%s9085_s18 + $0x8] sm:$0xf] }
 0x4db   :  { %v5358_v27 = vor.u32 %v5850_v29, %v5357_v24  ;;  %vm2840_vm0 = vmor %vm2838_vm9, %vm2839_vm8  ;;  %v5130_v61 = vor.u32 %v5793_v6, %v5129_v63  ;;  %6162 = vpow2.f32 %v4986_v35  ;;  %v5334_v55 = vor.u32 %v5844_v43, %v5333_v36  ;;  %v5261_v33 = vld [vmem:[%s9085_s18 + $0x218] sm:$0xf]  ;;  %v5784_v53 = vld [vmem:[%s9085_s18 + $0xd0] sm:$0xf0] }
 0x4dc   :  { %v8420_v54 = vpack.c.bf16 %v2866_v32, %v2866_v32  ;;  %3834 = vmatpush.bf16.msra.mxu2 %v5070_v44  ;;  %v2835_v28 = vsub.f32 1.0, %v2834_v13  ;;  %v5790_v44 = vld [vmem:[%s9085_s18 + $0x100] sm:$0xf0]  ;;  %v5022_v62 = vor.u32 %v5766_v50, %v5021_v2  ;;  %v5841_v32 = vld [vmem:[%s9085_s18 + $0x298] sm:$0xf0]  ;;  %v4998_v16 = vor.u32 %v5760_v51, %v4997_v18 }
 0x4dd   :  { %3847 = vmatpush.bf16.msra.mxu3 %v5166_v52  ;;  %v5826_v52 = vld [vmem:[%s9085_s18 + $0x220] sm:$0xf0]  ;;  %v5118_v8 = vor.u32 %v5790_v44, %v5117_v14  ;;  %v5820_v9 = vld [vmem:[%s9085_s18 + $0x1f0] sm:$0xf0]  ;;  %v5297_v63 = vld [vmem:[%s9085_s18 + $0x260] sm:$0xf] }
 0x4de   :  { %3776 = vmatmul.bf16.vlgmr.msra.gmra.mxu1 %v8420_v54  ;;  %v2836_v11 = vmul.f32 %v6157_v31, %v2835_v28  ;;  %v5262_v13 = vor.u32 %v5826_v52, %v5261_v33  ;;  %v5309_v28 = vld [vmem:[%s9085_s18 + $0x278] sm:$0xf]  ;;  %v5445_v4 = vld [vmem:[%s9090_s17 + $0x90] sm:$0xf]  ;;  %v5817_v36 = vld [vmem:[%s9085_s18 + $0x1d8] sm:$0xf0] }
 0x4df   :  { %3872 = vmatpush.bf16.msra.mxu1 %v5370_v26  ;;  %v5105_v26 = vld [vmem:[%s9085_s18 + $0xe0] sm:$0xf]  ;;  %v5541_v43 = vld [vmem:[%s9090_s17 + $0x150] sm:$0xf]  ;;  %v5285_v2 = vld [vmem:[%s9085_s18 + $0x248] sm:$0xf] }
 0x4e0   :  { %3835 = vmatpush.bf16.msra.mxu2 %v5058_v17  ;;  %v2837_v60 = vadd.f32 %v6157_v31, %v2836_v11  ;;  %v5823_v17 = vld [vmem:[%s9085_s18 + $0x208] sm:$0xf0]  ;;  %v5106_v20 = vor.u32 %v5787_v37, %v5105_v26  ;;  %v5832_v50 = vld [vmem:[%s9085_s18 + $0x250] sm:$0xf0]  ;;  %v5529_v41 = vld [vmem:[%s9090_s17 + $0x138] sm:$0xf] }
 0x4e1   :  { %3848 = vmatpush.bf16.msra.mxu3 %v5154_v25  ;;  %v5838_v25 = vld [vmem:[%s9085_s18 + $0x280] sm:$0xf0]  ;;  %v5250_v11 = vor.u32 %v5823_v17, %v5249_v15  ;;  %v5719_v17 = vld [vmem:[%s9090_s17 + $0x94] sm:$0xf]  ;;  %v5201_v18 = vld [vmem:[%s9085_s18 + $0x1a0] sm:$0xf] }
 0x4e2   :  { %v2841_v56 = vsel %vm2840_vm0, %v6157_v31, %v2837_v60  ;;  %v5321_v31 = vld [vmem:[%s9085_s18 + $0x290] sm:$0xf]  ;;  %v5310_v59 = vor.u32 %v5838_v25, %v5309_v28  ;;  %v5553_v60 = vld [vmem:[%s9090_s17 + $0x168] sm:$0xf]  ;;  %v5741_v38 = vld [vmem:[%s9090_s17 + $0x140] sm:$0xf0] }
 0x4e3   :  { %3873 = vmatpush.bf16.msra.mxu1 %v5358_v27  ;;  %v2846_v19 = vsel %vm2843_vm12, %v2845_v1, %v2841_v56  ;;  %v5322_v29 = vor.u32 %v5841_v32, %v5321_v31  ;;  %v5093_v27 = vld [vmem:[%s9085_s18 + $0xc8] sm:$0xf]  ;;  %v5835_v1 = vld [vmem:[%s9085_s18 + $0x268] sm:$0xf0]  ;;  %v5238_v56 = vor.u32 %v5820_v9, %v5237_v45  ;;  %v5717_v31 = vld [vmem:[%s9090_s17 + $0x80] sm:$0xf0]  ;;  %v5286_v32 = vor.u32 %v5832_v50, %v5285_v2 }
 0x4e4   :  { %3836 = vmatpush.bf16.msra.mxu2 %v5046_v49  ;;  %v2865_v42 = vmul.f32 %v2846_v19, %v8296_v48  ;;  %v6159_v48 = vpop.eup %6158  ;;  %v5723_v49 = vld [vmem:[%s9090_s17 + $0xb0] sm:$0xf0]  ;;  %v5094_v6 = vor.u32 %v5784_v53, %v5093_v27  ;;  %v5720_v19 = vld [vmem:[%s9090_s17 + $0x98] sm:$0xf0]  ;;  %v5530_v25 = vor.u32 %v5741_v38, %v5529_v41  ;;  %v5811_v51 = vld [vmem:[%s9085_s18 + $0x1a8] sm:$0xf0] }
 0x4e5   :  { %3849 = vmatpush.bf16.msra.mxu3 %v5142_v46  ;;  %v6161_v39 = vpop.eup %6160  ;;  %v8506_v30 = vadd.f32 1.0, %v6159_v48  ;;  %v5747_v46 = vld [vmem:[%s9090_s17 + $0x170] sm:$0xf0]  ;;  %v5458_v5 = vor.u32 %v5723_v49, %v5457_v40  ;;  %v5446_v44 = vor.u32 %v5720_v19, %v5445_v4  ;;  %v5722_v48 = vld [vmem:[%s9090_s17 + $0xac] sm:$0xf]  ;;  %vm4186_vm0 = vcmask 359424  }
 0x4e6   :  { %v8483_v58 = vpack.c.bf16 %v2865_v42, %v2865_v42  ;;  %v8514_v24 = vadd.f32 1.0, %v6161_v39  ;;  %v6163_v3 = vpop.eup %6162  ;;  %v5554_v35 = vor.u32 %v5747_v46, %v5553_v60  ;;  %v5744_v42 = vld [vmem:[%s9090_s17 + $0x158] sm:$0xf0]  ;;  %v5213_v39 = vld [vmem:[%s9085_s18 + $0x1b8] sm:$0xf] }
 0x4e7   :  { %3874 = vmatpush.bf16.msra.mxu1 %v5346_v22  ;;  %3789 = vmatmul.bf16.vlgmr.msrb.gmra.mxu2 %v8365_v0  ;;  %6164 = vrcp.f32 %v8506_v30  ;;  %v8561_v47 = vadd.f32 1.0, %v6163_v3  ;;  %v5225_v22 = vld [vmem:[%s9085_s18 + $0x1d0] sm:$0xf]  ;;  %v2969_v14 = vand.u32 2147483648, %v8506_v30  ;;  %v5542_v52 = vor.u32 %v5744_v42, %v5541_v43  ;;  %v5421_v3 = vld [vmem:[%s9090_s17 + $0x60] sm:$0xf] }
 0x4e8   :  { %3802 = vmatmul.bf16.vlgmr.msrb.gmra.mxu3 %v8374_v12  ;;  %3837 = vmatpush.bf16.msra.mxu2 %v5034_v10  ;;  %6166 = vrcp.f32 %v8514_v24  ;;  %v5298_v10 = vor.u32 %v5835_v1, %v5297_v63  ;;  %v5226_v33 = vor.u32 %v5817_v36, %v5225_v22  ;;  %v2967_v26 = vand.u32 2147483647, %v8506_v30  ;;  %v5517_v27 = vld [vmem:[%s9090_s17 + $0x120] sm:$0xf]  ;;  %v5738_v53 = vld [vmem:[%s9090_s17 + $0x128] sm:$0xf0] }
 0x4e9   :  { %3763 = vmatmul.bf16.vlgmr.msrb.gmra.mxu0 %v8483_v58  ;;  %3850 = vmatpush.bf16.msra.mxu3 %v5130_v61  ;;  %6168 = vrcp.f32 %v8561_v47  ;;  %v2982_v40 = vand.u32 2147483647, %v8514_v24  ;;  %v5435_v46 = vld [vmem:[%s9090_s17 + $0x84] sm:$0xf0]  ;;  %v5756_v63 = vld [vmem:[%s9090_s17 + $0x1b8] sm:$0x30]  ;;  %v5202_v1 = vor.u32 %v5811_v51, %v5201_v18  ;;  %vm2963_vm14 = vweird.f32 %v8506_v30 }
 0x4ea   :  { %3859 = vmatpush.bf16.msrb.mxu0 %v5274_v57  ;;  %v5808_v22 = vld [vmem:[%s9085_s18 + $0x190] sm:$0xf0]  ;;  %v5505_v4 = vld [vmem:[%s9090_s17 + $0x108] sm:$0xf]  ;;  %v2984_v36 = vand.u32 2147483648, %v8514_v24  ;;  %vm8697_vm1 = vcmp.eq.f32.partialorder %v2967_v26, 8.507059e+37  ;;  %vm2978_vm2 = vweird.f32 %v8514_v24  ;;  %vm2993_vm6 = vweird.f32 %v8561_v47 }
 0x4eb   :  { %3875 = vmatpush.bf16.msra.mxu1 %v5334_v55  ;;  %v5459_v55 = vld [vmem:[%s9090_s17 + $0xb4] sm:$0xf0]  ;;  %v5735_v19 = vld [vmem:[%s9090_s17 + $0x110] sm:$0xf0]  ;;  %vm8710_vm4 = vcmp.eq.f32.partialorder %v2982_v40, 8.507059e+37 }
 0x4ec   :  { %3838 = vmatpush.bf16.msra.mxu2 %v5022_v62  ;;  %v5433_v62 = vld [vmem:[%s9090_s17 + $0x78] sm:$0xf]  ;;  %v5462_v37 = vor.u32 %v5722_v48, %v5459_v55  ;;  %v5423_v48 = vld [vmem:[%s9090_s17 + $0x6c] sm:$0xf0]  ;;  %v5710_v18 = vld [vmem:[%s9090_s17 + $0x4c] sm:$0xf] }
 0x4ed   :  { %3851 = vmatpush.bf16.msra.mxu3 %v5118_v8  ;;  %v8587_v61 = vpop.eup %6164  ;;  %v5814_v8 = vld [vmem:[%s9085_s18 + $0x1c0] sm:$0xf0]  ;;  %v5434_v15 = vor.u32 %v5717_v31, %v5433_v62  ;;  %v5708_v62 = vld [vmem:[%s9090_s17 + $0x38] sm:$0xf0]  ;;  %v2997_v31 = vand.u32 2147483647, %v8561_v47 }
 0x4ee   :  { %3860 = vmatpush.bf16.msrb.mxu0 %v5262_v13  ;;  %3828 = vmatmul.bf16.vlgmr.msrb.gmra.mxu1 %v8420_v54  ;;  %v8596_v57 = vpop.eup %6166  ;;  %v2959_v13 = vmul.f32 %v8587_v61, %v8506_v30  ;;  %vm2964_vm15 = vweird.f32 %v8587_v61  ;;  %v5705_v51 = vld [vmem:[%s9090_s17 + $0x20] sm:$0xf0]  ;;  %v5750_v40 = vld [vmem:[%s9090_s17 + $0x188] sm:$0xf0]  ;;  %v5543_v55 = vld [vmem:[%s9090_s17 + $0x15c] sm:$0xf0] }
 0x4ef   :  { %3876 = vmatpush.bf16.msra.mxu1 %v5322_v29  ;;  %v8630_v29 = vor.u32 1.1754944e-38, %v2969_v14  ;;  %v8639_v28 = vpop.eup %6168  ;;  %vm2979_vm3 = vweird.f32 %v8596_v57  ;;  %vm8732_vm5 = vmor %vm2963_vm14, %vm2964_vm15  ;;  %vm8820_vm9 = vcmp.eq.f32.partialorder %v2997_v31, 8.507059e+37  ;;  %v5579_v38 = vld [vmem:[%s9090_s17 + $0x1a4] sm:$0xf0]  ;;  %v5561_v30 = vld [vmem:[%s9090_s17 + $0x170] sm:$0xf] }
 0x4f0   :  { %3839 = vmatpush.bf16.msra.mxu2 %v5010_v21  ;;  %v5447_v21 = vld [vmem:[%s9090_s17 + $0x9c] sm:$0xf0]  ;;  %v2989_v9 = vmul.f32 %v8639_v28, %v8561_v47  ;;  %vm8748_vm13 = vmor %vm2978_vm2, %vm2979_vm3  ;;  %vm2994_vm7 = vweird.f32 %v8639_v28 }
 0x4f1   :  { %3852 = vmatpush.bf16.msra.mxu3 %v5106_v20  ;;  %v5714_v20 = vld [vmem:[%s9090_s17 + $0x68] sm:$0xf0]  ;;  %v5450_v49 = vor.u32 %v5719_v17, %v5447_v21  ;;  %vm8810_vm8 = vmor %vm2993_vm6, %vm2994_vm7 }
 0x4f2   :  { %3861 = vmatpush.bf16.msrb.mxu0 %v5250_v11  ;;  %v2960_v11 = vsub.f32 1.0, %v2959_v13  ;;  %v5422_v60 = vor.u32 %v5714_v20, %v5421_v3  ;;  %v2990_v50 = vsub.f32 1.0, %v2989_v9  ;;  %v2985_v13 = vor.u32 1.1754944e-38, %v2984_v36  ;;  %v5411_v3 = vld [vmem:[%s9090_s17 + $0x54] sm:$0xf0] }
 0x4f3   :  { %3877 = vmatpush.bf16.msra.mxu1 %v5310_v59  ;;  %v5716_v59 = vld [vmem:[%s9090_s17 + $0x7c] sm:$0xf]  ;;  %v5385_v20 = vld [vmem:[%s9090_s17 + $0x18] sm:$0xf]  ;;  %v5746_v9 = vld [vmem:[%s9090_s17 + $0x16c] sm:$0xf] }
 0x4f4   :  { %3840 = vmatpush.bf16.msra.mxu2 %v4998_v16  ;;  %v5589_v16 = vld [vmem:[%s9090_s17 + $0x1b0] sm:$0xf]  ;;  %v5438_v43 = vor.u32 %v5716_v59, %v5435_v46  ;;  %v2991_v21 = vmul.f32 %v8639_v28, %v2990_v50  ;;  %v5414_v59 = vor.u32 %v5710_v18, %v5411_v3  ;;  %v5591_v46 = vld [vmem:[%s9090_s17 + $0x1bc] sm:$0x30]  ;;  %v5757_v18 = vld [vmem:[%s9090_s17 + $0x1c0] sm:$0x30] }
 0x4f5   :  { %3853 = vmatpush.bf16.msra.mxu3 %v5094_v6  ;;  %v5518_v6 = vor.u32 %v5738_v53, %v5517_v27  ;;  %v5590_v42 = vor.u32 %v5756_v63, %v5589_v16  ;;  %v5481_v27 = vld [vmem:[%s9090_s17 + $0xd8] sm:$0xf]  ;;  %v5386_v63 = vor.u32 %v5705_v51, %v5385_v20 }
 0x4f6   :  { %3862 = vmatpush.bf16.msrb.mxu0 %v5238_v56  ;;  %v5409_v56 = vld [vmem:[%s9090_s17 + $0x48] sm:$0xf] }
 0x4f7   :  { %3878 = vmatpush.bf16.msra.mxu1 %v5298_v10  ;;  %3841 = vmatmul.bf16.vlgmr.msra.gmra.mxu2 %v8365_v0  ;;  %v2974_v0 = vmul.f32 %v8596_v57, %v8514_v24  ;;  %v2961_v10 = vmul.f32 %v8587_v61, %v2960_v11  ;;  %v4191_v26 = vsel %vm739_vm11, %v5590_v42, 0  ;;  %v5729_v11 = vld [vmem:[%s9090_s17 + $0xe0] sm:$0xf0] }
 0x4f8   :  { %4199 = vmatpush.bf16.msrb.mxu2 %v5458_v5  ;;  %3854 = vmatmul.bf16.vlgmr.msra.gmra.mxu3 %v8374_v12  ;;  %v5214_v12 = vor.u32 %v5814_v8, %v5213_v39  ;;  %v5189_v5 = vld [vmem:[%s9085_s18 + $0x188] sm:$0xf]  ;;  %v5397_v39 = vld [vmem:[%s9090_s17 + $0x30] sm:$0xf]  ;;  %v5732_v8 = vld [vmem:[%s9090_s17 + $0xf8] sm:$0xf0] }
 0x4f9   :  { %4212 = vmatpush.bf16.msrb.mxu3 %v5554_v35  ;;  %3815 = vmatmul.bf16.vlgmr.msra.gmra.mxu0 %v8483_v58  ;;  %v2975_v45 = vsub.f32 1.0, %v2974_v0  ;;  %v5711_v35 = vld [vmem:[%s9090_s17 + $0x50] sm:$0xf0]  ;;  %v2962_v41 = vadd.f32 %v8587_v61, %v2961_v10  ;;  %v5726_v10 = vld [vmem:[%s9090_s17 + $0xc8] sm:$0xf0] }
 0x4fa   :  { %3863 = vmatpush.bf16.msrb.mxu0 %v5226_v33  ;;  %v5410_v14 = vor.u32 %v5711_v35, %v5409_v56  ;;  %v5190_v33 = vor.u32 %v5808_v22, %v5189_v5  ;;  %v5399_v5 = vld [vmem:[%s9090_s17 + $0x3c] sm:$0xf0]  ;;  %v5702_v35 = vld [vmem:[%s9090_s17 + $0x8] sm:$0xf0] }
 0x4fb   :  { %3879 = vmatpush.bf16.msra.mxu1 %v5286_v32  ;;  %v2976_v2 = vmul.f32 %v8596_v57, %v2975_v45  ;;  %v5493_v32 = vld [vmem:[%s9090_s17 + $0xf0] sm:$0xf]  ;;  %v5565_v45 = vld [vmem:[%s9090_s17 + $0x180] sm:$0xf] }
 0x4fc   :  { %4200 = vmatpush.bf16.msrb.mxu2 %v5446_v44  ;;  %v5713_v44 = vld [vmem:[%s9090_s17 + $0x64] sm:$0xf]  ;;  %v5494_v24 = vor.u32 %v5732_v8, %v5493_v32  ;;  %v5373_v56 = vld [vmem:[%s9090_s17] sm:$0xf]  ;;  %v5740_v8 = vld [vmem:[%s9090_s17 + $0x13c] sm:$0xf] }
 0x4fd   :  { %4213 = vmatpush.bf16.msrb.mxu3 %v5542_v52  ;;  %v5506_v52 = vor.u32 %v5735_v19, %v5505_v4  ;;  %v5426_v0 = vor.u32 %v5713_v44, %v5423_v48  ;;  %v2977_v17 = vadd.f32 %v8596_v57, %v2976_v2  ;;  %v5469_v19 = vld [vmem:[%s9090_s17 + $0xc0] sm:$0xf]  ;;  %v5465_v44 = vld [vmem:[%s9090_s17 + $0xb0] sm:$0xf]  ;;  %v5724_v48 = vld [vmem:[%s9090_s17 + $0xb8] sm:$0xf0] }
 0x4fe   :  { %3864 = vmatpush.bf16.msrb.mxu0 %v5214_v12  ;;  %3880 = vmatmul.bf16.vlgmr.msra.gmra.mxu1 %v8420_v54  ;;  %v2999_v12 = vand.u32 2147483648, %v8561_v47  ;;  %v5566_v47 = vor.u32 %v5750_v40, %v5565_v45  ;;  %v5374_v54 = vor.u32 %v5702_v35, %v5373_v56  ;;  %v5466_v31 = vor.u32 %v5724_v48, %v5465_v44  ;;  %v5441_v40 = vld [vmem:[%s9090_s17 + $0x80] sm:$0xf]  ;;  %v5715_v56 = vld [vmem:[%s9090_s17 + $0x70] sm:$0xf0] }
 0x4ff   :  { %4238 = vmatpush.bf16.msrb.mxu1 %v5462_v37  ;;  %v5577_v37 = vld [vmem:[%s9090_s17 + $0x198] sm:$0xf]  ;;  %v2981_v16 = vsel %vm8748_vm13, %v8596_v57, %v2977_v17  ;;  %v5482_v57 = vor.u32 %v5729_v11, %v5481_v27  ;;  %v5375_v17 = vld [vmem:[%s9090_s17 + $0xc] sm:$0xf0]  ;;  %v5749_v27 = vld [vmem:[%s9090_s17 + $0x184] sm:$0xf] }
 0x500   :  { %4201 = vmatpush.bf16.msrb.mxu2 %v5434_v15  ;;  %v5753_v15 = vld [vmem:[%s9090_s17 + $0x1a0] sm:$0xf0]  ;;  %v3000_v4 = vor.u32 1.1754944e-38, %v2999_v12  ;;  %v2986_v42 = vsel %vm8710_vm4, %v2985_v13, %v2981_v16  ;;  %v5495_v48 = vld [vmem:[%s9090_s17 + $0xfc] sm:$0xf0] }
 0x501   :  { %4214 = vmatpush.bf16.msrb.mxu3 %v5530_v25  ;;  %v5398_v25 = vor.u32 %v5708_v62, %v5397_v39  ;;  %v5578_v53 = vor.u32 %v5753_v15, %v5577_v37  ;;  %v5470_v39 = vor.u32 %v5726_v10, %v5469_v19  ;;  %v5721_v37 = vld [vmem:[%s9090_s17 + $0xa0] sm:$0xf0]  ;;  %v5537_v19 = vld [vmem:[%s9090_s17 + $0x140] sm:$0xf]  ;;  %v5742_v10 = vld [vmem:[%s9090_s17 + $0x148] sm:$0xf0] }
 0x502   :  { %3865 = vmatpush.bf16.msrb.mxu0 %v5202_v1  ;;  %v5555_v1 = vld [vmem:[%s9090_s17 + $0x174] sm:$0xf0]  ;;  %v5701_v15 = vld [vmem:[%s9090_s17 + $0x4] sm:$0xf]  ;;  %v5538_v44 = vor.u32 %v5742_v10, %v5537_v19 }
 0x503   :  { %4239 = vmatpush.bf16.msrb.mxu1 %v5450_v49  ;;  %v2966_v49 = vsel %vm8732_vm5, %v8587_v61, %v2962_v41  ;;  %v2992_v61 = vadd.f32 %v8639_v28, %v2991_v21  ;;  %v5558_v2 = vor.u32 %v5746_v9, %v5555_v1  ;;  %v5752_v41 = vld [vmem:[%s9090_s17 + $0x19c] sm:$0xf]  ;;  %v5378_v45 = vor.u32 %v5701_v15, %v5375_v17  ;;  %v5519_v9 = vld [vmem:[%s9090_s17 + $0x12c] sm:$0xf0]  ;;  %v5745_v16 = vld [vmem:[%s9090_s17 + $0x160] sm:$0xf0] }
 0x504   :  { %4202 = vmatpush.bf16.msrb.mxu2 %v5422_v60  ;;  %v5755_v60 = vld [vmem:[%s9090_s17 + $0x1b4] sm:$0xf]  ;;  %v5748_v21 = vld [vmem:[%s9090_s17 + $0x178] sm:$0xf0]  ;;  %v5582_v12 = vor.u32 %v5752_v41, %v5579_v38  ;;  %v5483_v41 = vld [vmem:[%s9090_s17 + $0xe4] sm:$0xf0] }
 0x505   :  { %4215 = vmatpush.bf16.msrb.mxu3 %v5518_v6  ;;  %v5707_v6 = vld [vmem:[%s9090_s17 + $0x34] sm:$0xf]  ;;  %v5594_v36 = vor.u32 %v5755_v60, %v5591_v46  ;;  %v5549_v46 = vld [vmem:[%s9090_s17 + $0x158] sm:$0xf]  ;;  %v5513_v38 = vld [vmem:[%s9090_s17 + $0x110] sm:$0xf] }
 0x506   :  { %3866 = vmatpush.bf16.msrb.mxu0 %v5190_v33  ;;  %v5402_v50 = vor.u32 %v5707_v6, %v5399_v5  ;;  %v5704_v33 = vld [vmem:[%s9090_s17 + $0x1c] sm:$0xf]  ;;  %v5734_v6 = vld [vmem:[%s9090_s17 + $0x10c] sm:$0xf]  ;;  %v5550_v35 = vor.u32 %v5745_v16, %v5549_v46  ;;  %v5725_v15 = vld [vmem:[%s9090_s17 + $0xc4] sm:$0xf] }
 0x507   :  { %4240 = vmatpush.bf16.msrb.mxu1 %v5438_v43  ;;  %v2971_v43 = vsel %vm8697_vm1, %v8630_v29, %v2966_v49  ;;  %v2996_v29 = vsel %vm8810_vm8, %v8639_v28, %v2992_v61  ;;  %v3004_v28 = vmul.f32 %v2986_v42, %v8384_v34  ;;  %v4194_v32 = vsel %vm739_vm11, %v5594_v36, 0  ;;  %v5731_v42 = vld [vmem:[%s9090_s17 + $0xf4] sm:$0xf]  ;;  %v5471_v17 = vld [vmem:[%s9090_s17 + $0xcc] sm:$0xf0] }
 0x508   :  { %4203 = vmatpush.bf16.msrb.mxu2 %v5410_v14  ;;  %v5743_v14 = vld [vmem:[%s9090_s17 + $0x154] sm:$0xf]  ;;  %v3003_v62 = vmul.f32 %v2971_v43, %v8334_v7  ;;  %v3001_v7 = vsel %vm8820_vm9, %v3000_v4, %v2996_v29  ;;  %v5562_v49 = vor.u32 %v5748_v21, %v5561_v30  ;;  %v5585_v4 = vld [vmem:[%s9090_s17 + $0x1a0] sm:$0xf]  ;;  %v5573_v29 = vld [vmem:[%s9090_s17 + $0x188] sm:$0xf] }
 0x509   :  { %4216 = vmatpush.bf16.msrb.mxu3 %v5506_v52  ;;  %3867 = vmatmul.bf16.vlgmr.msrb.gmra.mxu0 %v8483_v58  ;;  %v5387_v52 = vld [vmem:[%s9090_s17 + $0x24] sm:$0xf0]  ;;  %v5546_v34 = vor.u32 %v5743_v14, %v5543_v55  ;;  %v3005_v20 = vmul.f32 %v3001_v7, %v8411_v23  ;;  %v5718_v23 = vld [vmem:[%s9090_s17 + $0x88] sm:$0xf0]  ;;  %v5507_v58 = vld [vmem:[%s9090_s17 + $0x114] sm:$0xf0] }
 0x50a   :  { %4230 = vmatpush.bf16.msra.mxu0 %v4191_v26  ;;  %v5390_v13 = vor.u32 %v5704_v33, %v5387_v52  ;;  %v5531_v26 = vld [vmem:[%s9090_s17 + $0x144] sm:$0xf0]  ;;  %v8897_v3 = vpack.c.bf16 %v3003_v62, %v3003_v62  ;;  %v5442_v1 = vor.u32 %v5718_v23, %v5441_v40  ;;  %v5510_v43 = vor.u32 %v5734_v6, %v5507_v58  ;;  %v5739_v33 = vld [vmem:[%s9090_s17 + $0x130] sm:$0xf0]  ;;  %v5405_v62 = vld [vmem:[%s9090_s17 + $0x38] sm:$0xf] }
 0x50b   :  { %4241 = vmatpush.bf16.msrb.mxu1 %v5426_v0  ;;  %v5453_v0 = vld [vmem:[%s9090_s17 + $0x98] sm:$0xf]  ;;  %v5534_v11 = vor.u32 %v5740_v8, %v5531_v26  ;;  %v5525_v55 = vld [vmem:[%s9090_s17 + $0x128] sm:$0xf]  ;;  %v5728_v8 = vld [vmem:[%s9090_s17 + $0xdc] sm:$0xf] }
 0x50c   :  { %4204 = vmatpush.bf16.msrb.mxu2 %v5398_v25  ;;  %v5597_v25 = vld [vmem:[%s9090_s17 + $0x1b8] sm:$0xf]  ;;  %v5454_v51 = vor.u32 %v5721_v37, %v5453_v0  ;;  %v5736_v7 = vld [vmem:[%s9090_s17 + $0x118] sm:$0xf0]  ;;  %v5393_v26 = vld [vmem:[%s9090_s17 + $0x20] sm:$0xf] }
 0x50d   :  { %4217 = vmatpush.bf16.msrb.mxu3 %v5494_v24  ;;  %v8899_v24 = vpack.c.bf16 %v3004_v28, %v3004_v28  ;;  %v5598_v60 = vor.u32 %v5757_v18, %v5597_v25  ;;  %v5709_v28 = vld [vmem:[%s9090_s17 + $0x40] sm:$0xf0]  ;;  %v5706_v0 = vld [vmem:[%s9090_s17 + $0x28] sm:$0xf0]  ;;  %v5514_v37 = vor.u32 %v5736_v7, %v5513_v38  ;;  %v5501_v30 = vld [vmem:[%s9090_s17 + $0xf8] sm:$0xf]  ;;  %v5474_v25 = vor.u32 %v5725_v15, %v5471_v17 }
 0x50e   :  { %4231 = vmatpush.bf16.msra.mxu0 %v5578_v53  ;;  %v5567_v53 = vld [vmem:[%s9090_s17 + $0x18c] sm:$0xf0]  ;;  %v5733_v21 = vld [vmem:[%s9090_s17 + $0x100] sm:$0xf0]  ;;  %v5381_v18 = vld [vmem:[%s9090_s17 + $0x8] sm:$0xf] }
 0x50f   :  { %4242 = vmatpush.bf16.msrb.mxu1 %v5414_v59  ;;  %v5737_v59 = vld [vmem:[%s9090_s17 + $0x124] sm:$0xf]  ;;  %v5570_v61 = vor.u32 %v5749_v27, %v5567_v53  ;;  %v4197_v22 = vsel %vm739_vm11, %v5598_v60, 0  ;;  %v5489_v27 = vld [vmem:[%s9090_s17 + $0xe0] sm:$0xf]  ;;  %vm4412_vm8 = vcmask 353280  }
 0x510   :  { %4205 = vmatpush.bf16.msrb.mxu2 %v5386_v63  ;;  %v8928_v63 = vpack.c.bf16 %v3005_v20, %v3005_v20  ;;  %v5522_v5 = vor.u32 %v5737_v59, %v5519_v9  ;;  %v5703_v20 = vld [vmem:[%s9090_s17 + $0x10] sm:$0xf0]  ;;  %v5730_v53 = vld [vmem:[%s9090_s17 + $0xe8] sm:$0xf0]  ;;  %v5477_v40 = vld [vmem:[%s9090_s17 + $0xc8] sm:$0xf] }
 0x511   :  { %4218 = vmatpush.bf16.msrb.mxu3 %v5482_v57  ;;  %v5429_v57 = vld [vmem:[%s9090_s17 + $0x68] sm:$0xf]  ;;  %v5727_v23 = vld [vmem:[%s9090_s17 + $0xd0] sm:$0xf0] }
 0x512   :  { %4232 = vmatpush.bf16.msra.mxu0 %v5566_v47  ;;  %v5754_v47 = vld [vmem:[%s9090_s17 + $0x1a8] sm:$0xf0]  ;;  %v5430_v36 = vor.u32 %v5715_v56, %v5429_v57 }
 0x513   :  { %4243 = vmatpush.bf16.msrb.mxu1 %v5402_v50  ;;  %v5712_v50 = vld [vmem:[%s9090_s17 + $0x58] sm:$0xf0]  ;;  %v5586_v14 = vor.u32 %v5754_v47, %v5585_v4 }
 0x514   :  { %4206 = vmatpush.bf16.msrb.mxu2 %v5374_v54  ;;  %v5751_v54 = vld [vmem:[%s9090_s17 + $0x190] sm:$0xf0] }
 0x515   :  { %4219 = vmatpush.bf16.msrb.mxu3 %v5470_v39  ;;  %v5498_v39 = vor.u32 %v5731_v42, %v5495_v48 }
 0x516   :  { %4251 = vmatpush.bf16.msrb.mxu0 %v5558_v2  ;;  %v5417_v2 = vld [vmem:[%s9090_s17 + $0x50] sm:$0xf] }
 0x517   :  { %4244 = vmatpush.bf16.msrb.mxu1 %v5390_v13  ;;  %4207 = vmatmul.bf16.vlgmr.msrb.gmra.mxu2 %v8897_v3  ;;  %v5418_v52 = vor.u32 %v5712_v50, %v5417_v2  ;;  %v5486_v13 = vor.u32 %v5728_v8, %v5483_v41 }
 0x518   :  { %4269 = vmatpush.bf16.msra.mxu2 %v4194_v32  ;;  %4220 = vmatmul.bf16.vlgmr.msrb.gmra.mxu3 %v8899_v24  ;;  %v5526_v32 = vor.u32 %v5739_v33, %v5525_v55 }
 0x519   :  { %4277 = vmatpush.bf16.msra.mxu3 %v5466_v31  ;;  %5599 = vmatmul.msk.bf16.vlgmr.msra.gmra.mxu0 %vm4186_vm0, %v8928_v63  ;;  %v5574_v31 = vor.u32 %v5751_v54, %v5573_v29 }
 0x51a   :  { %4252 = vmatpush.bf16.msrb.mxu0 %v5546_v34  ;;  %v5406_v34 = vor.u32 %v5709_v28, %v5405_v62  ;;  %v4327_v28 = vld [vmem:[%s9092_s20] sm:$0x7] }
 0x51b   :  { %4245 = vmatpush.bf16.msrb.mxu1 %v5378_v45  ;;  %v5490_v45 = vor.u32 %v5730_v53, %v5489_v27  ;;  %v4329_v41 = vperm.slane %v4327_v28, 0  ;;  %v4330_v27 = vperm.slane %v4327_v28, 1 }
 0x51c   :  { %4270 = vmatpush.bf16.msra.mxu2 %v5582_v12  ;;  %v5394_v12 = vor.u32 %v5706_v0, %v5393_v26 }
 0x51d   :  { %4278 = vmatpush.bf16.msra.mxu3 %v5454_v51  ;;  %v5502_v51 = vor.u32 %v5733_v21, %v5501_v30 }
 0x51e   :  { %4253 = vmatpush.bf16.msrb.mxu0 %v5534_v11  ;;  %4246 = vmatmul.bf16.vlgmr.msrb.gmra.mxu1 %v8897_v3  ;;  %v5382_v11 = vor.u32 %v5703_v20, %v5381_v18 }
 0x51f   :  { %4290 = vmatpush.bf16.msra.mxu1 %v5562_v49  ;;  %v5478_v49 = vor.u32 %v5727_v23, %v5477_v40 }
 0x520   :  { %4271 = vmatpush.bf16.msra.mxu2 %v5570_v61 }
 0x521   :  { %4279 = vmatpush.bf16.msra.mxu3 %v5442_v1 }
 0x522   :  { %4254 = vmatpush.bf16.msrb.mxu0 %v5522_v5 }
 0x523   :  { %4291 = vmatpush.bf16.msra.mxu1 %v5550_v35 }
 0x524   :  { %4308 = vmatpush.bf16.msrb.mxu2 %v4197_v22 }
 0x525   :  { %4280 = vmatpush.bf16.msra.mxu3 %v5430_v36 }
 0x526   :  { %4255 = vmatpush.bf16.msrb.mxu0 %v5510_v43 }
 0x527   :  { %4292 = vmatpush.bf16.msra.mxu1 %v5538_v44  ;;  %5600 = vmatmul.msk.bf16.vlgmr.msra.gmra.mxu2 %vm4186_vm0, %v8928_v63 }
 0x528   :  { %4309 = vmatpush.bf16.msrb.mxu2 %v5586_v14 }
 0x529   :  { %4281 = vmatpush.bf16.msra.mxu3 %v5418_v52  ;;  %v4316_v52 = vld [vmem:[%s9091_s19] sm:$0x7] }
 0x52a   :  { %4256 = vmatpush.bf16.msrb.mxu0 %v5498_v39  ;;  %v4319_v18 = vperm.slane %v4316_v52, 1 }
 0x52b   :  { %4293 = vmatpush.bf16.msra.mxu1 %v5526_v32  ;;  %v4318_v32 = vperm.slane %v4316_v52, 0 }
 0x52c   :  { %4310 = vmatpush.bf16.msrb.mxu2 %v5574_v31 }
 0x52d   :  { %4282 = vmatpush.bf16.msra.mxu3 %v5406_v34 }
 0x52e   :  { %4257 = vmatpush.bf16.msrb.mxu0 %v5486_v13 }
 0x52f   :  { %4294 = vmatpush.bf16.msra.mxu1 %v5514_v37 }
 0x531   :  { %4283 = vmatpush.bf16.msra.mxu3 %v5394_v12 }
 0x532   :  { %4258 = vmatpush.bf16.msrb.mxu0 %v5474_v25 }
 0x533   :  { %4295 = vmatpush.bf16.msra.mxu1 %v5502_v51 }
 0x535   :  { %4259 = vmatmul.bf16.vlgmr.msrb.gmra.mxu0 %v8899_v24  ;;  %4284 = vmatpush.bf16.msra.mxu3 %v5382_v11 }
 0x537   :  { %4296 = vmatpush.bf16.msra.mxu1 %v5490_v45  ;;  %5601 = vmatmul.msk.bf16.vlgmr.msrb.gmra.mxu2 %vm4186_vm0, %v8928_v63 }
 0x538   :  { %4285 = vmatmul.bf16.vlgmr.msra.gmra.mxu3 %v8897_v3 }
 0x53b   :  { %4297 = vmatpush.bf16.msra.mxu1 %v5478_v49 }
 0x53e   :  { %4298 = vmatmul.bf16.vlgmr.msra.gmra.mxu1 %v8899_v24 }
 0x55a   :  { %v3738_v59 = vpop.f32.mrf.mxu2 }
 0x55b   :  { %v3751_v9 = vpop.f32.mrf.mxu3  ;;  %v3777_v60 = vpop.f32.mrf.mxu1 }
 0x55c   :  { %v3752_v46 = vadd.f32 %v3751_v9, %v3738_v59 }
 0x562   :  { %v3740_v16 = vpop.f32.mrf.mxu2 }
 0x563   :  { %v3753_v61 = vpop.f32.mrf.mxu3  ;;  %v3779_v1 = vpop.f32.mrf.mxu1 }
 0x566   :  { %v3764_v6 = vpop.f32.mrf.mxu0 }
 0x567   :  { %v3765_v5 = vadd.f32 %v3764_v6, %v3752_v46 }
 0x569   :  { %v3778_v58 = vadd.f32 %v3777_v60, %v3765_v5  ;;  %v4320_v5 = vperm.slane %v4316_v52, 2 }
 0x56a   :  { %v3790_v57 = vpop.f32.mrf.mxu2 }
 0x56b   :  { %v3803_v56 = vpop.f32.mrf.mxu3  ;;  %v3829_v35 = vpop.f32.mrf.mxu1 }
 0x56c   :  { %v3804_v3 = vadd.f32 %v3803_v56, %v3790_v57  ;;  %v4331_v57 = vperm.slane %v4327_v28, 2 }
 0x56e   :  { %v3766_v22 = vpop.f32.mrf.mxu0 }
 0x572   :  { %v3792_v4 = vpop.f32.mrf.mxu2 }
 0x573   :  { %v3805_v47 = vpop.f32.mrf.mxu3  ;;  %v3831_v63 = vpop.f32.mrf.mxu1 }
 0x576   :  { %v3816_v19 = vpop.f32.mrf.mxu0 }
 0x577   :  { %v3817_v24 = vadd.f32 %v3816_v19, %v3804_v3 }
 0x579   :  { %v3830_v10 = vadd.f32 %v3829_v35, %v3817_v24 }
 0x57a   :  { %v3842_v36 = vpop.f32.mrf.mxu2 }
 0x57b   :  { %v3855_v43 = vpop.f32.mrf.mxu3  ;;  %v3881_v42 = vpop.f32.mrf.mxu1 }
 0x57c   :  { %v3856_v20 = vadd.f32 %v3855_v43, %v3842_v36 }
 0x57e   :  { %v3818_v2 = vpop.f32.mrf.mxu0 }
 0x582   :  { %v3844_v50 = vpop.f32.mrf.mxu2 }
 0x583   :  { %v3857_v14 = vpop.f32.mrf.mxu3  ;;  %v3883_v44 = vpop.f32.mrf.mxu1 }
 0x586   :  { %v3868_v48 = vpop.f32.mrf.mxu0 }
 0x587   :  { %v3869_v53 = vadd.f32 %v3868_v48, %v3856_v20 }
 0x589   :  { %v3882_v59 = vadd.f32 %v3881_v42, %v3869_v53  ;;  %v28_v42 = vstv %s9093_s22 }
 0x58a   :  { %29 = vst [vmem:[#allocation2] sm:$0x1] %v28_v42 }
 0x58e   :  { %v3870_v29 = vpop.f32.mrf.mxu0 }
 0x596   :  { %v4234_v54 = vpop.f32.mrf.mxu0 }
 0x59a   :  { %v4208_v55 = vpop.f32.mrf.mxu2 }
 0x59b   :  { %v4221_v33 = vpop.f32.mrf.mxu3  ;;  %v4209_v39 = vadd.f32 %v4208_v55, %v3778_v58  ;;  %v4247_v62 = vpop.f32.mrf.mxu1 }
 0x59c   :  { %v4248_v30 = vadd.f32 %v4247_v62, %v3830_v10 }
 0x59d   :  { %v4222_v31 = vadd.f32 %v4221_v33, %v4209_v39  ;;  %v4398_v39 = vld [vmem:[%s9094_s21] sm:$0x7] }
 0x59e   :  { %v4236_v38 = vpop.f32.mrf.mxu0 }
 0x59f   :  { %v4235_v8 = vadd.f32 %v4234_v54, %v4222_v31 }
 0x5a1   :  { %v9049_v7 = vadd.f32 %v4318_v32, %v4235_v8  ;;  %v4400_v8 = vperm.slane %v4398_v39, 0 }
 0x5a2   :  { %v4210_v34 = vpop.f32.mrf.mxu2 }
 0x5a3   :  { %v4223_v13 = vpop.f32.mrf.mxu3  ;;  %v4335_v26 = vmul.f32 %v4329_v41, %v9049_v7  ;;  %v4249_v0 = vpop.f32.mrf.mxu1  ;;  %v4401_v34 = vperm.slane %v4398_v39, 1 }
 0x5a5   :  { %v5602_v37 = vmul.f32 -1.442695, %v4335_v26 }
 0x5a7   :  { %6170 = vpow2.f32 %v5602_v37 }
 0x5aa   :  { %v4273_v15 = vpop.f32.mrf.mxu2 }
 0x5ad   :  { %v6171_v17 = vpop.eup %6170 }
 0x5ae   :  { %v4347_v21 = vadd.f32 1.0, %v6171_v17 }
 0x5b0   :  { %6172 = vrcp.f32 %v4347_v21  ;;  %v4361_v43 = vand.u32 2147483648, %v4347_v21  ;;  %vm4355_vm12 = vweird.f32 %v4347_v21  ;;  %v4359_v2 = vand.u32 2147483647, %v4347_v21 }
 0x5b2   :  { %v4260_v12 = vpop.f32.mrf.mxu0  ;;  %v4275_v11 = vpop.f32.mrf.mxu2  ;;  %v4362_v48 = vor.u32 1.1754944e-38, %v4361_v43  ;;  %vm4360_vm15 = vcmp.eq.f32.partialorder %v4359_v2, 8.507059e+37 }
 0x5b3   :  { %v4261_v25 = vadd.f32 %v4260_v12, %v4248_v30  ;;  %v4402_v11 = vperm.slane %v4398_v39, 2 }
 0x5b5   :  { %v4274_v51 = vadd.f32 %v4273_v15, %v4261_v25 }
 0x5b6   :  { %v6173_v23 = vpop.eup %6172 }
 0x5b7   :  { %v9052_v45 = vadd.f32 %v4319_v18, %v4274_v51  ;;  %v4351_v61 = vmul.f32 %v6173_v23, %v4347_v21  ;;  %vm4356_vm11 = vweird.f32 %v6173_v23 }
 0x5b8   :  { %vm4357_vm14 = vmor %vm4355_vm12, %vm4356_vm11 }
 0x5b9   :  { %v4336_v40 = vmul.f32 %v4330_v27, %v9052_v45  ;;  %v4352_v56 = vsub.f32 1.0, %v4351_v61 }
 0x5ba   :  { %v4262_v49 = vpop.f32.mrf.mxu0  ;;  %v4312_v6 = vpop.f32.mrf.mxu2 }
 0x5bb   :  { %v5603_v9 = vmul.f32 -1.442695, %v4336_v40  ;;  %v4286_v60 = vpop.f32.mrf.mxu3  ;;  %v4299_v46 = vpop.f32.mrf.mxu1  ;;  %v4353_v19 = vmul.f32 %v6173_v23, %v4352_v56 }
 0x5bc   :  { %v4287_v16 = vadd.f32 %v4286_v60, %v3882_v59 }
 0x5bd   :  { %6174 = vpow2.f32 %v5603_v9  ;;  %v4354_v36 = vadd.f32 %v6173_v23, %v4353_v19  ;;  %v6009_v9 = vld [vmem:[#allocation2] ss:$0 sm:$0xff] }
 0x5be   :  { %v4300_v1 = vadd.f32 %v4299_v46, %v4287_v16 }
 0x5bf   :  { %v4358_v14 = vsel %vm4357_vm14, %v6173_v23, %v4354_v36 }
 0x5c0   :  { %v4313_v58 = vadd.f32 %v4312_v6, %v4300_v1  ;;  %v4363_v55 = vsel %vm4360_vm15, %v4362_v48, %v4358_v14 }
 0x5c1   :  { %v4395_v31 = vmul.f32 %v4363_v55, %v9049_v7 }
 0x5c2   :  { %v9055_v35 = vadd.f32 %v4320_v5, %v4313_v58  ;;  %v4314_v24 = vpop.f32.mrf.mxu2 }
 0x5c3   :  { %v6175_v3 = vpop.eup %6174  ;;  %v4288_v22 = vpop.f32.mrf.mxu3  ;;  %v4406_v0 = vmul.f32 %v4400_v8, %v4395_v31 }
 0x5c4   :  { %v4301_v4 = vpop.f32.mrf.mxu1  ;;  %v4348_v47 = vadd.f32 1.0, %v6175_v3  ;;  %v4337_v63 = vmul.f32 %v4331_v57, %v9055_v35 }
 0x5c5   :  { %v4409_v21 = vsel %vm2887_vm10, %v4406_v0, 0.0 }
 0x5c6   :  { %6176 = vrcp.f32 %v4348_v47  ;;  %v5604_v10 = vmul.f32 -1.442695, %v4337_v63  ;;  %v4376_v33 = vand.u32 2147483648, %v4348_v47  ;;  %v4374_v28 = vand.u32 2147483647, %v4348_v47 }
 0x5c7   :  { %vm4370_vm2 = vweird.f32 %v4348_v47 }
 0x5c8   :  { %6178 = vpow2.f32 %v5604_v10  ;;  %v4377_v41 = vor.u32 1.1754944e-38, %v4376_v33  ;;  %vm4375_vm4 = vcmp.eq.f32.partialorder %v4374_v28, 8.507059e+37 }
 0x5cc   :  { %v6177_v50 = vpop.eup %6176 }
 0x5cd   :  { %v4366_v44 = vmul.f32 %v6177_v50, %v4348_v47  ;;  %vm4371_vm1 = vweird.f32 %v6177_v50 }
 0x5ce   :  { %v6179_v29 = vpop.eup %6178  ;;  %vm4372_vm3 = vmor %vm4370_vm2, %vm4371_vm1 }
 0x5cf   :  { %v4367_v54 = vsub.f32 1.0, %v4366_v44  ;;  %v4349_v52 = vadd.f32 1.0, %v6179_v29 }
 0x5d1   :  { %v4368_v62 = vmul.f32 %v6177_v50, %v4367_v54  ;;  %6180 = vrcp.f32 %v4349_v52  ;;  %v4391_v12 = vand.u32 2147483648, %v4349_v52  ;;  %v4389_v20 = vand.u32 2147483647, %v4349_v52 }
 0x5d2   :  { %vm4385_vm13 = vweird.f32 %v4349_v52 }
 0x5d3   :  { %v4369_v32 = vadd.f32 %v6177_v50, %v4368_v62  ;;  %v4392_v27 = vor.u32 1.1754944e-38, %v4391_v12  ;;  %vm4390_vm7 = vcmp.eq.f32.partialorder %v4389_v20, 8.507059e+37 }
 0x5d5   :  { %v4373_v38 = vsel %vm4372_vm3, %v6177_v50, %v4369_v32 }
 0x5d6   :  { %v4378_v13 = vsel %vm4375_vm4, %v4377_v41, %v4373_v38 }
 0x5d7   :  { %v4396_v26 = vmul.f32 %v4378_v13, %v9052_v45  ;;  %v6181_v37 = vpop.eup %6180 }
 0x5d8   :  { %v4381_v15 = vmul.f32 %v6181_v37, %v4349_v52  ;;  %vm4386_vm5 = vweird.f32 %v6181_v37 }
 0x5d9   :  { %v4407_v17 = vmul.f32 %v4401_v34, %v4396_v26  ;;  %vm4387_vm6 = vmor %vm4385_vm13, %vm4386_vm5 }
 0x5da   :  { %v4382_v30 = vsub.f32 1.0, %v4381_v15 }
 0x5db   :  { %v4410_v7 = vsel %vm2887_vm10, %v4407_v17, 0.0  ;;  %vm4422_vm10 = vcmask 1024  }
 0x5dc   :  { %v4411_v25 = vadd.f32 %v4410_v7, %v4409_v21  ;;  %v4383_v18 = vmul.f32 %v6181_v37, %v4382_v30 }
 0x5de   :  { %v4384_v51 = vadd.f32 %v6181_v37, %v4383_v18 }
 0x5e0   :  { %v4388_v53 = vsel %vm4387_vm6, %v6181_v37, %v4384_v51 }
 0x5e1   :  { %v4393_v45 = vsel %vm4390_vm7, %v4392_v27, %v4388_v53 }
 0x5e2   :  { %v4397_v40 = vmul.f32 %v4393_v45, %v9055_v35 }
 0x5e4   :  { %v4408_v23 = vmul.f32 %v4402_v11, %v4397_v40 }
 0x5e6   :  { %v4413_v49 = vsel %vm4412_vm8, %v4408_v23, 0.0 }
 0x5e7   :  { %v4414_v59 = vadd.f32 %v4413_v49, %v4411_v25 }
 0x5e9   :  { %4415 = vadd.xlane.f32.xlu2 %v4414_v59 }
 0x65c   :  { %v4416_v60 = vpop.xlane.xlu2 %4415 }
 0x65d   :  { %v4421_v46 = vadd.f32 %v6009_v9, %v4416_v60 }
 0x65f   :  { %4423 = vst.msk [vmem:[%s9095_s23] sm:$0x3] %vm4422_vm10, %v4421_v46 }

</bundles_post_ra>
